<compile_context>
chip_gen: v7x
topology: tpu7x:2x2x1
jax: 0.10.0
libtpu: 0.0.40
codegen_flags: <defaults>
</compile_context>

<pallas_src>
import functools

import jax
import jax.numpy as jnp
import numpy as np
from jax.experimental import pallas as pl
from jax.experimental.pallas import tpu as pltpu


# --------------------------- in-kernel helpers ------------------------------
def _conv3x3_relu(buf, w_ref, b_ref, B, P, H, W):
    """3x3 'same' conv + bias + ReLU over B stacked, guard-padded images.

    `buf` is a flat (B*P, Cin) ref; image b's block starts at row b*P with
    W+1 zero guard rows above and below its H*W interior rows (row = h*W+w,
    channels on lanes).  Builds the (B*H*W, 9*Cin) im2col patch from 9 shifted
    VMEM reads per image (zero guard rows supply the vertical halo, per-column
    masks the horizontal halo) and performs ONE MXU matmul with the
    (9*Cin, Cout) bf16 weight.  Returns the f32 (B*H*W, Cout) activation.
    """
    HW = H * W
    col = jax.lax.broadcasted_iota(jnp.int32, (HW, 1), 0) % W
    mask_l = col >= 1          # tap col offset -1 invalid for output col 0
    mask_r = col <= (W - 2)    # tap col offset +1 invalid for output col W-1

    imgs = []
    for b in range(B):
        base = b * P + W + 1
        taps = []
        for kh in range(3):
            for kw in range(3):
                sl = buf[pl.ds(base + (kh - 1) * W + (kw - 1), HW), :]
                if kw == 0:
                    sl = jnp.where(mask_l, sl, 0.0)
                elif kw == 2:
                    sl = jnp.where(mask_r, sl, 0.0)
                taps.append(sl.astype(jnp.bfloat16))   # cast once per tap
        imgs.append(jnp.concatenate(taps, axis=1))     # (HW, 9*Cin) bf16
    patch = imgs[0] if B == 1 else jnp.concatenate(imgs, axis=0)

    out = jnp.dot(patch, w_ref[...], preferred_element_type=jnp.float32)
    return jnp.maximum(out + b_ref[...], 0.0)


def _maxpool2x2(src_ref, src_base, dst_ref, dst_base, H, W):
    """2x2/stride-2 max-pool of one image's (H*W, C) conv output stored in
    `src_ref` at row `src_base`; stores the (H/2*W/2, C) result into
    `dst_ref` starting at row `dst_base` (the next conv's padded interior)."""
    Ho, Wo = H // 2, W // 2
    for ho in range(Ho):
        r0 = src_base + 2 * ho * W
        t00 = src_ref[pl.ds(r0, Wo, stride=2), :]
        t01 = src_ref[pl.ds(r0 + 1, Wo, stride=2), :]
        t10 = src_ref[pl.ds(r0 + W, Wo, stride=2), :]
        t11 = src_ref[pl.ds(r0 + W + 1, Wo, stride=2), :]
        dst_ref[pl.ds(dst_base + ho * Wo, Wo), :] = jnp.maximum(
            jnp.maximum(t00, t01), jnp.maximum(t10, t11))


def _cnn5_fused_kernel(x_ref,
                       w1, b1, w2, b2, w3, b3, w4, b4, w5, b5, wfc, bfc,
                       o_ref,
                       buf2, buf3, buf4, buf5, y1s, y2s, y4s, y5f,
                       *, B, spatial):
    (H1, W1), (H2, W2), (H3, W3), (H4, W4), (H5, W5) = spatial
    P1, P2, P3, P4, P5 = tuple(h * w + 2 * w + 2 for (h, w) in spatial)
    HW5 = H5 * W5
    c5 = w5.shape[1]

    # Zero ONLY the halo guard rows (2*(W+1) rows per image per buffer) --
    # interiors are fully overwritten below.  Done every grid step so the
    # kernel stays correct if the "parallel" axis is split across TCs.
    for pbuf, pp, pw in ((buf2, P2, W2), (buf3, P3, W3),
                         (buf4, P4, W4), (buf5, P5, W5)):
        g = pw + 1
        z = jnp.zeros((g, pbuf.shape[1]), pbuf.dtype)
        for b in range(B):
            pbuf[pl.ds(b * pp, g), :] = z
            pbuf[pl.ds((b + 1) * pp - g, g), :] = z

    # conv1 (input arrives pre-padded from the wrapper) + pool1 -> buf2
    y1s[...] = _conv3x3_relu(x_ref, w1, b1, B, P1, H1, W1)
    for b in range(B):
        _maxpool2x2(y1s, b * H1 * W1, buf2, b * P2 + W2 + 1, H1, W1)

    # conv2 + pool2 -> buf3
    y2s[...] = _conv3x3_relu(buf2, w2, b2, B, P2, H2, W2)
    for b in range(B):
        _maxpool2x2(y2s, b * H2 * W2, buf3, b * P3 + W3 + 1, H2, W2)

    # conv3 (no pool) -> interior of conv4's padded buffer
    y3 = _conv3x3_relu(buf3, w3, b3, B, P3, H3, W3)
    for b in range(B):
        buf4[pl.ds(b * P4 + W4 + 1, H3 * W3), :] = \
            y3[b * H3 * W3:(b + 1) * H3 * W3, :]

    # conv4 + pool4 -> buf5
    y4s[...] = _conv3x3_relu(buf4, w4, b4, B, P4, H4, W4)
    for b in range(B):
        _maxpool2x2(y4s, b * H4 * W4, buf5, b * P5 + W5 + 1, H4, W4)

    # conv5 (no pool)
    y5 = _conv3x3_relu(buf5, w5, b5, B, P5, H5, W5)

    # FC: flatten y5 per image (NHWC order; torch's NCHW flatten is folded
    # into the wrapper-side wfc layout) and do ONE matmul.
    for b in range(B):
        for m in range(HW5):
            y5f[pl.ds(b, 1), pl.ds(m * c5, c5)] = \
                y5[b * HW5 + m:b * HW5 + m + 1, :]
    o_ref[...] = (jnp.dot(y5f[...].astype(jnp.bfloat16), wfc[...],
                          preferred_element_type=jnp.float32) + bfc[...])


# ------------------------------ wrapper -------------------------------------
def _resident_spec(shape):
    """Full-array block whose index never changes -> stays resident in VMEM."""
    zero_idx = (0,) * len(shape)
    return pl.BlockSpec(shape, lambda n, _z=zero_idx: _z)


def _pick_batch_tile(n, max_tile=8):
    """Largest tile that divides n, keeps grid >= 2 (both v7x TCs busy), and
    stays small enough that VMEM scratch is never a concern."""
    best = 1
    for t in range(1, min(n, max_tile) + 1):
        if n % t == 0 and (n == 1 or n // t >= 2):
            best = t
    return best


def cnn5layer_forward(params, x_nchw, batch_tile=None):
    N, Cin, H, W = x_nchw.shape
    assert H % 8 == 0 and W % 8 == 0, "img dims must be divisible by 8"

    B = batch_tile if batch_tile is not None else _pick_batch_tile(N)
    assert N % B == 0
    G = N // B

    c1 = params["w1"].shape[-1]
    c2 = params["w2"].shape[-1]
    c3 = params["w3"].shape[-1]
    c4 = params["w4"].shape[-1]
    c5 = params["w5"].shape[-1]
    nc = params["w_fc"].shape[-1]
    assert c5 % 128 == 0, "conv5 width must be a multiple of 128 (FC flatten)"

    spatial = ((H, W), (H // 2, W // 2), (H // 4, W // 4),
               (H // 4, W // 4), (H // 8, W // 8))
    (H1, W1), (H2, W2), (H3, W3), (H4, W4), (H5, W5) = spatial
    P1, P2, P3, P4, P5 = tuple(h * w + 2 * w + 2 for (h, w) in spatial)
    HW5 = H5 * W5

    # NCHW -> NHWC rows (h*W+w, channels on lanes); add W+1 zero guard rows
    # above and below each image; group B images per grid step.
    x_rows = jnp.transpose(x_nchw, (0, 2, 3, 1)).reshape(N, H * W, Cin)
    x_pad = jnp.pad(x_rows, ((0, 0), (W1 + 1, W1 + 1), (0, 0)))
    x_pad = x_pad.reshape(G, B * P1, Cin).astype(jnp.float32)

    # HWIO (3,3,Cin,Cout) -> (9*Cin, Cout) bf16: row index = (kh*3+kw)*Cin + c,
    # which matches the in-kernel patch column order exactly.
    def wmat(name):
        wk = params[name]
        return wk.reshape(9 * wk.shape[2], wk.shape[3]).astype(jnp.bfloat16)

    def brow(name):
        return params[name].reshape(1, -1).astype(jnp.float32)

    # FC weight: torch flattens NCHW (row = c*HW5 + m); the kernel flattens
    # NHWC (row = m*c5 + c), so reorder once here.
    wfc = params["w_fc"].reshape(c5, HW5, nc).transpose(1, 0, 2)
    wfc = wfc.reshape(HW5 * c5, nc).astype(jnp.bfloat16)
    bfc = params["b_fc"].reshape(1, nc).astype(jnp.float32)

    weight_args = (wmat("w1"), brow("b1"), wmat("w2"), brow("b2"),
                   wmat("w3"), brow("b3"), wmat("w4"), brow("b4"),
                   wmat("w5"), brow("b5"), wfc, bfc)

    scratch_shapes = [
        pltpu.VMEM((B * P2, c1), jnp.float32),          # buf2 (padded input L2)
        pltpu.VMEM((B * P3, c2), jnp.float32),          # buf3 (padded input L3)
        pltpu.VMEM((B * P4, c3), jnp.float32),          # buf4 (padded input L4)
        pltpu.VMEM((B * P5, c4), jnp.float32),          # buf5 (padded input L5)
        pltpu.VMEM((B * H1 * W1, c1), jnp.float32),     # y1 (pre-pool)
        pltpu.VMEM((B * H2 * W2, c2), jnp.float32),     # y2 (pre-pool)
        pltpu.VMEM((B * H4 * W4, c4), jnp.float32),     # y4 (pre-pool)
        pltpu.VMEM((B, HW5 * c5), jnp.float32),         # y5 flattened (FC LHS)
    ]

    flops = 2 * N * (H1 * W1 * 9 * Cin * c1 + H2 * W2 * 9 * c1 * c2 +
                     H3 * W3 * 9 * c2 * c3 + H4 * W4 * 9 * c3 * c4 +
                     H5 * W5 * 9 * c4 * c5 + H5 * W5 * c5 * nc)
    bytes_accessed = (int(x_pad.size) * 4 + N * nc * 4 +
                      sum(int(a.size) * a.dtype.itemsize for a in weight_args))

    out = pl.pallas_call(
        functools.partial(_cnn5_fused_kernel, B=B, spatial=spatial),
        out_shape=jax.ShapeDtypeStruct((G, B, nc), jnp.float32),
        grid=(G,),
        in_specs=[pl.BlockSpec((None, B * P1, Cin), lambda n: (n, 0, 0))] +
                 [_resident_spec(a.shape) for a in weight_args],
        out_specs=pl.BlockSpec((None, B, nc), lambda n: (n, 0, 0)),
        scratch_shapes=scratch_shapes,
        compiler_params=pltpu.CompilerParams(
            dimension_semantics=("parallel",)),
        cost_estimate=pl.CostEstimate(flops=flops, transcendentals=0,
                                      bytes_accessed=bytes_accessed),
    )(x_pad, *weight_args)
    return out.reshape(N, nc)


# ---------------------------- model parameters ------------------------------
def init_params(key, in_channels=3, num_classes=10, width_multiplier=1,
                img_size=(16, 16)):
    chans = [in_channels,
             int(16 * width_multiplier), int(32 * width_multiplier),
             int(64 * width_multiplier), int(128 * width_multiplier),
             int(256 * width_multiplier)]
    keys = jax.random.split(key, 12)
    params = {}
    for i in range(5):
        cin, cout = chans[i], chans[i + 1]
        params[f"w{i+1}"] = 0.05 * jax.random.normal(
            keys[2 * i], (3, 3, cin, cout), jnp.float32)
        params[f"b{i+1}"] = 0.05 * jax.random.normal(
            keys[2 * i + 1], (cout,), jnp.float32)
    fc_in = chans[5] * (img_size[0] // 8) * (img_size[1] // 8)
    params["w_fc"] = 0.05 * jax.random.normal(keys[10], (fc_in, num_classes),
                                              jnp.float32)
    params["b_fc"] = 0.05 * jax.random.normal(keys[11], (num_classes,),
                                              jnp.float32)
    return params


# ------------------------------ reference -----------------------------------
def reference_forward(params, x_nchw):
    x = jnp.transpose(x_nchw, (0, 2, 3, 1))

    def conv(x, w, b):
        y = jax.lax.conv_general_dilated(
            x, w, (1, 1), "SAME",
            dimension_numbers=("NHWC", "HWIO", "NHWC"))
        return jax.nn.relu(y + b)

    def pool(x):
        return jax.lax.reduce_window(x, -jnp.inf, jax.lax.max,
                                     (1, 2, 2, 1), (1, 2, 2, 1), "VALID")

    x = pool(conv(x, params["w1"], params["b1"]))
    x = pool(conv(x, params["w2"], params["b2"]))
    x = conv(x, params["w3"], params["b3"])
    x = pool(conv(x, params["w4"], params["b4"]))
    x = conv(x, params["w5"], params["b5"])
    flat = jnp.transpose(x, (0, 3, 1, 2)).reshape(x.shape[0], -1)
    return flat @ params["w_fc"] + params["b_fc"]


# --------------------------------- main --------------------------------------
if __name__ == "__main__":
    key = jax.random.PRNGKey(0)
    k_params, k_x = jax.random.split(key)

    batch, in_channels, img_size, num_classes = 2, 3, (16, 16), 10
    params = init_params(k_params, in_channels=in_channels,
                         num_classes=num_classes, width_multiplier=1,
                         img_size=img_size)
    x = jax.random.normal(k_x, (batch, in_channels, *img_size), jnp.float32)

    out = jax.block_until_ready(jax.jit(cnn5layer_forward)(params, x))
    assert out.shape == (batch, num_classes)

    ref = jax.block_until_ready(reference_forward(params, x))
    # bf16 matmul operands with f32 accumulation -> slightly relaxed tolerance
    # vs. the pure-f32 reference.
    np.testing.assert_allclose(np.asarray(out), np.asarray(ref),
                               rtol=2e-2, atol=2e-2)

    print("KERNEL_OK")
</pallas_src>

<mosaic_0001>
module attributes {stable_mosaic.version = 11 : i64} {
  func.func @_cnn5_fused_kernel(%arg0: i32, %arg1: memref<1x290x3xf32, #tpu.memory_space<vmem>>, %arg2: memref<27x16xbf16, #tpu.memory_space<vmem>>, %arg3: memref<1x16xf32, #tpu.memory_space<vmem>>, %arg4: memref<144x32xbf16, #tpu.memory_space<vmem>>, %arg5: memref<1x32xf32, #tpu.memory_space<vmem>>, %arg6: memref<288x64xbf16, #tpu.memory_space<vmem>>, %arg7: memref<1x64xf32, #tpu.memory_space<vmem>>, %arg8: memref<576x128xbf16, #tpu.memory_space<vmem>>, %arg9: memref<1x128xf32, #tpu.memory_space<vmem>>, %arg10: memref<1152x256xbf16, #tpu.memory_space<vmem>>, %arg11: memref<1x256xf32, #tpu.memory_space<vmem>>, %arg12: memref<1024x10xbf16, #tpu.memory_space<vmem>>, %arg13: memref<1x10xf32, #tpu.memory_space<vmem>>, %arg14: memref<1x1x10xf32, #tpu.memory_space<vmem>>, %arg15: memref<82x16xf32, #tpu.memory_space<vmem>>, %arg16: memref<26x32xf32, #tpu.memory_space<vmem>>, %arg17: memref<26x64xf32, #tpu.memory_space<vmem>>, %arg18: memref<10x128xf32, #tpu.memory_space<vmem>>, %arg19: memref<256x16xf32, #tpu.memory_space<vmem>>, %arg20: memref<64x32xf32, #tpu.memory_space<vmem>>, %arg21: memref<16x128xf32, #tpu.memory_space<vmem>>, %arg22: memref<1x1024xf32, #tpu.memory_space<vmem>>) attributes {dimension_semantics = [#tpu.dimension_semantics<parallel>], iteration_bounds = array<i64: 2>, scalar_prefetch = 0 : i64, scratch_operands = 8 : i64, tpu.core_type = #tpu.core_type<tc>, window_params = [{transform_indices = @transform_0, window_bounds = array<i64: 1, 290, 3>}, {pipeline_mode = #tpu.pipeline_mode<synchronous>, transform_indices = @transform_1, window_bounds = array<i64: 27, 16>}, {pipeline_mode = #tpu.pipeline_mode<synchronous>, transform_indices = @transform_2, window_bounds = array<i64: 1, 16>}, {pipeline_mode = #tpu.pipeline_mode<synchronous>, transform_indices = @transform_3, window_bounds = array<i64: 144, 32>}, {pipeline_mode = #tpu.pipeline_mode<synchronous>, transform_indices = @transform_4, window_bounds = array<i64: 1, 32>}, {pipeline_mode = #tpu.pipeline_mode<synchronous>, transform_indices = @transform_5, window_bounds = array<i64: 288, 64>}, {pipeline_mode = #tpu.pipeline_mode<synchronous>, transform_indices = @transform_6, window_bounds = array<i64: 1, 64>}, {pipeline_mode = #tpu.pipeline_mode<synchronous>, transform_indices = @transform_7, window_bounds = array<i64: 576, 128>}, {pipeline_mode = #tpu.pipeline_mode<synchronous>, transform_indices = @transform_8, window_bounds = array<i64: 1, 128>}, {pipeline_mode = #tpu.pipeline_mode<synchronous>, transform_indices = @transform_9, window_bounds = array<i64: 1152, 256>}, {pipeline_mode = #tpu.pipeline_mode<synchronous>, transform_indices = @transform_10, window_bounds = array<i64: 1, 256>}, {pipeline_mode = #tpu.pipeline_mode<synchronous>, transform_indices = @transform_11, window_bounds = array<i64: 1024, 10>}, {pipeline_mode = #tpu.pipeline_mode<synchronous>, transform_indices = @transform_12, window_bounds = array<i64: 1, 10>}, {transform_indices = @transform_13, window_bounds = array<i64: 1, 1, 10>}]} {
    %cst = arith.constant 0.000000e+00 : f32
    %0 = vector.broadcast %cst : f32 to vector<9x16xf32>
    %c0 = arith.constant 0 : index
    %c0_0 = arith.constant 0 : index
    %1 = vector.load %arg15[%c0, %c0_0] : memref<82x16xf32, #tpu.memory_space<vmem>>, vector<9x16xf32>
    tpu.vector_store %arg15[%c0, %c0_0], %0 {strides = array<i32>} : memref<82x16xf32, #tpu.memory_space<vmem>>, vector<9x16xf32>,
    %c73 = arith.constant 73 : index
    %c0_1 = arith.constant 0 : index
    %2 = vector.load %arg15[%c73, %c0_1] : memref<82x16xf32, #tpu.memory_space<vmem>>, vector<9x16xf32>
    tpu.vector_store %arg15[%c73, %c0_1], %0 {strides = array<i32>} : memref<82x16xf32, #tpu.memory_space<vmem>>, vector<9x16xf32>,
    %cst_2 = arith.constant 0.000000e+00 : f32
    %3 = vector.broadcast %cst_2 : f32 to vector<5x32xf32>
    %c0_3 = arith.constant 0 : index
    %c0_4 = arith.constant 0 : index
    %4 = vector.load %arg16[%c0_3, %c0_4] : memref<26x32xf32, #tpu.memory_space<vmem>>, vector<5x32xf32>
    tpu.vector_store %arg16[%c0_3, %c0_4], %3 {strides = array<i32>} : memref<26x32xf32, #tpu.memory_space<vmem>>, vector<5x32xf32>,
    %c21 = arith.constant 21 : index
    %c0_5 = arith.constant 0 : index
    %5 = vector.load %arg16[%c21, %c0_5] : memref<26x32xf32, #tpu.memory_space<vmem>>, vector<5x32xf32>
    tpu.vector_store %arg16[%c21, %c0_5], %3 {strides = array<i32>} : memref<26x32xf32, #tpu.memory_space<vmem>>, vector<5x32xf32>,
    %cst_6 = arith.constant 0.000000e+00 : f32
    %6 = vector.broadcast %cst_6 : f32 to vector<5x64xf32>
    %c0_7 = arith.constant 0 : index
    %c0_8 = arith.constant 0 : index
    %7 = vector.load %arg17[%c0_7, %c0_8] : memref<26x64xf32, #tpu.memory_space<vmem>>, vector<5x64xf32>
    tpu.vector_store %arg17[%c0_7, %c0_8], %6 {strides = array<i32>} : memref<26x64xf32, #tpu.memory_space<vmem>>, vector<5x64xf32>,
    %c21_9 = arith.constant 21 : index
    %c0_10 = arith.constant 0 : index
    %8 = vector.load %arg17[%c21_9, %c0_10] : memref<26x64xf32, #tpu.memory_space<vmem>>, vector<5x64xf32>
    tpu.vector_store %arg17[%c21_9, %c0_10], %6 {strides = array<i32>} : memref<26x64xf32, #tpu.memory_space<vmem>>, vector<5x64xf32>,
    %cst_11 = arith.constant 0.000000e+00 : f32
    %9 = vector.broadcast %cst_11 : f32 to vector<3x128xf32>
    %c0_12 = arith.constant 0 : index
    %c0_13 = arith.constant 0 : index
    %10 = vector.load %arg18[%c0_12, %c0_13] : memref<10x128xf32, #tpu.memory_space<vmem>>, vector<3x128xf32>
    tpu.vector_store %arg18[%c0_12, %c0_13], %9 {strides = array<i32>} : memref<10x128xf32, #tpu.memory_space<vmem>>, vector<3x128xf32>,
    %c7 = arith.constant 7 : index
    %c0_14 = arith.constant 0 : index
    %11 = vector.load %arg18[%c7, %c0_14] : memref<10x128xf32, #tpu.memory_space<vmem>>, vector<3x128xf32>
    tpu.vector_store %arg18[%c7, %c0_14], %9 {strides = array<i32>} : memref<10x128xf32, #tpu.memory_space<vmem>>, vector<3x128xf32>,
    %12 = tpu.iota {dimensions = array<i32: 0>} : vector<256x1xi32>
    %c16_i32 = arith.constant 16 : i32
    %c0_i32 = arith.constant 0 : i32
    %13 = arith.cmpi eq, %c16_i32, %c0_i32 : i32
    %c1_i32 = arith.constant 1 : i32
    %14 = arith.select %13, %c1_i32, %c16_i32 : i32
    %15 = vector.broadcast %14 : i32 to vector<256x1xi32>
    %16 = arith.remsi %12, %15 : vector<256x1xi32>
    %c0_i32_15 = arith.constant 0 : i32
    %17 = vector.broadcast %c0_i32_15 : i32 to vector<256x1xi32>
    %18 = arith.cmpi ne, %16, %17 : vector<256x1xi32>
    %c0_i32_16 = arith.constant 0 : i32
    %19 = vector.broadcast %c0_i32_16 : i32 to vector<256x1xi32>
    %20 = arith.cmpi slt, %16, %19 : vector<256x1xi32>
    %c0_i32_17 = arith.constant 0 : i32
    %21 = arith.cmpi slt, %14, %c0_i32_17 : i32
    %22 = vector.broadcast %21 : i1 to vector<256x1xi1>
    %23 = vector.broadcast %22 : vector<256x1xi1> to vector<256x1xi1>
    %24 = arith.xori %20, %23 : vector<256x1xi1>
    %25 = arith.andi %24, %18 : vector<256x1xi1>
    %26 = vector.broadcast %14 : i32 to vector<256x1xi32>
    %27 = arith.addi %16, %26 : vector<256x1xi32>
    %28 = arith.select %25, %27, %16 : vector<256x1xi1>, vector<256x1xi32>
    %c1_i32_18 = arith.constant 1 : i32
    %29 = vector.broadcast %c1_i32_18 : i32 to vector<256x1xi32>
    %30 = arith.cmpi sge, %28, %29 : vector<256x1xi32>
    %c14_i32 = arith.constant 14 : i32
    %31 = vector.broadcast %c14_i32 : i32 to vector<256x1xi32>
    %32 = arith.cmpi sle, %28, %31 : vector<256x1xi32>
    %c0_19 = arith.constant 0 : index
    %c0_20 = arith.constant 0 : index
    %c0_21 = arith.constant 0 : index
    %33 = vector.load %arg1[%c0_19, %c0_20, %c0_21] : memref<1x290x3xf32, #tpu.memory_space<vmem>>, vector<1x256x3xf32>
    %34 = vector.shape_cast %33 : vector<1x256x3xf32> to vector<256x3xf32>
    %cst_22 = arith.constant 0.000000e+00 : f32
    %35 = vector.shape_cast %30 : vector<256x1xi1> to vector<256x1xi1>
    %36 = vector.broadcast %35 : vector<256x1xi1> to vector<256x3xi1>
    %37 = vector.broadcast %cst_22 : f32 to vector<256x3xf32>
    %38 = arith.select %36, %34, %37 : vector<256x3xi1>, vector<256x3xf32>
    %39 = arith.truncf %38 : vector<256x3xf32> to vector<256x3xbf16>
    %c0_23 = arith.constant 0 : index
    %c1 = arith.constant 1 : index
    %c0_24 = arith.constant 0 : index
    %40 = vector.load %arg1[%c0_23, %c1, %c0_24] : memref<1x290x3xf32, #tpu.memory_space<vmem>>, vector<1x256x3xf32>
    %41 = vector.shape_cast %40 : vector<1x256x3xf32> to vector<256x3xf32>
    %42 = arith.truncf %41 : vector<256x3xf32> to vector<256x3xbf16>
    %c0_25 = arith.constant 0 : index
    %c2 = arith.constant 2 : index
    %c0_26 = arith.constant 0 : index
    %43 = vector.load %arg1[%c0_25, %c2, %c0_26] : memref<1x290x3xf32, #tpu.memory_space<vmem>>, vector<1x256x3xf32>
    %44 = vector.shape_cast %43 : vector<1x256x3xf32> to vector<256x3xf32>
    %cst_27 = arith.constant 0.000000e+00 : f32
    %45 = vector.shape_cast %32 : vector<256x1xi1> to vector<256x1xi1>
    %46 = vector.broadcast %45 : vector<256x1xi1> to vector<256x3xi1>
    %47 = vector.broadcast %cst_27 : f32 to vector<256x3xf32>
    %48 = arith.select %46, %44, %47 : vector<256x3xi1>, vector<256x3xf32>
    %49 = arith.truncf %48 : vector<256x3xf32> to vector<256x3xbf16>
    %c0_28 = arith.constant 0 : index
    %c16 = arith.constant 16 : index
    %c0_29 = arith.constant 0 : index
    %50 = vector.load %arg1[%c0_28, %c16, %c0_29] : memref<1x290x3xf32, #tpu.memory_space<vmem>>, vector<1x256x3xf32>
    %51 = vector.shape_cast %50 : vector<1x256x3xf32> to vector<256x3xf32>
    %cst_30 = arith.constant 0.000000e+00 : f32
    %52 = vector.shape_cast %30 : vector<256x1xi1> to vector<256x1xi1>
    %53 = vector.broadcast %52 : vector<256x1xi1> to vector<256x3xi1>
    %54 = vector.broadcast %cst_30 : f32 to vector<256x3xf32>
    %55 = arith.select %53, %51, %54 : vector<256x3xi1>, vector<256x3xf32>
    %56 = arith.truncf %55 : vector<256x3xf32> to vector<256x3xbf16>
    %c0_31 = arith.constant 0 : index
    %c17 = arith.constant 17 : index
    %c0_32 = arith.constant 0 : index
    %57 = vector.load %arg1[%c0_31, %c17, %c0_32] : memref<1x290x3xf32, #tpu.memory_space<vmem>>, vector<1x256x3xf32>
    %58 = vector.shape_cast %57 : vector<1x256x3xf32> to vector<256x3xf32>
    %59 = arith.truncf %58 : vector<256x3xf32> to vector<256x3xbf16>
    %c0_33 = arith.constant 0 : index
    %c18 = arith.constant 18 : index
    %c0_34 = arith.constant 0 : index
    %60 = vector.load %arg1[%c0_33, %c18, %c0_34] : memref<1x290x3xf32, #tpu.memory_space<vmem>>, vector<1x256x3xf32>
    %61 = vector.shape_cast %60 : vector<1x256x3xf32> to vector<256x3xf32>
    %cst_35 = arith.constant 0.000000e+00 : f32
    %62 = vector.shape_cast %32 : vector<256x1xi1> to vector<256x1xi1>
    %63 = vector.broadcast %62 : vector<256x1xi1> to vector<256x3xi1>
    %64 = vector.broadcast %cst_35 : f32 to vector<256x3xf32>
    %65 = arith.select %63, %61, %64 : vector<256x3xi1>, vector<256x3xf32>
    %66 = arith.truncf %65 : vector<256x3xf32> to vector<256x3xbf16>
    %c0_36 = arith.constant 0 : index
    %c32 = arith.constant 32 : index
    %c0_37 = arith.constant 0 : index
    %67 = vector.load %arg1[%c0_36, %c32, %c0_37] : memref<1x290x3xf32, #tpu.memory_space<vmem>>, vector<1x256x3xf32>
    %68 = vector.shape_cast %67 : vector<1x256x3xf32> to vector<256x3xf32>
    %cst_38 = arith.constant 0.000000e+00 : f32
    %69 = vector.shape_cast %30 : vector<256x1xi1> to vector<256x1xi1>
    %70 = vector.broadcast %69 : vector<256x1xi1> to vector<256x3xi1>
    %71 = vector.broadcast %cst_38 : f32 to vector<256x3xf32>
    %72 = arith.select %70, %68, %71 : vector<256x3xi1>, vector<256x3xf32>
    %73 = arith.truncf %72 : vector<256x3xf32> to vector<256x3xbf16>
    %c0_39 = arith.constant 0 : index
    %c33 = arith.constant 33 : index
    %c0_40 = arith.constant 0 : index
    %74 = vector.load %arg1[%c0_39, %c33, %c0_40] : memref<1x290x3xf32, #tpu.memory_space<vmem>>, vector<1x256x3xf32>
    %75 = vector.shape_cast %74 : vector<1x256x3xf32> to vector<256x3xf32>
    %76 = arith.truncf %75 : vector<256x3xf32> to vector<256x3xbf16>
    %c0_41 = arith.constant 0 : index
    %c34 = arith.constant 34 : index
    %c0_42 = arith.constant 0 : index
    %77 = vector.load %arg1[%c0_41, %c34, %c0_42] : memref<1x290x3xf32, #tpu.memory_space<vmem>>, vector<1x256x3xf32>
    %78 = vector.shape_cast %77 : vector<1x256x3xf32> to vector<256x3xf32>
    %cst_43 = arith.constant 0.000000e+00 : f32
    %79 = vector.shape_cast %32 : vector<256x1xi1> to vector<256x1xi1>
    %80 = vector.broadcast %79 : vector<256x1xi1> to vector<256x3xi1>
    %81 = vector.broadcast %cst_43 : f32 to vector<256x3xf32>
    %82 = arith.select %80, %78, %81 : vector<256x3xi1>, vector<256x3xf32>
    %83 = arith.truncf %82 : vector<256x3xf32> to vector<256x3xbf16>
    %84 = tpu.concatenate %39, %42, %49, %56, %59, %66, %73, %76, %83 in 1 : vector<256x3xbf16>, vector<256x3xbf16>, vector<256x3xbf16>, vector<256x3xbf16>, vector<256x3xbf16>, vector<256x3xbf16>, vector<256x3xbf16>, vector<256x3xbf16>, vector<256x3xbf16> -> vector<256x27xbf16>
    %c0_44 = arith.constant 0 : index
    %c0_45 = arith.constant 0 : index
    %85 = vector.load %arg2[%c0_44, %c0_45] : memref<27x16xbf16, #tpu.memory_space<vmem>>, vector<27x16xbf16>
    %cst_46 = arith.constant dense<0.000000e+00> : vector<256x16xf32>
    %86 = tpu.matmul %84, %85, %cst_46 {dimension_numbers = #tpu.dot_dimension_numbers<[1], [0], [0], [1], [0, 0, 1, 1], [], []>} : vector<256x27xbf16>, vector<27x16xbf16>, vector<256x16xf32> -> vector<256x16xf32>
    %c0_47 = arith.constant 0 : index
    %c0_48 = arith.constant 0 : index
    %87 = vector.load %arg3[%c0_47, %c0_48] : memref<1x16xf32, #tpu.memory_space<vmem>>, vector<1x16xf32>
    %88 = vector.broadcast %87 : vector<1x16xf32> to vector<256x16xf32>
    %89 = arith.addf %86, %88 : vector<256x16xf32>
    %cst_49 = arith.constant 0.000000e+00 : f32
    %90 = vector.broadcast %cst_49 : f32 to vector<256x16xf32>
    %91 = arith.maximumf %89, %90 : vector<256x16xf32>
    %c0_50 = arith.constant 0 : index
    %c0_51 = arith.constant 0 : index
    %92 = vector.load %arg19[%c0_50, %c0_51] : memref<256x16xf32, #tpu.memory_space<vmem>>, vector<256x16xf32>
    tpu.vector_store %arg19[%c0_50, %c0_51], %91 {strides = array<i32>} : memref<256x16xf32, #tpu.memory_space<vmem>>, vector<256x16xf32>,
    %c0_52 = arith.constant 0 : index
    %c0_53 = arith.constant 0 : index
    %93 = tpu.strided_load %arg19[%c0_52, %c0_53] {strides = array<i32: 2, 1>} : memref<256x16xf32, #tpu.memory_space<vmem>>, vector<8x16xf32>
    %c1_54 = arith.constant 1 : index
    %c0_55 = arith.constant 0 : index
    %94 = tpu.strided_load %arg19[%c1_54, %c0_55] {strides = array<i32: 2, 1>} : memref<256x16xf32, #tpu.memory_space<vmem>>, vector<8x16xf32>
    %c16_56 = arith.constant 16 : index
    %c0_57 = arith.constant 0 : index
    %95 = tpu.strided_load %arg19[%c16_56, %c0_57] {strides = array<i32: 2, 1>} : memref<256x16xf32, #tpu.memory_space<vmem>>, vector<8x16xf32>
    %c17_58 = arith.constant 17 : index
    %c0_59 = arith.constant 0 : index
    %96 = tpu.strided_load %arg19[%c17_58, %c0_59] {strides = array<i32: 2, 1>} : memref<256x16xf32, #tpu.memory_space<vmem>>, vector<8x16xf32>
    %97 = arith.maximumf %93, %94 : vector<8x16xf32>
    %98 = arith.maximumf %95, %96 : vector<8x16xf32>
    %99 = arith.maximumf %97, %98 : vector<8x16xf32>
    %c9 = arith.constant 9 : index
    %c0_60 = arith.constant 0 : index
    %100 = vector.load %arg15[%c9, %c0_60] : memref<82x16xf32, #tpu.memory_space<vmem>>, vector<8x16xf32>
    tpu.vector_store %arg15[%c9, %c0_60], %99 {strides = array<i32>} : memref<82x16xf32, #tpu.memory_space<vmem>>, vector<8x16xf32>,
    %c32_61 = arith.constant 32 : index
    %c0_62 = arith.constant 0 : index
    %101 = tpu.strided_load %arg19[%c32_61, %c0_62] {strides = array<i32: 2, 1>} : memref<256x16xf32, #tpu.memory_space<vmem>>, vector<8x16xf32>
    %c33_63 = arith.constant 33 : index
    %c0_64 = arith.constant 0 : index
    %102 = tpu.strided_load %arg19[%c33_63, %c0_64] {strides = array<i32: 2, 1>} : memref<256x16xf32, #tpu.memory_space<vmem>>, vector<8x16xf32>
    %c48 = arith.constant 48 : index
    %c0_65 = arith.constant 0 : index
    %103 = tpu.strided_load %arg19[%c48, %c0_65] {strides = array<i32: 2, 1>} : memref<256x16xf32, #tpu.memory_space<vmem>>, vector<8x16xf32>
    %c49 = arith.constant 49 : index
    %c0_66 = arith.constant 0 : index
    %104 = tpu.strided_load %arg19[%c49, %c0_66] {strides = array<i32: 2, 1>} : memref<256x16xf32, #tpu.memory_space<vmem>>, vector<8x16xf32>
    %105 = arith.maximumf %101, %102 : vector<8x16xf32>
    %106 = arith.maximumf %103, %104 : vector<8x16xf32>
    %107 = arith.maximumf %105, %106 : vector<8x16xf32>
    %c17_67 = arith.constant 17 : index
    %c0_68 = arith.constant 0 : index
    %108 = vector.load %arg15[%c17_67, %c0_68] : memref<82x16xf32, #tpu.memory_space<vmem>>, vector<8x16xf32>
    tpu.vector_store %arg15[%c17_67, %c0_68], %107 {strides = array<i32>} : memref<82x16xf32, #tpu.memory_space<vmem>>, vector<8x16xf32>,
    %c64 = arith.constant 64 : index
    %c0_69 = arith.constant 0 : index
    %109 = tpu.strided_load %arg19[%c64, %c0_69] {strides = array<i32: 2, 1>} : memref<256x16xf32, #tpu.memory_space<vmem>>, vector<8x16xf32>
    %c65 = arith.constant 65 : index
    %c0_70 = arith.constant 0 : index
    %110 = tpu.strided_load %arg19[%c65, %c0_70] {strides = array<i32: 2, 1>} : memref<256x16xf32, #tpu.memory_space<vmem>>, vector<8x16xf32>
    %c80 = arith.constant 80 : index
    %c0_71 = arith.constant 0 : index
    %111 = tpu.strided_load %arg19[%c80, %c0_71] {strides = array<i32: 2, 1>} : memref<256x16xf32, #tpu.memory_space<vmem>>, vector<8x16xf32>
    %c81 = arith.constant 81 : index
    %c0_72 = arith.constant 0 : index
    %112 = tpu.strided_load %arg19[%c81, %c0_72] {strides = array<i32: 2, 1>} : memref<256x16xf32, #tpu.memory_space<vmem>>, vector<8x16xf32>
    %113 = arith.maximumf %109, %110 : vector<8x16xf32>
    %114 = arith.maximumf %111, %112 : vector<8x16xf32>
    %115 = arith.maximumf %113, %114 : vector<8x16xf32>
    %c25 = arith.constant 25 : index
    %c0_73 = arith.constant 0 : index
    %116 = vector.load %arg15[%c25, %c0_73] : memref<82x16xf32, #tpu.memory_space<vmem>>, vector<8x16xf32>
    tpu.vector_store %arg15[%c25, %c0_73], %115 {strides = array<i32>} : memref<82x16xf32, #tpu.memory_space<vmem>>, vector<8x16xf32>,
    %c96 = arith.constant 96 : index
    %c0_74 = arith.constant 0 : index
    %117 = tpu.strided_load %arg19[%c96, %c0_74] {strides = array<i32: 2, 1>} : memref<256x16xf32, #tpu.memory_space<vmem>>, vector<8x16xf32>
    %c97 = arith.constant 97 : index
    %c0_75 = arith.constant 0 : index
    %118 = tpu.strided_load %arg19[%c97, %c0_75] {strides = array<i32: 2, 1>} : memref<256x16xf32, #tpu.memory_space<vmem>>, vector<8x16xf32>
    %c112 = arith.constant 112 : index
    %c0_76 = arith.constant 0 : index
    %119 = tpu.strided_load %arg19[%c112, %c0_76] {strides = array<i32: 2, 1>} : memref<256x16xf32, #tpu.memory_space<vmem>>, vector<8x16xf32>
    %c113 = arith.constant 113 : index
    %c0_77 = arith.constant 0 : index
    %120 = tpu.strided_load %arg19[%c113, %c0_77] {strides = array<i32: 2, 1>} : memref<256x16xf32, #tpu.memory_space<vmem>>, vector<8x16xf32>
    %121 = arith.maximumf %117, %118 : vector<8x16xf32>
    %122 = arith.maximumf %119, %120 : vector<8x16xf32>
    %123 = arith.maximumf %121, %122 : vector<8x16xf32>
    %c33_78 = arith.constant 33 : index
    %c0_79 = arith.constant 0 : index
    %124 = vector.load %arg15[%c33_78, %c0_79] : memref<82x16xf32, #tpu.memory_space<vmem>>, vector<8x16xf32>
    tpu.vector_store %arg15[%c33_78, %c0_79], %123 {strides = array<i32>} : memref<82x16xf32, #tpu.memory_space<vmem>>, vector<8x16xf32>,
    %c128 = arith.constant 128 : index
    %c0_80 = arith.constant 0 : index
    %125 = tpu.strided_load %arg19[%c128, %c0_80] {strides = array<i32: 2, 1>} : memref<256x16xf32, #tpu.memory_space<vmem>>, vector<8x16xf32>
    %c129 = arith.constant 129 : index
    %c0_81 = arith.constant 0 : index
    %126 = tpu.strided_load %arg19[%c129, %c0_81] {strides = array<i32: 2, 1>} : memref<256x16xf32, #tpu.memory_space<vmem>>, vector<8x16xf32>
    %c144 = arith.constant 144 : index
    %c0_82 = arith.constant 0 : index
    %127 = tpu.strided_load %arg19[%c144, %c0_82] {strides = array<i32: 2, 1>} : memref<256x16xf32, #tpu.memory_space<vmem>>, vector<8x16xf32>
    %c145 = arith.constant 145 : index
    %c0_83 = arith.constant 0 : index
    %128 = tpu.strided_load %arg19[%c145, %c0_83] {strides = array<i32: 2, 1>} : memref<256x16xf32, #tpu.memory_space<vmem>>, vector<8x16xf32>
    %129 = arith.maximumf %125, %126 : vector<8x16xf32>
    %130 = arith.maximumf %127, %128 : vector<8x16xf32>
    %131 = arith.maximumf %129, %130 : vector<8x16xf32>
    %c41 = arith.constant 41 : index
    %c0_84 = arith.constant 0 : index
    %132 = vector.load %arg15[%c41, %c0_84] : memref<82x16xf32, #tpu.memory_space<vmem>>, vector<8x16xf32>
    tpu.vector_store %arg15[%c41, %c0_84], %131 {strides = array<i32>} : memref<82x16xf32, #tpu.memory_space<vmem>>, vector<8x16xf32>,
    %c160 = arith.constant 160 : index
    %c0_85 = arith.constant 0 : index
    %133 = tpu.strided_load %arg19[%c160, %c0_85] {strides = array<i32: 2, 1>} : memref<256x16xf32, #tpu.memory_space<vmem>>, vector<8x16xf32>
    %c161 = arith.constant 161 : index
    %c0_86 = arith.constant 0 : index
    %134 = tpu.strided_load %arg19[%c161, %c0_86] {strides = array<i32: 2, 1>} : memref<256x16xf32, #tpu.memory_space<vmem>>, vector<8x16xf32>
    %c176 = arith.constant 176 : index
    %c0_87 = arith.constant 0 : index
    %135 = tpu.strided_load %arg19[%c176, %c0_87] {strides = array<i32: 2, 1>} : memref<256x16xf32, #tpu.memory_space<vmem>>, vector<8x16xf32>
    %c177 = arith.constant 177 : index
    %c0_88 = arith.constant 0 : index
    %136 = tpu.strided_load %arg19[%c177, %c0_88] {strides = array<i32: 2, 1>} : memref<256x16xf32, #tpu.memory_space<vmem>>, vector<8x16xf32>
    %137 = arith.maximumf %133, %134 : vector<8x16xf32>
    %138 = arith.maximumf %135, %136 : vector<8x16xf32>
    %139 = arith.maximumf %137, %138 : vector<8x16xf32>
    %c49_89 = arith.constant 49 : index
    %c0_90 = arith.constant 0 : index
    %140 = vector.load %arg15[%c49_89, %c0_90] : memref<82x16xf32, #tpu.memory_space<vmem>>, vector<8x16xf32>
    tpu.vector_store %arg15[%c49_89, %c0_90], %139 {strides = array<i32>} : memref<82x16xf32, #tpu.memory_space<vmem>>, vector<8x16xf32>,
    %c192 = arith.constant 192 : index
    %c0_91 = arith.constant 0 : index
    %141 = tpu.strided_load %arg19[%c192, %c0_91] {strides = array<i32: 2, 1>} : memref<256x16xf32, #tpu.memory_space<vmem>>, vector<8x16xf32>
    %c193 = arith.constant 193 : index
    %c0_92 = arith.constant 0 : index
    %142 = tpu.strided_load %arg19[%c193, %c0_92] {strides = array<i32: 2, 1>} : memref<256x16xf32, #tpu.memory_space<vmem>>, vector<8x16xf32>
    %c208 = arith.constant 208 : index
    %c0_93 = arith.constant 0 : index
    %143 = tpu.strided_load %arg19[%c208, %c0_93] {strides = array<i32: 2, 1>} : memref<256x16xf32, #tpu.memory_space<vmem>>, vector<8x16xf32>
    %c209 = arith.constant 209 : index
    %c0_94 = arith.constant 0 : index
    %144 = tpu.strided_load %arg19[%c209, %c0_94] {strides = array<i32: 2, 1>} : memref<256x16xf32, #tpu.memory_space<vmem>>, vector<8x16xf32>
    %145 = arith.maximumf %141, %142 : vector<8x16xf32>
    %146 = arith.maximumf %143, %144 : vector<8x16xf32>
    %147 = arith.maximumf %145, %146 : vector<8x16xf32>
    %c57 = arith.constant 57 : index
    %c0_95 = arith.constant 0 : index
    %148 = vector.load %arg15[%c57, %c0_95] : memref<82x16xf32, #tpu.memory_space<vmem>>, vector<8x16xf32>
    tpu.vector_store %arg15[%c57, %c0_95], %147 {strides = array<i32>} : memref<82x16xf32, #tpu.memory_space<vmem>>, vector<8x16xf32>,
    %c224 = arith.constant 224 : index
    %c0_96 = arith.constant 0 : index
    %149 = tpu.strided_load %arg19[%c224, %c0_96] {strides = array<i32: 2, 1>} : memref<256x16xf32, #tpu.memory_space<vmem>>, vector<8x16xf32>
    %c225 = arith.constant 225 : index
    %c0_97 = arith.constant 0 : index
    %150 = tpu.strided_load %arg19[%c225, %c0_97] {strides = array<i32: 2, 1>} : memref<256x16xf32, #tpu.memory_space<vmem>>, vector<8x16xf32>
    %c240 = arith.constant 240 : index
    %c0_98 = arith.constant 0 : index
    %151 = tpu.strided_load %arg19[%c240, %c0_98] {strides = array<i32: 2, 1>} : memref<256x16xf32, #tpu.memory_space<vmem>>, vector<8x16xf32>
    %c241 = arith.constant 241 : index
    %c0_99 = arith.constant 0 : index
    %152 = tpu.strided_load %arg19[%c241, %c0_99] {strides = array<i32: 2, 1>} : memref<256x16xf32, #tpu.memory_space<vmem>>, vector<8x16xf32>
    %153 = arith.maximumf %149, %150 : vector<8x16xf32>
    %154 = arith.maximumf %151, %152 : vector<8x16xf32>
    %155 = arith.maximumf %153, %154 : vector<8x16xf32>
    %c65_100 = arith.constant 65 : index
    %c0_101 = arith.constant 0 : index
    %156 = vector.load %arg15[%c65_100, %c0_101] : memref<82x16xf32, #tpu.memory_space<vmem>>, vector<8x16xf32>
    tpu.vector_store %arg15[%c65_100, %c0_101], %155 {strides = array<i32>} : memref<82x16xf32, #tpu.memory_space<vmem>>, vector<8x16xf32>,
    %157 = tpu.iota {dimensions = array<i32: 0>} : vector<64x1xi32>
    %c8_i32 = arith.constant 8 : i32
    %c0_i32_102 = arith.constant 0 : i32
    %158 = arith.cmpi eq, %c8_i32, %c0_i32_102 : i32
    %c1_i32_103 = arith.constant 1 : i32
    %159 = arith.select %158, %c1_i32_103, %c8_i32 : i32
    %160 = vector.broadcast %159 : i32 to vector<64x1xi32>
    %161 = arith.remsi %157, %160 : vector<64x1xi32>
    %c0_i32_104 = arith.constant 0 : i32
    %162 = vector.broadcast %c0_i32_104 : i32 to vector<64x1xi32>
    %163 = arith.cmpi ne, %161, %162 : vector<64x1xi32>
    %c0_i32_105 = arith.constant 0 : i32
    %164 = vector.broadcast %c0_i32_105 : i32 to vector<64x1xi32>
    %165 = arith.cmpi slt, %161, %164 : vector<64x1xi32>
    %c0_i32_106 = arith.constant 0 : i32
    %166 = arith.cmpi slt, %159, %c0_i32_106 : i32
    %167 = vector.broadcast %166 : i1 to vector<64x1xi1>
    %168 = vector.broadcast %167 : vector<64x1xi1> to vector<64x1xi1>
    %169 = arith.xori %165, %168 : vector<64x1xi1>
    %170 = arith.andi %169, %163 : vector<64x1xi1>
    %171 = vector.broadcast %159 : i32 to vector<64x1xi32>
    %172 = arith.addi %161, %171 : vector<64x1xi32>
    %173 = arith.select %170, %172, %161 : vector<64x1xi1>, vector<64x1xi32>
    %c1_i32_107 = arith.constant 1 : i32
    %174 = vector.broadcast %c1_i32_107 : i32 to vector<64x1xi32>
    %175 = arith.cmpi sge, %173, %174 : vector<64x1xi32>
    %c6_i32 = arith.constant 6 : i32
    %176 = vector.broadcast %c6_i32 : i32 to vector<64x1xi32>
    %177 = arith.cmpi sle, %173, %176 : vector<64x1xi32>
    %c0_108 = arith.constant 0 : index
    %c0_109 = arith.constant 0 : index
    %178 = vector.load %arg15[%c0_108, %c0_109] : memref<82x16xf32, #tpu.memory_space<vmem>>, vector<64x16xf32>
    %cst_110 = arith.constant 0.000000e+00 : f32
    %179 = vector.shape_cast %175 : vector<64x1xi1> to vector<64x1xi1>
    %180 = vector.broadcast %179 : vector<64x1xi1> to vector<64x16xi1>
    %181 = vector.broadcast %cst_110 : f32 to vector<64x16xf32>
    %182 = arith.select %180, %178, %181 : vector<64x16xi1>, vector<64x16xf32>
    %183 = arith.truncf %182 : vector<64x16xf32> to vector<64x16xbf16>
    %c1_111 = arith.constant 1 : index
    %c0_112 = arith.constant 0 : index
    %184 = vector.load %arg15[%c1_111, %c0_112] : memref<82x16xf32, #tpu.memory_space<vmem>>, vector<64x16xf32>
    %185 = arith.truncf %184 : vector<64x16xf32> to vector<64x16xbf16>
    %c2_113 = arith.constant 2 : index
    %c0_114 = arith.constant 0 : index
    %186 = vector.load %arg15[%c2_113, %c0_114] : memref<82x16xf32, #tpu.memory_space<vmem>>, vector<64x16xf32>
    %cst_115 = arith.constant 0.000000e+00 : f32
    %187 = vector.shape_cast %177 : vector<64x1xi1> to vector<64x1xi1>
    %188 = vector.broadcast %187 : vector<64x1xi1> to vector<64x16xi1>
    %189 = vector.broadcast %cst_115 : f32 to vector<64x16xf32>
    %190 = arith.select %188, %186, %189 : vector<64x16xi1>, vector<64x16xf32>
    %191 = arith.truncf %190 : vector<64x16xf32> to vector<64x16xbf16>
    %c8 = arith.constant 8 : index
    %c0_116 = arith.constant 0 : index
    %192 = vector.load %arg15[%c8, %c0_116] : memref<82x16xf32, #tpu.memory_space<vmem>>, vector<64x16xf32>
    %cst_117 = arith.constant 0.000000e+00 : f32
    %193 = vector.shape_cast %175 : vector<64x1xi1> to vector<64x1xi1>
    %194 = vector.broadcast %193 : vector<64x1xi1> to vector<64x16xi1>
    %195 = vector.broadcast %cst_117 : f32 to vector<64x16xf32>
    %196 = arith.select %194, %192, %195 : vector<64x16xi1>, vector<64x16xf32>
    %197 = arith.truncf %196 : vector<64x16xf32> to vector<64x16xbf16>
    %c9_118 = arith.constant 9 : index
    %c0_119 = arith.constant 0 : index
    %198 = vector.load %arg15[%c9_118, %c0_119] : memref<82x16xf32, #tpu.memory_space<vmem>>, vector<64x16xf32>
    %199 = arith.truncf %198 : vector<64x16xf32> to vector<64x16xbf16>
    %c10 = arith.constant 10 : index
    %c0_120 = arith.constant 0 : index
    %200 = vector.load %arg15[%c10, %c0_120] : memref<82x16xf32, #tpu.memory_space<vmem>>, vector<64x16xf32>
    %cst_121 = arith.constant 0.000000e+00 : f32
    %201 = vector.shape_cast %177 : vector<64x1xi1> to vector<64x1xi1>
    %202 = vector.broadcast %201 : vector<64x1xi1> to vector<64x16xi1>
    %203 = vector.broadcast %cst_121 : f32 to vector<64x16xf32>
    %204 = arith.select %202, %200, %203 : vector<64x16xi1>, vector<64x16xf32>
    %205 = arith.truncf %204 : vector<64x16xf32> to vector<64x16xbf16>
    %c16_122 = arith.constant 16 : index
    %c0_123 = arith.constant 0 : index
    %206 = vector.load %arg15[%c16_122, %c0_123] : memref<82x16xf32, #tpu.memory_space<vmem>>, vector<64x16xf32>
    %cst_124 = arith.constant 0.000000e+00 : f32
    %207 = vector.shape_cast %175 : vector<64x1xi1> to vector<64x1xi1>
    %208 = vector.broadcast %207 : vector<64x1xi1> to vector<64x16xi1>
    %209 = vector.broadcast %cst_124 : f32 to vector<64x16xf32>
    %210 = arith.select %208, %206, %209 : vector<64x16xi1>, vector<64x16xf32>
    %211 = arith.truncf %210 : vector<64x16xf32> to vector<64x16xbf16>
    %c17_125 = arith.constant 17 : index
    %c0_126 = arith.constant 0 : index
    %212 = vector.load %arg15[%c17_125, %c0_126] : memref<82x16xf32, #tpu.memory_space<vmem>>, vector<64x16xf32>
    %213 = arith.truncf %212 : vector<64x16xf32> to vector<64x16xbf16>
    %c18_127 = arith.constant 18 : index
    %c0_128 = arith.constant 0 : index
    %214 = vector.load %arg15[%c18_127, %c0_128] : memref<82x16xf32, #tpu.memory_space<vmem>>, vector<64x16xf32>
    %cst_129 = arith.constant 0.000000e+00 : f32
    %215 = vector.shape_cast %177 : vector<64x1xi1> to vector<64x1xi1>
    %216 = vector.broadcast %215 : vector<64x1xi1> to vector<64x16xi1>
    %217 = vector.broadcast %cst_129 : f32 to vector<64x16xf32>
    %218 = arith.select %216, %214, %217 : vector<64x16xi1>, vector<64x16xf32>
    %219 = arith.truncf %218 : vector<64x16xf32> to vector<64x16xbf16>
    %220 = tpu.concatenate %183, %185, %191, %197, %199, %205, %211, %213, %219 in 1 : vector<64x16xbf16>, vector<64x16xbf16>, vector<64x16xbf16>, vector<64x16xbf16>, vector<64x16xbf16>, vector<64x16xbf16>, vector<64x16xbf16>, vector<64x16xbf16>, vector<64x16xbf16> -> vector<64x144xbf16>
    %c0_130 = arith.constant 0 : index
    %c0_131 = arith.constant 0 : index
    %221 = vector.load %arg4[%c0_130, %c0_131] : memref<144x32xbf16, #tpu.memory_space<vmem>>, vector<144x32xbf16>
    %cst_132 = arith.constant dense<0.000000e+00> : vector<64x32xf32>
    %222 = tpu.matmul %220, %221, %cst_132 {dimension_numbers = #tpu.dot_dimension_numbers<[1], [0], [0], [1], [0, 0, 1, 1], [], []>} : vector<64x144xbf16>, vector<144x32xbf16>, vector<64x32xf32> -> vector<64x32xf32>
    %c0_133 = arith.constant 0 : index
    %c0_134 = arith.constant 0 : index
    %223 = vector.load %arg5[%c0_133, %c0_134] : memref<1x32xf32, #tpu.memory_space<vmem>>, vector<1x32xf32>
    %224 = vector.broadcast %223 : vector<1x32xf32> to vector<64x32xf32>
    %225 = arith.addf %222, %224 : vector<64x32xf32>
    %cst_135 = arith.constant 0.000000e+00 : f32
    %226 = vector.broadcast %cst_135 : f32 to vector<64x32xf32>
    %227 = arith.maximumf %225, %226 : vector<64x32xf32>
    %c0_136 = arith.constant 0 : index
    %c0_137 = arith.constant 0 : index
    %228 = vector.load %arg20[%c0_136, %c0_137] : memref<64x32xf32, #tpu.memory_space<vmem>>, vector<64x32xf32>
    tpu.vector_store %arg20[%c0_136, %c0_137], %227 {strides = array<i32>} : memref<64x32xf32, #tpu.memory_space<vmem>>, vector<64x32xf32>,
    %c0_138 = arith.constant 0 : index
    %c0_139 = arith.constant 0 : index
    %229 = tpu.strided_load %arg20[%c0_138, %c0_139] {strides = array<i32: 2, 1>} : memref<64x32xf32, #tpu.memory_space<vmem>>, vector<4x32xf32>
    %c1_140 = arith.constant 1 : index
    %c0_141 = arith.constant 0 : index
    %230 = tpu.strided_load %arg20[%c1_140, %c0_141] {strides = array<i32: 2, 1>} : memref<64x32xf32, #tpu.memory_space<vmem>>, vector<4x32xf32>
    %c8_142 = arith.constant 8 : index
    %c0_143 = arith.constant 0 : index
    %231 = tpu.strided_load %arg20[%c8_142, %c0_143] {strides = array<i32: 2, 1>} : memref<64x32xf32, #tpu.memory_space<vmem>>, vector<4x32xf32>
    %c9_144 = arith.constant 9 : index
    %c0_145 = arith.constant 0 : index
    %232 = tpu.strided_load %arg20[%c9_144, %c0_145] {strides = array<i32: 2, 1>} : memref<64x32xf32, #tpu.memory_space<vmem>>, vector<4x32xf32>
    %233 = arith.maximumf %229, %230 : vector<4x32xf32>
    %234 = arith.maximumf %231, %232 : vector<4x32xf32>
    %235 = arith.maximumf %233, %234 : vector<4x32xf32>
    %c5 = arith.constant 5 : index
    %c0_146 = arith.constant 0 : index
    %236 = vector.load %arg16[%c5, %c0_146] : memref<26x32xf32, #tpu.memory_space<vmem>>, vector<4x32xf32>
    tpu.vector_store %arg16[%c5, %c0_146], %235 {strides = array<i32>} : memref<26x32xf32, #tpu.memory_space<vmem>>, vector<4x32xf32>,
    %c16_147 = arith.constant 16 : index
    %c0_148 = arith.constant 0 : index
    %237 = tpu.strided_load %arg20[%c16_147, %c0_148] {strides = array<i32: 2, 1>} : memref<64x32xf32, #tpu.memory_space<vmem>>, vector<4x32xf32>
    %c17_149 = arith.constant 17 : index
    %c0_150 = arith.constant 0 : index
    %238 = tpu.strided_load %arg20[%c17_149, %c0_150] {strides = array<i32: 2, 1>} : memref<64x32xf32, #tpu.memory_space<vmem>>, vector<4x32xf32>
    %c24 = arith.constant 24 : index
    %c0_151 = arith.constant 0 : index
    %239 = tpu.strided_load %arg20[%c24, %c0_151] {strides = array<i32: 2, 1>} : memref<64x32xf32, #tpu.memory_space<vmem>>, vector<4x32xf32>
    %c25_152 = arith.constant 25 : index
    %c0_153 = arith.constant 0 : index
    %240 = tpu.strided_load %arg20[%c25_152, %c0_153] {strides = array<i32: 2, 1>} : memref<64x32xf32, #tpu.memory_space<vmem>>, vector<4x32xf32>
    %241 = arith.maximumf %237, %238 : vector<4x32xf32>
    %242 = arith.maximumf %239, %240 : vector<4x32xf32>
    %243 = arith.maximumf %241, %242 : vector<4x32xf32>
    %c9_154 = arith.constant 9 : index
    %c0_155 = arith.constant 0 : index
    %244 = vector.load %arg16[%c9_154, %c0_155] : memref<26x32xf32, #tpu.memory_space<vmem>>, vector<4x32xf32>
    tpu.vector_store %arg16[%c9_154, %c0_155], %243 {strides = array<i32>} : memref<26x32xf32, #tpu.memory_space<vmem>>, vector<4x32xf32>,
    %c32_156 = arith.constant 32 : index
    %c0_157 = arith.constant 0 : index
    %245 = tpu.strided_load %arg20[%c32_156, %c0_157] {strides = array<i32: 2, 1>} : memref<64x32xf32, #tpu.memory_space<vmem>>, vector<4x32xf32>
    %c33_158 = arith.constant 33 : index
    %c0_159 = arith.constant 0 : index
    %246 = tpu.strided_load %arg20[%c33_158, %c0_159] {strides = array<i32: 2, 1>} : memref<64x32xf32, #tpu.memory_space<vmem>>, vector<4x32xf32>
    %c40 = arith.constant 40 : index
    %c0_160 = arith.constant 0 : index
    %247 = tpu.strided_load %arg20[%c40, %c0_160] {strides = array<i32: 2, 1>} : memref<64x32xf32, #tpu.memory_space<vmem>>, vector<4x32xf32>
    %c41_161 = arith.constant 41 : index
    %c0_162 = arith.constant 0 : index
    %248 = tpu.strided_load %arg20[%c41_161, %c0_162] {strides = array<i32: 2, 1>} : memref<64x32xf32, #tpu.memory_space<vmem>>, vector<4x32xf32>
    %249 = arith.maximumf %245, %246 : vector<4x32xf32>
    %250 = arith.maximumf %247, %248 : vector<4x32xf32>
    %251 = arith.maximumf %249, %250 : vector<4x32xf32>
    %c13 = arith.constant 13 : index
    %c0_163 = arith.constant 0 : index
    %252 = vector.load %arg16[%c13, %c0_163] : memref<26x32xf32, #tpu.memory_space<vmem>>, vector<4x32xf32>
    tpu.vector_store %arg16[%c13, %c0_163], %251 {strides = array<i32>} : memref<26x32xf32, #tpu.memory_space<vmem>>, vector<4x32xf32>,
    %c48_164 = arith.constant 48 : index
    %c0_165 = arith.constant 0 : index
    %253 = tpu.strided_load %arg20[%c48_164, %c0_165] {strides = array<i32: 2, 1>} : memref<64x32xf32, #tpu.memory_space<vmem>>, vector<4x32xf32>
    %c49_166 = arith.constant 49 : index
    %c0_167 = arith.constant 0 : index
    %254 = tpu.strided_load %arg20[%c49_166, %c0_167] {strides = array<i32: 2, 1>} : memref<64x32xf32, #tpu.memory_space<vmem>>, vector<4x32xf32>
    %c56 = arith.constant 56 : index
    %c0_168 = arith.constant 0 : index
    %255 = tpu.strided_load %arg20[%c56, %c0_168] {strides = array<i32: 2, 1>} : memref<64x32xf32, #tpu.memory_space<vmem>>, vector<4x32xf32>
    %c57_169 = arith.constant 57 : index
    %c0_170 = arith.constant 0 : index
    %256 = tpu.strided_load %arg20[%c57_169, %c0_170] {strides = array<i32: 2, 1>} : memref<64x32xf32, #tpu.memory_space<vmem>>, vector<4x32xf32>
    %257 = arith.maximumf %253, %254 : vector<4x32xf32>
    %258 = arith.maximumf %255, %256 : vector<4x32xf32>
    %259 = arith.maximumf %257, %258 : vector<4x32xf32>
    %c17_171 = arith.constant 17 : index
    %c0_172 = arith.constant 0 : index
    %260 = vector.load %arg16[%c17_171, %c0_172] : memref<26x32xf32, #tpu.memory_space<vmem>>, vector<4x32xf32>
    tpu.vector_store %arg16[%c17_171, %c0_172], %259 {strides = array<i32>} : memref<26x32xf32, #tpu.memory_space<vmem>>, vector<4x32xf32>,
    %261 = tpu.iota {dimensions = array<i32: 0>} : vector<16x1xi32>
    %c4_i32 = arith.constant 4 : i32
    %c0_i32_173 = arith.constant 0 : i32
    %262 = arith.cmpi eq, %c4_i32, %c0_i32_173 : i32
    %c1_i32_174 = arith.constant 1 : i32
    %263 = arith.select %262, %c1_i32_174, %c4_i32 : i32
    %264 = vector.broadcast %263 : i32 to vector<16x1xi32>
    %265 = arith.remsi %261, %264 : vector<16x1xi32>
    %c0_i32_175 = arith.constant 0 : i32
    %266 = vector.broadcast %c0_i32_175 : i32 to vector<16x1xi32>
    %267 = arith.cmpi ne, %265, %266 : vector<16x1xi32>
    %c0_i32_176 = arith.constant 0 : i32
    %268 = vector.broadcast %c0_i32_176 : i32 to vector<16x1xi32>
    %269 = arith.cmpi slt, %265, %268 : vector<16x1xi32>
    %c0_i32_177 = arith.constant 0 : i32
    %270 = arith.cmpi slt, %263, %c0_i32_177 : i32
    %271 = vector.broadcast %270 : i1 to vector<16x1xi1>
    %272 = vector.broadcast %271 : vector<16x1xi1> to vector<16x1xi1>
    %273 = arith.xori %269, %272 : vector<16x1xi1>
    %274 = arith.andi %273, %267 : vector<16x1xi1>
    %275 = vector.broadcast %263 : i32 to vector<16x1xi32>
    %276 = arith.addi %265, %275 : vector<16x1xi32>
    %277 = arith.select %274, %276, %265 : vector<16x1xi1>, vector<16x1xi32>
    %c1_i32_178 = arith.constant 1 : i32
    %278 = vector.broadcast %c1_i32_178 : i32 to vector<16x1xi32>
    %279 = arith.cmpi sge, %277, %278 : vector<16x1xi32>
    %c2_i32 = arith.constant 2 : i32
    %280 = vector.broadcast %c2_i32 : i32 to vector<16x1xi32>
    %281 = arith.cmpi sle, %277, %280 : vector<16x1xi32>
    %c0_179 = arith.constant 0 : index
    %c0_180 = arith.constant 0 : index
    %282 = vector.load %arg16[%c0_179, %c0_180] : memref<26x32xf32, #tpu.memory_space<vmem>>, vector<16x32xf32>
    %cst_181 = arith.constant 0.000000e+00 : f32
    %283 = vector.shape_cast %279 : vector<16x1xi1> to vector<16x1xi1>
    %284 = vector.broadcast %283 : vector<16x1xi1> to vector<16x32xi1>
    %285 = vector.broadcast %cst_181 : f32 to vector<16x32xf32>
    %286 = arith.select %284, %282, %285 : vector<16x32xi1>, vector<16x32xf32>
    %287 = arith.truncf %286 : vector<16x32xf32> to vector<16x32xbf16>
    %c1_182 = arith.constant 1 : index
    %c0_183 = arith.constant 0 : index
    %288 = vector.load %arg16[%c1_182, %c0_183] : memref<26x32xf32, #tpu.memory_space<vmem>>, vector<16x32xf32>
    %289 = arith.truncf %288 : vector<16x32xf32> to vector<16x32xbf16>
    %c2_184 = arith.constant 2 : index
    %c0_185 = arith.constant 0 : index
    %290 = vector.load %arg16[%c2_184, %c0_185] : memref<26x32xf32, #tpu.memory_space<vmem>>, vector<16x32xf32>
    %cst_186 = arith.constant 0.000000e+00 : f32
    %291 = vector.shape_cast %281 : vector<16x1xi1> to vector<16x1xi1>
    %292 = vector.broadcast %291 : vector<16x1xi1> to vector<16x32xi1>
    %293 = vector.broadcast %cst_186 : f32 to vector<16x32xf32>
    %294 = arith.select %292, %290, %293 : vector<16x32xi1>, vector<16x32xf32>
    %295 = arith.truncf %294 : vector<16x32xf32> to vector<16x32xbf16>
    %c4 = arith.constant 4 : index
    %c0_187 = arith.constant 0 : index
    %296 = vector.load %arg16[%c4, %c0_187] : memref<26x32xf32, #tpu.memory_space<vmem>>, vector<16x32xf32>
    %cst_188 = arith.constant 0.000000e+00 : f32
    %297 = vector.shape_cast %279 : vector<16x1xi1> to vector<16x1xi1>
    %298 = vector.broadcast %297 : vector<16x1xi1> to vector<16x32xi1>
    %299 = vector.broadcast %cst_188 : f32 to vector<16x32xf32>
    %300 = arith.select %298, %296, %299 : vector<16x32xi1>, vector<16x32xf32>
    %301 = arith.truncf %300 : vector<16x32xf32> to vector<16x32xbf16>
    %c5_189 = arith.constant 5 : index
    %c0_190 = arith.constant 0 : index
    %302 = vector.load %arg16[%c5_189, %c0_190] : memref<26x32xf32, #tpu.memory_space<vmem>>, vector<16x32xf32>
    %303 = arith.truncf %302 : vector<16x32xf32> to vector<16x32xbf16>
    %c6 = arith.constant 6 : index
    %c0_191 = arith.constant 0 : index
    %304 = vector.load %arg16[%c6, %c0_191] : memref<26x32xf32, #tpu.memory_space<vmem>>, vector<16x32xf32>
    %cst_192 = arith.constant 0.000000e+00 : f32
    %305 = vector.shape_cast %281 : vector<16x1xi1> to vector<16x1xi1>
    %306 = vector.broadcast %305 : vector<16x1xi1> to vector<16x32xi1>
    %307 = vector.broadcast %cst_192 : f32 to vector<16x32xf32>
    %308 = arith.select %306, %304, %307 : vector<16x32xi1>, vector<16x32xf32>
    %309 = arith.truncf %308 : vector<16x32xf32> to vector<16x32xbf16>
    %c8_193 = arith.constant 8 : index
    %c0_194 = arith.constant 0 : index
    %310 = vector.load %arg16[%c8_193, %c0_194] : memref<26x32xf32, #tpu.memory_space<vmem>>, vector<16x32xf32>
    %cst_195 = arith.constant 0.000000e+00 : f32
    %311 = vector.shape_cast %279 : vector<16x1xi1> to vector<16x1xi1>
    %312 = vector.broadcast %311 : vector<16x1xi1> to vector<16x32xi1>
    %313 = vector.broadcast %cst_195 : f32 to vector<16x32xf32>
    %314 = arith.select %312, %310, %313 : vector<16x32xi1>, vector<16x32xf32>
    %315 = arith.truncf %314 : vector<16x32xf32> to vector<16x32xbf16>
    %c9_196 = arith.constant 9 : index
    %c0_197 = arith.constant 0 : index
    %316 = vector.load %arg16[%c9_196, %c0_197] : memref<26x32xf32, #tpu.memory_space<vmem>>, vector<16x32xf32>
    %317 = arith.truncf %316 : vector<16x32xf32> to vector<16x32xbf16>
    %c10_198 = arith.constant 10 : index
    %c0_199 = arith.constant 0 : index
    %318 = vector.load %arg16[%c10_198, %c0_199] : memref<26x32xf32, #tpu.memory_space<vmem>>, vector<16x32xf32>
    %cst_200 = arith.constant 0.000000e+00 : f32
    %319 = vector.shape_cast %281 : vector<16x1xi1> to vector<16x1xi1>
    %320 = vector.broadcast %319 : vector<16x1xi1> to vector<16x32xi1>
    %321 = vector.broadcast %cst_200 : f32 to vector<16x32xf32>
    %322 = arith.select %320, %318, %321 : vector<16x32xi1>, vector<16x32xf32>
    %323 = arith.truncf %322 : vector<16x32xf32> to vector<16x32xbf16>
    %324 = tpu.concatenate %287, %289, %295, %301, %303, %309, %315, %317, %323 in 1 : vector<16x32xbf16>, vector<16x32xbf16>, vector<16x32xbf16>, vector<16x32xbf16>, vector<16x32xbf16>, vector<16x32xbf16>, vector<16x32xbf16>, vector<16x32xbf16>, vector<16x32xbf16> -> vector<16x288xbf16>
    %c0_201 = arith.constant 0 : index
    %c0_202 = arith.constant 0 : index
    %325 = vector.load %arg6[%c0_201, %c0_202] : memref<288x64xbf16, #tpu.memory_space<vmem>>, vector<288x64xbf16>
    %cst_203 = arith.constant dense<0.000000e+00> : vector<16x64xf32>
    %326 = tpu.matmul %324, %325, %cst_203 {dimension_numbers = #tpu.dot_dimension_numbers<[1], [0], [0], [1], [0, 0, 1, 1], [], []>} : vector<16x288xbf16>, vector<288x64xbf16>, vector<16x64xf32> -> vector<16x64xf32>
    %c0_204 = arith.constant 0 : index
    %c0_205 = arith.constant 0 : index
    %327 = vector.load %arg7[%c0_204, %c0_205] : memref<1x64xf32, #tpu.memory_space<vmem>>, vector<1x64xf32>
    %328 = vector.broadcast %327 : vector<1x64xf32> to vector<16x64xf32>
    %329 = arith.addf %326, %328 : vector<16x64xf32>
    %cst_206 = arith.constant 0.000000e+00 : f32
    %330 = vector.broadcast %cst_206 : f32 to vector<16x64xf32>
    %331 = arith.maximumf %329, %330 : vector<16x64xf32>
    %c5_207 = arith.constant 5 : index
    %c0_208 = arith.constant 0 : index
    %332 = vector.load %arg17[%c5_207, %c0_208] : memref<26x64xf32, #tpu.memory_space<vmem>>, vector<16x64xf32>
    tpu.vector_store %arg17[%c5_207, %c0_208], %331 {strides = array<i32>} : memref<26x64xf32, #tpu.memory_space<vmem>>, vector<16x64xf32>,
    %333 = tpu.iota {dimensions = array<i32: 0>} : vector<16x1xi32>
    %c4_i32_209 = arith.constant 4 : i32
    %c0_i32_210 = arith.constant 0 : i32
    %334 = arith.cmpi eq, %c4_i32_209, %c0_i32_210 : i32
    %c1_i32_211 = arith.constant 1 : i32
    %335 = arith.select %334, %c1_i32_211, %c4_i32_209 : i32
    %336 = vector.broadcast %335 : i32 to vector<16x1xi32>
    %337 = arith.remsi %333, %336 : vector<16x1xi32>
    %c0_i32_212 = arith.constant 0 : i32
    %338 = vector.broadcast %c0_i32_212 : i32 to vector<16x1xi32>
    %339 = arith.cmpi ne, %337, %338 : vector<16x1xi32>
    %c0_i32_213 = arith.constant 0 : i32
    %340 = vector.broadcast %c0_i32_213 : i32 to vector<16x1xi32>
    %341 = arith.cmpi slt, %337, %340 : vector<16x1xi32>
    %c0_i32_214 = arith.constant 0 : i32
    %342 = arith.cmpi slt, %335, %c0_i32_214 : i32
    %343 = vector.broadcast %342 : i1 to vector<16x1xi1>
    %344 = vector.broadcast %343 : vector<16x1xi1> to vector<16x1xi1>
    %345 = arith.xori %341, %344 : vector<16x1xi1>
    %346 = arith.andi %345, %339 : vector<16x1xi1>
    %347 = vector.broadcast %335 : i32 to vector<16x1xi32>
    %348 = arith.addi %337, %347 : vector<16x1xi32>
    %349 = arith.select %346, %348, %337 : vector<16x1xi1>, vector<16x1xi32>
    %c1_i32_215 = arith.constant 1 : i32
    %350 = vector.broadcast %c1_i32_215 : i32 to vector<16x1xi32>
    %351 = arith.cmpi sge, %349, %350 : vector<16x1xi32>
    %c2_i32_216 = arith.constant 2 : i32
    %352 = vector.broadcast %c2_i32_216 : i32 to vector<16x1xi32>
    %353 = arith.cmpi sle, %349, %352 : vector<16x1xi32>
    %c0_217 = arith.constant 0 : index
    %c0_218 = arith.constant 0 : index
    %354 = vector.load %arg17[%c0_217, %c0_218] : memref<26x64xf32, #tpu.memory_space<vmem>>, vector<16x64xf32>
    %cst_219 = arith.constant 0.000000e+00 : f32
    %355 = vector.shape_cast %351 : vector<16x1xi1> to vector<16x1xi1>
    %356 = vector.broadcast %355 : vector<16x1xi1> to vector<16x64xi1>
    %357 = vector.broadcast %cst_219 : f32 to vector<16x64xf32>
    %358 = arith.select %356, %354, %357 : vector<16x64xi1>, vector<16x64xf32>
    %359 = arith.truncf %358 : vector<16x64xf32> to vector<16x64xbf16>
    %c1_220 = arith.constant 1 : index
    %c0_221 = arith.constant 0 : index
    %360 = vector.load %arg17[%c1_220, %c0_221] : memref<26x64xf32, #tpu.memory_space<vmem>>, vector<16x64xf32>
    %361 = arith.truncf %360 : vector<16x64xf32> to vector<16x64xbf16>
    %c2_222 = arith.constant 2 : index
    %c0_223 = arith.constant 0 : index
    %362 = vector.load %arg17[%c2_222, %c0_223] : memref<26x64xf32, #tpu.memory_space<vmem>>, vector<16x64xf32>
    %cst_224 = arith.constant 0.000000e+00 : f32
    %363 = vector.shape_cast %353 : vector<16x1xi1> to vector<16x1xi1>
    %364 = vector.broadcast %363 : vector<16x1xi1> to vector<16x64xi1>
    %365 = vector.broadcast %cst_224 : f32 to vector<16x64xf32>
    %366 = arith.select %364, %362, %365 : vector<16x64xi1>, vector<16x64xf32>
    %367 = arith.truncf %366 : vector<16x64xf32> to vector<16x64xbf16>
    %c4_225 = arith.constant 4 : index
    %c0_226 = arith.constant 0 : index
    %368 = vector.load %arg17[%c4_225, %c0_226] : memref<26x64xf32, #tpu.memory_space<vmem>>, vector<16x64xf32>
    %cst_227 = arith.constant 0.000000e+00 : f32
    %369 = vector.shape_cast %351 : vector<16x1xi1> to vector<16x1xi1>
    %370 = vector.broadcast %369 : vector<16x1xi1> to vector<16x64xi1>
    %371 = vector.broadcast %cst_227 : f32 to vector<16x64xf32>
    %372 = arith.select %370, %368, %371 : vector<16x64xi1>, vector<16x64xf32>
    %373 = arith.truncf %372 : vector<16x64xf32> to vector<16x64xbf16>
    %c5_228 = arith.constant 5 : index
    %c0_229 = arith.constant 0 : index
    %374 = vector.load %arg17[%c5_228, %c0_229] : memref<26x64xf32, #tpu.memory_space<vmem>>, vector<16x64xf32>
    %375 = arith.truncf %374 : vector<16x64xf32> to vector<16x64xbf16>
    %c6_230 = arith.constant 6 : index
    %c0_231 = arith.constant 0 : index
    %376 = vector.load %arg17[%c6_230, %c0_231] : memref<26x64xf32, #tpu.memory_space<vmem>>, vector<16x64xf32>
    %cst_232 = arith.constant 0.000000e+00 : f32
    %377 = vector.shape_cast %353 : vector<16x1xi1> to vector<16x1xi1>
    %378 = vector.broadcast %377 : vector<16x1xi1> to vector<16x64xi1>
    %379 = vector.broadcast %cst_232 : f32 to vector<16x64xf32>
    %380 = arith.select %378, %376, %379 : vector<16x64xi1>, vector<16x64xf32>
    %381 = arith.truncf %380 : vector<16x64xf32> to vector<16x64xbf16>
    %c8_233 = arith.constant 8 : index
    %c0_234 = arith.constant 0 : index
    %382 = vector.load %arg17[%c8_233, %c0_234] : memref<26x64xf32, #tpu.memory_space<vmem>>, vector<16x64xf32>
    %cst_235 = arith.constant 0.000000e+00 : f32
    %383 = vector.shape_cast %351 : vector<16x1xi1> to vector<16x1xi1>
    %384 = vector.broadcast %383 : vector<16x1xi1> to vector<16x64xi1>
    %385 = vector.broadcast %cst_235 : f32 to vector<16x64xf32>
    %386 = arith.select %384, %382, %385 : vector<16x64xi1>, vector<16x64xf32>
    %387 = arith.truncf %386 : vector<16x64xf32> to vector<16x64xbf16>
    %c9_236 = arith.constant 9 : index
    %c0_237 = arith.constant 0 : index
    %388 = vector.load %arg17[%c9_236, %c0_237] : memref<26x64xf32, #tpu.memory_space<vmem>>, vector<16x64xf32>
    %389 = arith.truncf %388 : vector<16x64xf32> to vector<16x64xbf16>
    %c10_238 = arith.constant 10 : index
    %c0_239 = arith.constant 0 : index
    %390 = vector.load %arg17[%c10_238, %c0_239] : memref<26x64xf32, #tpu.memory_space<vmem>>, vector<16x64xf32>
    %cst_240 = arith.constant 0.000000e+00 : f32
    %391 = vector.shape_cast %353 : vector<16x1xi1> to vector<16x1xi1>
    %392 = vector.broadcast %391 : vector<16x1xi1> to vector<16x64xi1>
    %393 = vector.broadcast %cst_240 : f32 to vector<16x64xf32>
    %394 = arith.select %392, %390, %393 : vector<16x64xi1>, vector<16x64xf32>
    %395 = arith.truncf %394 : vector<16x64xf32> to vector<16x64xbf16>
    %396 = tpu.concatenate %359, %361, %367, %373, %375, %381, %387, %389, %395 in 1 : vector<16x64xbf16>, vector<16x64xbf16>, vector<16x64xbf16>, vector<16x64xbf16>, vector<16x64xbf16>, vector<16x64xbf16>, vector<16x64xbf16>, vector<16x64xbf16>, vector<16x64xbf16> -> vector<16x576xbf16>
    %c0_241 = arith.constant 0 : index
    %c0_242 = arith.constant 0 : index
    %397 = vector.load %arg8[%c0_241, %c0_242] : memref<576x128xbf16, #tpu.memory_space<vmem>>, vector<576x128xbf16>
    %cst_243 = arith.constant dense<0.000000e+00> : vector<16x128xf32>
    %398 = tpu.matmul %396, %397, %cst_243 {dimension_numbers = #tpu.dot_dimension_numbers<[1], [0], [0], [1], [0, 0, 1, 1], [], []>} : vector<16x576xbf16>, vector<576x128xbf16>, vector<16x128xf32> -> vector<16x128xf32>
    %c0_244 = arith.constant 0 : index
    %c0_245 = arith.constant 0 : index
    %399 = vector.load %arg9[%c0_244, %c0_245] : memref<1x128xf32, #tpu.memory_space<vmem>>, vector<1x128xf32>
    %400 = vector.broadcast %399 : vector<1x128xf32> to vector<16x128xf32>
    %401 = arith.addf %398, %400 : vector<16x128xf32>
    %cst_246 = arith.constant 0.000000e+00 : f32
    %402 = vector.broadcast %cst_246 : f32 to vector<16x128xf32>
    %403 = arith.maximumf %401, %402 : vector<16x128xf32>
    %c0_247 = arith.constant 0 : index
    %c0_248 = arith.constant 0 : index
    %404 = vector.load %arg21[%c0_247, %c0_248] : memref<16x128xf32, #tpu.memory_space<vmem>>, vector<16x128xf32>
    tpu.vector_store %arg21[%c0_247, %c0_248], %403 {strides = array<i32>} : memref<16x128xf32, #tpu.memory_space<vmem>>, vector<16x128xf32>,
    %c0_249 = arith.constant 0 : index
    %c0_250 = arith.constant 0 : index
    %405 = tpu.strided_load %arg21[%c0_249, %c0_250] {strides = array<i32: 2, 1>} : memref<16x128xf32, #tpu.memory_space<vmem>>, vector<2x128xf32>
    %c1_251 = arith.constant 1 : index
    %c0_252 = arith.constant 0 : index
    %406 = tpu.strided_load %arg21[%c1_251, %c0_252] {strides = array<i32: 2, 1>} : memref<16x128xf32, #tpu.memory_space<vmem>>, vector<2x128xf32>
    %c4_253 = arith.constant 4 : index
    %c0_254 = arith.constant 0 : index
    %407 = tpu.strided_load %arg21[%c4_253, %c0_254] {strides = array<i32: 2, 1>} : memref<16x128xf32, #tpu.memory_space<vmem>>, vector<2x128xf32>
    %c5_255 = arith.constant 5 : index
    %c0_256 = arith.constant 0 : index
    %408 = tpu.strided_load %arg21[%c5_255, %c0_256] {strides = array<i32: 2, 1>} : memref<16x128xf32, #tpu.memory_space<vmem>>, vector<2x128xf32>
    %409 = arith.maximumf %405, %406 : vector<2x128xf32>
    %410 = arith.maximumf %407, %408 : vector<2x128xf32>
    %411 = arith.maximumf %409, %410 : vector<2x128xf32>
    %c3 = arith.constant 3 : index
    %c0_257 = arith.constant 0 : index
    %412 = vector.load %arg18[%c3, %c0_257] : memref<10x128xf32, #tpu.memory_space<vmem>>, vector<2x128xf32>
    tpu.vector_store %arg18[%c3, %c0_257], %411 {strides = array<i32>} : memref<10x128xf32, #tpu.memory_space<vmem>>, vector<2x128xf32>,
    %c8_258 = arith.constant 8 : index
    %c0_259 = arith.constant 0 : index
    %413 = tpu.strided_load %arg21[%c8_258, %c0_259] {strides = array<i32: 2, 1>} : memref<16x128xf32, #tpu.memory_space<vmem>>, vector<2x128xf32>
    %c9_260 = arith.constant 9 : index
    %c0_261 = arith.constant 0 : index
    %414 = tpu.strided_load %arg21[%c9_260, %c0_261] {strides = array<i32: 2, 1>} : memref<16x128xf32, #tpu.memory_space<vmem>>, vector<2x128xf32>
    %c12 = arith.constant 12 : index
    %c0_262 = arith.constant 0 : index
    %415 = tpu.strided_load %arg21[%c12, %c0_262] {strides = array<i32: 2, 1>} : memref<16x128xf32, #tpu.memory_space<vmem>>, vector<2x128xf32>
    %c13_263 = arith.constant 13 : index
    %c0_264 = arith.constant 0 : index
    %416 = tpu.strided_load %arg21[%c13_263, %c0_264] {strides = array<i32: 2, 1>} : memref<16x128xf32, #tpu.memory_space<vmem>>, vector<2x128xf32>
    %417 = arith.maximumf %413, %414 : vector<2x128xf32>
    %418 = arith.maximumf %415, %416 : vector<2x128xf32>
    %419 = arith.maximumf %417, %418 : vector<2x128xf32>
    %c5_265 = arith.constant 5 : index
    %c0_266 = arith.constant 0 : index
    %420 = vector.load %arg18[%c5_265, %c0_266] : memref<10x128xf32, #tpu.memory_space<vmem>>, vector<2x128xf32>
    tpu.vector_store %arg18[%c5_265, %c0_266], %419 {strides = array<i32>} : memref<10x128xf32, #tpu.memory_space<vmem>>, vector<2x128xf32>,
    %421 = tpu.iota {dimensions = array<i32: 0>} : vector<4x1xi32>
    %c2_i32_267 = arith.constant 2 : i32
    %c0_i32_268 = arith.constant 0 : i32
    %422 = arith.cmpi eq, %c2_i32_267, %c0_i32_268 : i32
    %c1_i32_269 = arith.constant 1 : i32
    %423 = arith.select %422, %c1_i32_269, %c2_i32_267 : i32
    %424 = vector.broadcast %423 : i32 to vector<4x1xi32>
    %425 = arith.remsi %421, %424 : vector<4x1xi32>
    %c0_i32_270 = arith.constant 0 : i32
    %426 = vector.broadcast %c0_i32_270 : i32 to vector<4x1xi32>
    %427 = arith.cmpi ne, %425, %426 : vector<4x1xi32>
    %c0_i32_271 = arith.constant 0 : i32
    %428 = vector.broadcast %c0_i32_271 : i32 to vector<4x1xi32>
    %429 = arith.cmpi slt, %425, %428 : vector<4x1xi32>
    %c0_i32_272 = arith.constant 0 : i32
    %430 = arith.cmpi slt, %423, %c0_i32_272 : i32
    %431 = vector.broadcast %430 : i1 to vector<4x1xi1>
    %432 = vector.broadcast %431 : vector<4x1xi1> to vector<4x1xi1>
    %433 = arith.xori %429, %432 : vector<4x1xi1>
    %434 = arith.andi %433, %427 : vector<4x1xi1>
    %435 = vector.broadcast %423 : i32 to vector<4x1xi32>
    %436 = arith.addi %425, %435 : vector<4x1xi32>
    %437 = arith.select %434, %436, %425 : vector<4x1xi1>, vector<4x1xi32>
    %c1_i32_273 = arith.constant 1 : i32
    %438 = vector.broadcast %c1_i32_273 : i32 to vector<4x1xi32>
    %439 = arith.cmpi sge, %437, %438 : vector<4x1xi32>
    %c0_i32_274 = arith.constant 0 : i32
    %440 = vector.broadcast %c0_i32_274 : i32 to vector<4x1xi32>
    %441 = arith.cmpi sle, %437, %440 : vector<4x1xi32>
    %c0_275 = arith.constant 0 : index
    %c0_276 = arith.constant 0 : index
    %442 = vector.load %arg18[%c0_275, %c0_276] : memref<10x128xf32, #tpu.memory_space<vmem>>, vector<4x128xf32>
    %cst_277 = arith.constant 0.000000e+00 : f32
    %443 = vector.shape_cast %439 : vector<4x1xi1> to vector<4x1xi1>
    %444 = vector.broadcast %443 : vector<4x1xi1> to vector<4x128xi1>
    %445 = vector.broadcast %cst_277 : f32 to vector<4x128xf32>
    %446 = arith.select %444, %442, %445 : vector<4x128xi1>, vector<4x128xf32>
    %447 = arith.truncf %446 : vector<4x128xf32> to vector<4x128xbf16>
    %c1_278 = arith.constant 1 : index
    %c0_279 = arith.constant 0 : index
    %448 = vector.load %arg18[%c1_278, %c0_279] : memref<10x128xf32, #tpu.memory_space<vmem>>, vector<4x128xf32>
    %449 = arith.truncf %448 : vector<4x128xf32> to vector<4x128xbf16>
    %c2_280 = arith.constant 2 : index
    %c0_281 = arith.constant 0 : index
    %450 = vector.load %arg18[%c2_280, %c0_281] : memref<10x128xf32, #tpu.memory_space<vmem>>, vector<4x128xf32>
    %cst_282 = arith.constant 0.000000e+00 : f32
    %451 = vector.shape_cast %441 : vector<4x1xi1> to vector<4x1xi1>
    %452 = vector.broadcast %451 : vector<4x1xi1> to vector<4x128xi1>
    %453 = vector.broadcast %cst_282 : f32 to vector<4x128xf32>
    %454 = arith.select %452, %450, %453 : vector<4x128xi1>, vector<4x128xf32>
    %455 = arith.truncf %454 : vector<4x128xf32> to vector<4x128xbf16>
    %c2_283 = arith.constant 2 : index
    %c0_284 = arith.constant 0 : index
    %456 = vector.load %arg18[%c2_283, %c0_284] : memref<10x128xf32, #tpu.memory_space<vmem>>, vector<4x128xf32>
    %cst_285 = arith.constant 0.000000e+00 : f32
    %457 = vector.shape_cast %439 : vector<4x1xi1> to vector<4x1xi1>
    %458 = vector.broadcast %457 : vector<4x1xi1> to vector<4x128xi1>
    %459 = vector.broadcast %cst_285 : f32 to vector<4x128xf32>
    %460 = arith.select %458, %456, %459 : vector<4x128xi1>, vector<4x128xf32>
    %461 = arith.truncf %460 : vector<4x128xf32> to vector<4x128xbf16>
    %c3_286 = arith.constant 3 : index
    %c0_287 = arith.constant 0 : index
    %462 = vector.load %arg18[%c3_286, %c0_287] : memref<10x128xf32, #tpu.memory_space<vmem>>, vector<4x128xf32>
    %463 = arith.truncf %462 : vector<4x128xf32> to vector<4x128xbf16>
    %c4_288 = arith.constant 4 : index
    %c0_289 = arith.constant 0 : index
    %464 = vector.load %arg18[%c4_288, %c0_289] : memref<10x128xf32, #tpu.memory_space<vmem>>, vector<4x128xf32>
    %cst_290 = arith.constant 0.000000e+00 : f32
    %465 = vector.shape_cast %441 : vector<4x1xi1> to vector<4x1xi1>
    %466 = vector.broadcast %465 : vector<4x1xi1> to vector<4x128xi1>
    %467 = vector.broadcast %cst_290 : f32 to vector<4x128xf32>
    %468 = arith.select %466, %464, %467 : vector<4x128xi1>, vector<4x128xf32>
    %469 = arith.truncf %468 : vector<4x128xf32> to vector<4x128xbf16>
    %c4_291 = arith.constant 4 : index
    %c0_292 = arith.constant 0 : index
    %470 = vector.load %arg18[%c4_291, %c0_292] : memref<10x128xf32, #tpu.memory_space<vmem>>, vector<4x128xf32>
    %cst_293 = arith.constant 0.000000e+00 : f32
    %471 = vector.shape_cast %439 : vector<4x1xi1> to vector<4x1xi1>
    %472 = vector.broadcast %471 : vector<4x1xi1> to vector<4x128xi1>
    %473 = vector.broadcast %cst_293 : f32 to vector<4x128xf32>
    %474 = arith.select %472, %470, %473 : vector<4x128xi1>, vector<4x128xf32>
    %475 = arith.truncf %474 : vector<4x128xf32> to vector<4x128xbf16>
    %c5_294 = arith.constant 5 : index
    %c0_295 = arith.constant 0 : index
    %476 = vector.load %arg18[%c5_294, %c0_295] : memref<10x128xf32, #tpu.memory_space<vmem>>, vector<4x128xf32>
    %477 = arith.truncf %476 : vector<4x128xf32> to vector<4x128xbf16>
    %c6_296 = arith.constant 6 : index
    %c0_297 = arith.constant 0 : index
    %478 = vector.load %arg18[%c6_296, %c0_297] : memref<10x128xf32, #tpu.memory_space<vmem>>, vector<4x128xf32>
    %cst_298 = arith.constant 0.000000e+00 : f32
    %479 = vector.shape_cast %441 : vector<4x1xi1> to vector<4x1xi1>
    %480 = vector.broadcast %479 : vector<4x1xi1> to vector<4x128xi1>
    %481 = vector.broadcast %cst_298 : f32 to vector<4x128xf32>
    %482 = arith.select %480, %478, %481 : vector<4x128xi1>, vector<4x128xf32>
    %483 = arith.truncf %482 : vector<4x128xf32> to vector<4x128xbf16>
    %484 = tpu.concatenate %447, %449, %455, %461, %463, %469, %475, %477, %483 in 1 : vector<4x128xbf16>, vector<4x128xbf16>, vector<4x128xbf16>, vector<4x128xbf16>, vector<4x128xbf16>, vector<4x128xbf16>, vector<4x128xbf16>, vector<4x128xbf16>, vector<4x128xbf16> -> vector<4x1152xbf16>
    %c0_299 = arith.constant 0 : index
    %c0_300 = arith.constant 0 : index
    %485 = vector.load %arg10[%c0_299, %c0_300] : memref<1152x256xbf16, #tpu.memory_space<vmem>>, vector<1152x256xbf16>
    %cst_301 = arith.constant dense<0.000000e+00> : vector<4x256xf32>
    %486 = tpu.matmul %484, %485, %cst_301 {dimension_numbers = #tpu.dot_dimension_numbers<[1], [0], [0], [1], [0, 0, 1, 1], [], []>} : vector<4x1152xbf16>, vector<1152x256xbf16>, vector<4x256xf32> -> vector<4x256xf32>
    %c0_302 = arith.constant 0 : index
    %c0_303 = arith.constant 0 : index
    %487 = vector.load %arg11[%c0_302, %c0_303] : memref<1x256xf32, #tpu.memory_space<vmem>>, vector<1x256xf32>
    %488 = vector.broadcast %487 : vector<1x256xf32> to vector<4x256xf32>
    %489 = arith.addf %486, %488 : vector<4x256xf32>
    %cst_304 = arith.constant 0.000000e+00 : f32
    %490 = vector.broadcast %cst_304 : f32 to vector<4x256xf32>
    %491 = arith.maximumf %489, %490 : vector<4x256xf32>
    %492 = vector.extract_strided_slice %491 {offsets = [0, 0], sizes = [1, 256], strides = [1, 1]} : vector<4x256xf32> to vector<1x256xf32>
    %c0_305 = arith.constant 0 : index
    %c0_306 = arith.constant 0 : index
    %493 = vector.load %arg22[%c0_305, %c0_306] : memref<1x1024xf32, #tpu.memory_space<vmem>>, vector<1x256xf32>
    tpu.vector_store %arg22[%c0_305, %c0_306], %492 {strides = array<i32>} : memref<1x1024xf32, #tpu.memory_space<vmem>>, vector<1x256xf32>,
    %494 = vector.extract_strided_slice %491 {offsets = [1, 0], sizes = [1, 256], strides = [1, 1]} : vector<4x256xf32> to vector<1x256xf32>
    %c0_307 = arith.constant 0 : index
    %c256 = arith.constant 256 : index
    %495 = vector.load %arg22[%c0_307, %c256] : memref<1x1024xf32, #tpu.memory_space<vmem>>, vector<1x256xf32>
    tpu.vector_store %arg22[%c0_307, %c256], %494 {strides = array<i32>} : memref<1x1024xf32, #tpu.memory_space<vmem>>, vector<1x256xf32>,
    %496 = vector.extract_strided_slice %491 {offsets = [2, 0], sizes = [1, 256], strides = [1, 1]} : vector<4x256xf32> to vector<1x256xf32>
    %c0_308 = arith.constant 0 : index
    %c512 = arith.constant 512 : index
    %497 = vector.load %arg22[%c0_308, %c512] : memref<1x1024xf32, #tpu.memory_space<vmem>>, vector<1x256xf32>
    tpu.vector_store %arg22[%c0_308, %c512], %496 {strides = array<i32>} : memref<1x1024xf32, #tpu.memory_space<vmem>>, vector<1x256xf32>,
    %498 = vector.extract_strided_slice %491 {offsets = [3, 0], sizes = [1, 256], strides = [1, 1]} : vector<4x256xf32> to vector<1x256xf32>
    %c0_309 = arith.constant 0 : index
    %c768 = arith.constant 768 : index
    %499 = vector.load %arg22[%c0_309, %c768] : memref<1x1024xf32, #tpu.memory_space<vmem>>, vector<1x256xf32>
    tpu.vector_store %arg22[%c0_309, %c768], %498 {strides = array<i32>} : memref<1x1024xf32, #tpu.memory_space<vmem>>, vector<1x256xf32>,
    %c0_310 = arith.constant 0 : index
    %c0_311 = arith.constant 0 : index
    %500 = vector.load %arg22[%c0_310, %c0_311] : memref<1x1024xf32, #tpu.memory_space<vmem>>, vector<1x1024xf32>
    %501 = arith.truncf %500 : vector<1x1024xf32> to vector<1x1024xbf16>
    %c0_312 = arith.constant 0 : index
    %c0_313 = arith.constant 0 : index
    %502 = vector.load %arg12[%c0_312, %c0_313] : memref<1024x10xbf16, #tpu.memory_space<vmem>>, vector<1024x10xbf16>
    %cst_314 = arith.constant dense<0.000000e+00> : vector<1x10xf32>
    %503 = tpu.matmul %501, %502, %cst_314 {dimension_numbers = #tpu.dot_dimension_numbers<[1], [0], [0], [1], [0, 0, 1, 1], [], []>} : vector<1x1024xbf16>, vector<1024x10xbf16>, vector<1x10xf32> -> vector<1x10xf32>
    %c0_315 = arith.constant 0 : index
    %c0_316 = arith.constant 0 : index
    %504 = vector.load %arg13[%c0_315, %c0_316] : memref<1x10xf32, #tpu.memory_space<vmem>>, vector<1x10xf32>
    %505 = arith.addf %503, %504 : vector<1x10xf32>
    %c0_317 = arith.constant 0 : index
    %c0_318 = arith.constant 0 : index
    %c0_319 = arith.constant 0 : index
    %506 = vector.load %arg14[%c0_317, %c0_318, %c0_319] : memref<1x1x10xf32, #tpu.memory_space<vmem>>, vector<1x1x10xf32>
    %507 = vector.shape_cast %506 : vector<1x1x10xf32> to vector<1x10xf32>
    %508 = vector.shape_cast %505 : vector<1x10xf32> to vector<1x1x10xf32>
    tpu.vector_store %arg14[%c0_317, %c0_318, %c0_319], %508 {strides = array<i32>} : memref<1x1x10xf32, #tpu.memory_space<vmem>>, vector<1x1x10xf32>,
    return
  }
  func.func @transform_0(%arg0: i32) -> (i32, i32, i32) {
    %c0_i32 = arith.constant 0 : i32
    %c0_i32_0 = arith.constant 0 : i32
    %c0_i32_1 = arith.constant 0 : i32
    return %arg0, %c0_i32, %c0_i32_0 : i32, i32, i32
  }
  func.func @transform_1(%arg0: i32) -> (i32, i32) {
    %c0_i32 = arith.constant 0 : i32
    %c0_i32_0 = arith.constant 0 : i32
    %c0_i32_1 = arith.constant 0 : i32
    return %c0_i32, %c0_i32_0 : i32, i32
  }
  func.func @transform_2(%arg0: i32) -> (i32, i32) {
    %c0_i32 = arith.constant 0 : i32
    %c0_i32_0 = arith.constant 0 : i32
    %c0_i32_1 = arith.constant 0 : i32
    return %c0_i32, %c0_i32_0 : i32, i32
  }
  func.func @transform_3(%arg0: i32) -> (i32, i32) {
    %c0_i32 = arith.constant 0 : i32
    %c0_i32_0 = arith.constant 0 : i32
    %c0_i32_1 = arith.constant 0 : i32
    return %c0_i32, %c0_i32_0 : i32, i32
  }
  func.func @transform_4(%arg0: i32) -> (i32, i32) {
    %c0_i32 = arith.constant 0 : i32
    %c0_i32_0 = arith.constant 0 : i32
    %c0_i32_1 = arith.constant 0 : i32
    return %c0_i32, %c0_i32_0 : i32, i32
  }
  func.func @transform_5(%arg0: i32) -> (i32, i32) {
    %c0_i32 = arith.constant 0 : i32
    %c0_i32_0 = arith.constant 0 : i32
    %c0_i32_1 = arith.constant 0 : i32
    return %c0_i32, %c0_i32_0 : i32, i32
  }
  func.func @transform_6(%arg0: i32) -> (i32, i32) {
    %c0_i32 = arith.constant 0 : i32
    %c0_i32_0 = arith.constant 0 : i32
    %c0_i32_1 = arith.constant 0 : i32
    return %c0_i32, %c0_i32_0 : i32, i32
  }
  func.func @transform_7(%arg0: i32) -> (i32, i32) {
    %c0_i32 = arith.constant 0 : i32
    %c0_i32_0 = arith.constant 0 : i32
    %c0_i32_1 = arith.constant 0 : i32
    return %c0_i32, %c0_i32_0 : i32, i32
  }
  func.func @transform_8(%arg0: i32) -> (i32, i32) {
    %c0_i32 = arith.constant 0 : i32
    %c0_i32_0 = arith.constant 0 : i32
    %c0_i32_1 = arith.constant 0 : i32
    return %c0_i32, %c0_i32_0 : i32, i32
  }
  func.func @transform_9(%arg0: i32) -> (i32, i32) {
    %c0_i32 = arith.constant 0 : i32
    %c0_i32_0 = arith.constant 0 : i32
    %c0_i32_1 = arith.constant 0 : i32
    return %c0_i32, %c0_i32_0 : i32, i32
  }
  func.func @transform_10(%arg0: i32) -> (i32, i32) {
    %c0_i32 = arith.constant 0 : i32
    %c0_i32_0 = arith.constant 0 : i32
    %c0_i32_1 = arith.constant 0 : i32
    return %c0_i32, %c0_i32_0 : i32, i32
  }
  func.func @transform_11(%arg0: i32) -> (i32, i32) {
    %c0_i32 = arith.constant 0 : i32
    %c0_i32_0 = arith.constant 0 : i32
    %c0_i32_1 = arith.constant 0 : i32
    return %c0_i32, %c0_i32_0 : i32, i32
  }
  func.func @transform_12(%arg0: i32) -> (i32, i32) {
    %c0_i32 = arith.constant 0 : i32
    %c0_i32_0 = arith.constant 0 : i32
    %c0_i32_1 = arith.constant 0 : i32
    return %c0_i32, %c0_i32_0 : i32, i32
  }
  func.func @transform_13(%arg0: i32) -> (i32, i32, i32) {
    %c0_i32 = arith.constant 0 : i32
    %c0_i32_0 = arith.constant 0 : i32
    %c0_i32_1 = arith.constant 0 : i32
    return %arg0, %c0_i32, %c0_i32_0 : i32, i32, i32
  }
}

</mosaic_0001>

<bundles_post_ra>
// kernel: cnn5layer_forward.1
= control target key start
LH: loop header
LB: loop body
LE: loop exit
PB: predicated region body
PF: predicated region fallthrough
CT: control target
= control target key end

     0   :  { %s9745_s0 = inlined_call_operand.vmem [shape: f32[2,290,3], index: 0, kind: input, shape index: {}]   ;;  %s9746_s1 = inlined_call_operand.vmem [shape: bf16[27,16], index: 1, kind: input, shape index: {}]   ;;  %s9747_s2 = inlined_call_operand.vmem [shape: f32[1,16], index: 2, kind: input, shape index: {}]   ;;  %s9748_s3 = inlined_call_operand.vmem [shape: bf16[144,32], index: 3, kind: input, shape index: {}]   ;;  %s9749_s4 = inlined_call_operand.vmem [shape: f32[1,32], index: 4, kind: input, shape index: {}]   ;;  %s9750_s5 = inlined_call_operand.vmem [shape: bf16[288,64], index: 5, kind: input, shape index: {}]   ;;  %s9751_s6 = inlined_call_operand.vmem [shape: f32[1,64], index: 6, kind: input, shape index: {}]   ;;  %s9752_s7 = inlined_call_operand.vmem [shape: bf16[576,128], index: 7, kind: input, shape index: {}]   ;;  %s9753_s8 = inlined_call_operand.vmem [shape: f32[1,128], index: 8, kind: input, shape index: {}]   ;;  %s9754_s9 = inlined_call_operand.vmem [shape: bf16[1152,256], index: 9, kind: input, shape index: {}]   ;;  %s9755_s10 = inlined_call_operand.vmem [shape: f32[1,256], index: 10, kind: input, shape index: {}]   ;;  %s9756_s11 = inlined_call_operand.vmem [shape: bf16[1024,10], index: 11, kind: input, shape index: {}]   ;;  %s9757_s12 = inlined_call_operand.vmem [shape: f32[1,10], index: 12, kind: input, shape index: {}]   ;;  %s9758_s13 = inlined_call_operand.hbm [shape: f32[2,1,10], index: 13, kind: output, shape index: {}]  }
   0x1   :  { %9783 = sst [smem:[#allocation13_spill]] %s9745_s0 }
   0x2   :  { %9784 = sst [smem:[#allocation14_spill]] %s9746_s1 }
   0x3   :  { %9785 = sst [smem:[#allocation15_spill]] %s9747_s2 }
   0x4   :  { %18 = vsyncpa [#allocation11], 0 }
   0x5   :  { %20 = vsyncpa [#allocation11 + $0x1], 0  ;;  %s7081_s25 = smov 0   ;;  %s7083_s26 = smov 0  }
   0x6   :  { %s7085_s27 = smov 0   ;;  %s7087_s28 = smov 0  }
   0x7 LB: > { %s7102_s29 = sadd.s32 4294967295, %s6988_s28   ;;  %s5931_s30 = sadd.s32 4294967294, %s6988_s28   ;;  %s6988_s28 = sphi %s7087_s28, %s9949_s28   ;;  %s6984_s27 = sphi %s7085_s27, %s9948_s27   ;;  %s6980_s26 = sphi %s7083_s26, %s9947_s26   ;;  %s6976_s25 = sphi %s7081_s25, %s9946_s25  }
   0x8   : > { %s7106_s14 = sadd.s32 1, %s6988_s28   ;;  %s311_s15 = sadd.s32 1, %s6984_s27 }
   0x9   : > { %s308_s16 = ssub.s32 %s6988_s28, %s7106_s14  ;;  %p321_p0 = scmp.ne.s32.totalorder %s6984_s27, %s6980_s26 }
   0xa   : > { %p309_p1 = scmp.eq.s32.totalorder %s308_s16, 0  ;;  %p322_p2 = scmp.eq.s32.totalorder %s7102_s29, 1 }
   0xb   : > { %p327_p3 = scmp.ne.s32.totalorder %s6980_s26, %s6976_s25  ;;  %p328_p4 = scmp.eq.s32.totalorder %s5931_s30, 1 }
   0xc   : > { %s7117_s17 = scalar_select %p309_p1, %s6984_s27, %s311_s15  }
   0xd   : > { %p7119_p5 = por %p322_p2, %p321_p0  ;;  %p7123_p6 = por %p328_p4, %p327_p3 }
   0xe   : > { %p5934_p7 = scmp.ge.s32.totalorder %s6988_s28, 1  ;;  %p390_p8 = scmp.lt.s32.totalorder %s6988_s28, 3 }
  0x10   : > { %p391_p9 = pnand %p5934_p7, %p390_p8 }
  0x11   : > { %p433_p10 = scmp.lt.s32.totalorder (!%p391_p9), %s7102_s29, 1  ;;  %v453_v0 = vlaneseq (!%p391_p9)  ;;  %s9788_s0 = sld [smem:[#allocation13_spill]] (!%p391_p9)  ;;  %vm2165_vm10 = vcmask (!%p391_p9), 1044480   ;;  %vm2166_vm11 = vcmask (!%p391_p9), 1045504  }
  0x12   : > { %394 = sbr.rel (%p391_p9) target bundleno = 2568 (0xa08), region = 72  ;;  %s9759_s30 = smov (!%p391_p9), 12  }
  0x13   : > { %v7132_v1 = vshrl.u32 (!%p391_p9), %v453_v0, 7  ;;  %s9763_s15 = smov (!%p391_p9), 3   ;;  %s9773_s16 = smov (!%p391_p9), 6  }
  0x14   : > { %s9765_s22 = smov (!%p391_p9), 18   ;;  %s9797_s1 = sld [smem:[#allocation14_spill]] (!%p391_p9) }
  0x15   : > { %v7135_v2 = vadd.s32 (!%p391_p9), 40, %v7132_v1  ;;  %v7138_v3 = vadd.s32 (!%p391_p9), 56, %v7132_v1  ;;  %v7141_v4 = vadd.s32 (!%p391_p9), 48, %v7132_v1  ;;  %v7144_v5 = vadd.s32 (!%p391_p9), 32, %v7132_v1  ;;  %s9761_s23 = smov (!%p391_p9), 24   ;;  %s9891_s2 = sld [smem:[#allocation15_spill]] (!%p391_p9) }
  0x16   : > { %v465_v53 = vadd.s32 (!%p391_p9), 88, %v7132_v1  ;;  %v463_v54 = vadd.s32 (!%p391_p9), 72, %v7132_v1  ;;  %v464_v59 = vadd.s32 (!%p391_p9), 80, %v7132_v1  ;;  %v462_v62 = vadd.s32 (!%p391_p9), 64, %v7132_v1 }
  0x17   : > { %v525_v6 = vand.u32 (!%p391_p9), 15, %v7135_v2  ;;  %v539_v7 = vand.u32 (!%p391_p9), 15, %v7138_v3  ;;  %v532_v17 = vand.u32 (!%p391_p9), 15, %v7141_v4  ;;  %v518_v22 = vand.u32 (!%p391_p9), 15, %v7144_v5 }
  0x18   : > { %v567_v57 = vand.u32 (!%p391_p9), 15, %v465_v53  ;;  %v553_v58 = vand.u32 (!%p391_p9), 15, %v463_v54  ;;  %v7287_v63 = vadd.s32 (!%p391_p9), 16, %v7132_v1  ;;  %v7307_v13 = vadd.s32 (!%p391_p9), 24, %v7132_v1 }
  0x19   : > { %s434_s20 = scalar_select %p433_p10, %s7102_s29, 1  ;;  %vm7159_vm0 = vcmp.le.s32.totalorder %v525_v6, 14  ;;  %vm7169_vm1 = vcmp.le.s32.totalorder %v539_v7, 14  ;;  %vm7198_vm2 = vcmp.ge.s32.totalorder %v532_v17, 1  ;;  %vm7205_vm3 = vcmp.ge.s32.totalorder %v518_v22, 1 }
  0x1a   : > { %v6574_v56 = vld [vmem:[%s9797_s1] sm:$0xff]   ;;  %vm7298_vm4 = vcmp.le.s32.totalorder %v567_v57, 14  ;;  %vm7302_vm5 = vcmp.le.s32.totalorder %v553_v58, 14  ;;  %v546_v17 = vand.u32 15, %v462_v62  ;;  %v466_v54 = vadd.s32 96, %v7132_v1 }
  0x1b   : > { %s6514_s21 = smul.u32 296, %s434_s20  ;;  %s9767_s20 = smov 9   ;;  %6492 = vmatprep.subr.bf16.mxu1 %v6574_v56  ;;  %6436 = vmatprep.subr.bf16.mxu0 %v6574_v56 }
  0x1c   : > { %6494 = vmatpush3.bf16.msra.mxu1 %v6574_v56  ;;  %6437 = vmatpush3.bf16.msra.mxu0 %v6574_v56  ;;  %vm7341_vm8 = vcmp.ge.s32.totalorder %v546_v17, 1 }
  0x1d   : > { %s7149_s24 = scalar_lea.vmem %s9788_s0, %s6514_s21  ;;  %s9771_s21 = smov 15  }
  0x1e   : > { %v1086_v8 = vld [vmem:[%s7149_s24 + $0x41] sm:$0xff]  ;;  %v1087_v9 = vld [vmem:[%s7149_s24 + $0x49] sm:$0xff]  ;;  %v1084_v20 = vld [vmem:[%s7149_s24 + $0x31] sm:$0xff]  ;;  %s9853_s0 = smov 6  }
  0x1f   : > { %v1082_v10 = vld [vmem:[%s7149_s24 + $0x21] sm:$0xff]  ;;  %v7156_v11 = vpack.c.bf16 %v1087_v9, %v1086_v8  ;;  %v1083_v12 = vld [vmem:[%s7149_s24 + $0x29] sm:$0xff]  ;;  %v1085_v21 = vld [vmem:[%s7149_s24 + $0x39] sm:$0xff] }
  0x20   : > { %v7164_v14 = vld [vmem:[%s7149_s24 + $0x22] sm:$0xff]  ;;  %v7167_v15 = vld [vmem:[%s7149_s24 + $0x2a] sm:$0xff]  ;;  %v7174_v18 = vpack.c.bf16 %v1083_v12, %v1082_v10  ;;  %v7186_v24 = vld [vmem:[%s7149_s24 + $0x3a] sm:$0xff]  ;;  %v7190_v25 = vpack.c.bf16 %v1085_v21, %v1084_v20  ;;  %v560_v10 = vand.u32 15, %v464_v59 }
  0x21   : > { %v1227_v19 = vsel %vm7159_vm0, %v7167_v15, 0.0  ;;  %1627 = vrot.lane.b32.xlu1 %v7156_v11, %s9759_s30  ;;  %v7193_v26 = vld [vmem:[%s7149_s24 + $0x32] sm:$0xff]  ;;  %v1229_v27 = vsel %vm7169_vm1, %v7186_v24, 0.0  ;;  %v7203_v29 = vld [vmem:[%s7149_s24 + $0x40] sm:$0xff]  ;;  %v7217_v33 = vld [vmem:[%s7149_s24 + $0x48] sm:$0xff]  ;;  %v1330_v42 = vsel %vm7159_vm0, %v7186_v24, 0.0 }
  0x22   : > { %v1256_v23 = vpack.c.bf16 %v1227_v19, %v7164_v14  ;;  %1496 = vrot.lane.b32.xlu0 %v7174_v18, %s9763_s15  ;;  %v7210_v31 = vld [vmem:[%s7149_s24 + $0x30] sm:$0xff]  ;;  %v1257_v32 = vpack.c.bf16 %v1229_v27, %v7193_v26  ;;  %v1278_v34 = vsel %vm7198_vm2, %v7203_v29, 0.0  ;;  %v7223_v35 = vld [vmem:[%s7149_s24 + $0x38] sm:$0xff]  ;;  %v7237_v40 = vld [vmem:[%s7149_s24 + $0x42] sm:$0xff]  ;;  %v1359_v45 = vpack.c.bf16 %v1330_v42, %v7193_v26 }
  0x23   : > { %v1276_v36 = vsel %vm7205_vm3, %v7210_v31, 0.0  ;;  %v7229_v37 = vld [vmem:[%s7149_s24 + $0x4a] sm:$0xff]  ;;  %v1307_v38 = vpack.c.bf16 %v7217_v33, %v1278_v34  ;;  %v7253_v46 = vld [vmem:[%s7149_s24 + $0x58] sm:$0xff]  ;;  %v1379_v48 = vsel %vm7205_vm3, %v7203_v29, 0.0  ;;  %v504_v19 = vand.u32 15, %v7287_v63  ;;  %v7316_v20 = vld [vmem:[%s7149_s24 + $0x60] sm:$0xff] }
  0x24   : > { %v1306_v39 = vpack.c.bf16 %v7223_v35, %v1276_v36  ;;  %v1332_v41 = vsel %vm7169_vm1, %v7229_v37, 0.0  ;;  %v7246_v43 = vld [vmem:[%s7149_s24 + $0x50] sm:$0xff]  ;;  %v1409_v50 = vpack.c.bf16 %v7217_v33, %v1379_v48  ;;  %v1089_v52 = vld [vmem:[%s7149_s24 + $0x59] sm:$0xff]  ;;  %v1433_v60 = vsel %vm7159_vm0, %v7229_v37, 0.0 }
  0x25   : > { %1544 = vrot.lane.b32.xlu1 %v1256_v23, %s9773_s16  ;;  %v1360_v44 = vpack.c.bf16 %v1332_v41, %v7237_v40  ;;  %v1381_v47 = vsel %vm7198_vm2, %v7246_v43, 0.0  ;;  %v1088_v51 = vld [vmem:[%s7149_s24 + $0x51] sm:$0xff]  ;;  %v7281_v61 = vld [vmem:[%s7149_s24 + $0x5a] sm:$0xff]  ;;  %v1462_v6 = vpack.c.bf16 %v1433_v60, %v7237_v40  ;;  %v1231_v22 = vsel %vm7302_vm5, %v7229_v37, 0.0  ;;  %v7352_v41 = vld [vmem:[%s7149_s24 + $0x68] sm:$0xff] }
  0x26   : > { %1498 = vrot.lane.b32.xlu0 %v7190_v25, %s9763_s15  ;;  %v1410_v49 = vpack.c.bf16 %v7253_v46, %v1381_v47  ;;  %v7270_v55 = vpack.c.bf16 %v1089_v52, %v1088_v51  ;;  %v7293_v7 = vld [vmem:[%s7149_s24 + $0x52] sm:$0xff]  ;;  %v1435_v8 = vsel %vm7169_vm1, %v7281_v61, 0.0  ;;  %v1233_v16 = vsel %vm7298_vm4, %v7281_v61, 0.0  ;;  %v7372_v28 = vld [vmem:[%s7149_s24 + $0x6a] sm:$0xff] }
  0x27   : > { %v1463_v21 = vpack.c.bf16 %v1435_v8, %v7293_v7  ;;  %vm7323_vm6 = vcmp.ge.s32.totalorder %v560_v10, 1  ;;  %vm7327_vm7 = vcmp.ge.s32.totalorder %v504_v19, 1  ;;  %v7332_v27 = vld [vmem:[%s7149_s24 + $0x10] sm:$0xff]  ;;  %v7336_v34 = vld [vmem:[%s7149_s24 + $0x18] sm:$0xff]  ;;  %v1036_v42 = vsel %vm7198_vm2, %v7210_v31, 0.0  ;;  %v7405_v10 = vld [vmem:[%s7149_s24 + $0x62] sm:$0xff] }
  0x28   : > { %v1032_v36 = vsel %vm7327_vm7, %v7332_v27, 0.0  ;;  %v7363_v47 = vadd.s32 8, %v7132_v1  ;;  %v7366_v48 = vpack.c.bf16 %v7223_v35, %v1036_v42  ;;  %v1091_v53 = vld [vmem:[%s7149_s24 + $0x69] sm:$0xff]  ;;  %v1336_v58 = vsel %vm7298_vm4, %v7372_v28, 0.0 }
  0x29   : > { %1546 = vrot.lane.b32.xlu1 %v1257_v32, %s9773_s16  ;;  %v511_v32 = vand.u32 15, %v7307_v13  ;;  %v1334_v59 = vsel %vm7302_vm5, %v7281_v61, 0.0  ;;  %v1377_v62 = vsel %vm7327_vm7, %v7210_v31, 0.0  ;;  %v1038_v61 = vsel %vm7341_vm8, %v7203_v29, 0.0 }
  0x2a   : > { %1625 = vrot.lane.b32.xlu0 %v7190_v25, %s9759_s30  ;;  %s9769_s30 = smov 21   ;;  %v497_v60 = vand.u32 15, %v7363_v47  ;;  %v7408_v17 = vpack.c.bf16 %v7223_v35, %v1377_v62  ;;  %v574_v19 = vand.u32 15, %v466_v54  ;;  %v7415_v31 = vpack.c.bf16 %v7217_v33, %v1038_v61 }
  0x2b   : > { %vm7374_vm9 = vcmp.le.s32.totalorder %v511_v32, 14  ;;  %v6998_v35 = vmov 65535   ;;  %v1040_v29 = vsel %vm7323_vm6, %v7246_v43, 0.0  ;;  %v468_v32 = vadd.s32 112, %v7132_v1 }
  0x2c   : > { %v1328_v51 = vsel %vm7374_vm9, %v7167_v15, 0.0  ;;  %vm7418_vm12 = vcmp.le.s32.totalorder %v497_v60, 14  ;;  %vm7453_vm13 = vcmp.ge.s32.totalorder %v574_v19, 1  ;;  %v1437_v62 = vsel %vm7302_vm5, %v7372_v28, 0.0 }
  0x2d   : > { %1594 = vrot.lane.b32.xlu1 %v1307_v38, %s9767_s20  ;;  %v7346_v38 = vpack.c.bf16 %v7336_v34, %v1032_v36  ;;  %v7387_v56 = vpack.c.bf16 %v1328_v51, %v7164_v14  ;;  %v7430_v36 = vpack.c.bf16 %v7253_v46, %v1040_v29  ;;  %v588_v23 = vand.u32 15, %v468_v32 }
  0x2e   : > { %1592 = vrot.lane.b32.xlu0 %v1306_v39, %s9767_s20  ;;  %v1259_v39 = vpack.c.bf16 %v1233_v16, %v7293_v7 }
  0x2f   : > { %vm7474_vm14 = vcmp.ge.s32.totalorder %v588_v23, 1  ;;  %v1142_v23 = vld [vmem:[%s7149_s24 + $0x82] sm:$0xff] }
  0x31   : > { %1675 = vrot.lane.b32.xlu1 %v1360_v44, %s9771_s21  ;;  %v1258_v44 = vpack.c.bf16 %v1231_v22, %v7237_v40  ;;  %v1090_v40 = vld [vmem:[%s7149_s24 + $0x61] sm:$0xff]  ;;  %v7426_v22 = vld [vmem:[%s7149_s24 + $0x70] sm:$0xff] }
  0x32   : > { %1673 = vrot.lane.b32.xlu0 %v1359_v45, %s9771_s21  ;;  %v1282_v45 = vsel %vm7323_vm6, %v7316_v20, 0.0  ;;  %v1116_v8 = vpack.c.bf16 %v1091_v53, %v1090_v40  ;;  %v1093_v53 = vld [vmem:[%s7149_s24 + $0x79] sm:$0xff]  ;;  %v1044_v60 = vsel %vm7474_vm14, %v7426_v22, 0.0 }
  0x33   : > { %v1309_v52 = vpack.c.bf16 %v7352_v41, %v1282_v45  ;;  %v1362_v45 = vpack.c.bf16 %v1336_v58, %v7405_v10 }
  0x35   : > { %1723 = vrot.lane.b32.xlu1 %v1410_v49, %s9765_s22  ;;  %v1280_v49 = vsel %vm7341_vm8, %v7246_v43, 0.0  ;;  %v1431_v43 = vsel %vm7374_vm9, %v7186_v24, 0.0 }
  0x36   : > { %1721 = vrot.lane.b32.xlu0 %v1409_v50, %s9765_s22  ;;  %v1308_v57 = vpack.c.bf16 %v7253_v46, %v1280_v49  ;;  %v7444_v49 = vpack.c.bf16 %v1431_v43, %v7193_v26  ;;  %v949_v46 = vld [vmem:[%s7149_s24 + $0x78] sm:$0xff]  ;;  %v1383_v26 = vsel %vm7341_vm8, %v7316_v20, 0.0  ;;  %vm1879_vm8 = vcmask 48128  }
  0x37   : > { %v1411_v37 = vpack.c.bf16 %v7352_v41, %v1383_v26 }
  0x39   : > { %1756 = vrot.lane.b32.xlu1 %v7270_v55, %s9769_s30 }
  0x3a   : > { %1754 = vrot.lane.b32.xlu0 %v7156_v11, %s9769_s30 }
  0x3d   : > { %1500 = vrot.lane.b32.xlu1 %v7156_v11, %s9763_s15 }
  0x3e   : > { %1802 = vrot.lane.b32.xlu0 %v1462_v6, %s9761_s23  ;;  %v6575_v6 = vld [vmem:[%s9797_s1 + $0x8] sm:$0x3f]  }
  0x41   : > { %1502 = vrot.lane.b32.xlu1 %v7270_v55, %s9763_s15  ;;  %s9812_s15 = smov 12  }
  0x42   : > { %1804 = vrot.lane.b32.xlu0 %v1463_v21, %s9761_s23  ;;  %v2167_v21 = vsel %vm2165_vm10, 4294967295, %v6998_v35  ;;  %v1140_v35 = vld [vmem:[%s7149_s24 + $0x72] sm:$0xff]  ;;  %s9821_s23 = smov 3   ;;  %vm1945_vm10 = vcmask 97280  }
  0x43   : > { %v2168_v33 = vsel %vm2166_vm11, %v2167_v21, 0  ;;  %v1464_v21 = vpack.c.bf16 %v1437_v62, %v7405_v10  ;;  %v1096_v62 = vld [vmem:[%s7149_s24 + $0x91] sm:$0xff] }
  0x44   : > { %v2170_v42 = vand.u32 %v6575_v6, %v2168_v33  ;;  %v950_v33 = vld [vmem:[%s7149_s24 + $0x80] sm:$0xff] }
  0x45   : > { %1550 = vrot.lane.b32.xlu1 %v1259_v39, %s9773_s16  ;;  %v1429_v39 = vsel %vm7418_vm12, %v7167_v15, 0.0  ;;  %v1361_v15 = vpack.c.bf16 %v1334_v59, %v7293_v7  ;;  %v1042_v7 = vsel %vm7453_vm13, %v7316_v20, 0.0  ;;  %v1141_v20 = vld [vmem:[%s7149_s24 + $0x7a] sm:$0xff]  ;;  %v1286_v43 = vsel %vm7474_vm14, %v950_v33, 0.0 }
  0x46   : > { %1548 = vrot.lane.b32.xlu0 %v1258_v44, %s9773_s16  ;;  %v7436_v44 = vpack.c.bf16 %v1429_v39, %v7164_v14  ;;  %v1385_v14 = vsel %vm7323_vm6, %v7426_v22, 0.0  ;;  %6493 = vmatprep.subr.bf16.mxu1 %v2170_v42  ;;  %v7465_v40 = vpack.c.bf16 %v7352_v41, %v1042_v7  ;;  %v7483_v41 = vpack.c.bf16 %v949_v46, %v1044_v60 }
  0x47   : > { %6495 = vmatpush3.bf16.msra.mxu1 %v2170_v42  ;;  %6438 = vmatprep.subr.bf16.mxu0 %v2170_v42  ;;  %v1412_v51 = vpack.c.bf16 %v949_v46, %v1385_v14  ;;  %v1439_v6 = vsel %vm7298_vm4, %v1141_v20, 0.0  ;;  %v470_v7 = vadd.s32 128, %v7132_v1 }
  0x48   : > { %6439 = vmatpush3.bf16.msra.mxu0 %v2170_v42  ;;  %v1465_v9 = vpack.c.bf16 %v1439_v6, %v1140_v35  ;;  %v951_v42 = vld [vmem:[%s7149_s24 + $0x88] sm:$0xff] }
  0x49   : > { %1598 = vrot.lane.b32.xlu1 %v1309_v52, %s9767_s20  ;;  %v1092_v52 = vld [vmem:[%s7149_s24 + $0x71] sm:$0xff]  ;;  %v1311_v14 = vpack.c.bf16 %v951_v42, %v1286_v43 }
  0x4a   : > { %1596 = vrot.lane.b32.xlu0 %v1308_v57, %s9767_s20  ;;  %v467_v57 = vadd.s32 104, %v7132_v1  ;;  %v1117_v59 = vpack.c.bf16 %v1093_v53, %v1092_v52 }
  0x4c   : > { %v581_v19 = vand.u32 15, %v467_v57 }
  0x4d   : > { %1631 = vrot.lane.b32.xlu1 %v1116_v8, %s9812_s15 }
  0x4e   : > { %1629 = vrot.lane.b32.xlu0 %v7270_v55, %s9812_s15  ;;  %v469_v55 = vadd.s32 120, %v7132_v1  ;;  %vm7498_vm0 = vcmp.le.s32.totalorder %v581_v19, 14  ;;  %v1097_v19 = vld [vmem:[%s7149_s24 + $0x99] sm:$0xff] }
  0x4f   : > { %v1235_v32 = vsel %vm7498_vm0, %v7372_v28, 0.0  ;;  %v7521_v28 = vld [vmem:[%s7149_s24 + $0x8a] sm:$0xff] }
  0x50   : > { %v595_v54 = vand.u32 15, %v469_v55 }
  0x51   : > { %1679 = vrot.lane.b32.xlu1 %v1362_v45, %s9771_s21  ;;  %v1284_v45 = vsel %vm7453_vm13, %v7426_v22, 0.0 }
  0x52   : > { %1677 = vrot.lane.b32.xlu0 %v1361_v15, %s9771_s21  ;;  %vm7490_vm15 = vcmp.le.s32.totalorder %v595_v54, 14  ;;  %v1094_v15 = vld [vmem:[%s7149_s24 + $0x81] sm:$0xff]  ;;  %v1310_v26 = vpack.c.bf16 %v949_v46, %v1284_v45  ;;  %v602_v46 = vand.u32 15, %v470_v7  ;;  %v7541_v54 = vld [vmem:[%s7149_s24 + $0x98] sm:$0xff]  ;;  %v473_v45 = vadd.s32 152, %v7132_v1 }
  0x53   : > { %v1237_v29 = vsel %vm7490_vm15, %v1141_v20, 0.0  ;;  %v1340_v55 = vsel %vm7490_vm15, %v7521_v28, 0.0  ;;  %v1126_v7 = vld [vmem:[%s7149_s24 + $0x2] sm:$0xff] }
  0x54   : > { %v1261_v39 = vpack.c.bf16 %v1237_v29, %v1140_v35  ;;  %v1364_v52 = vpack.c.bf16 %v1340_v55, %v1142_v23  ;;  %vm7548_vm1 = vcmp.ge.s32.totalorder %v602_v46, 1  ;;  %v7567_v29 = vpack.c.bf16 %v1097_v19, %v1096_v62 }
  0x55   : > { %1727 = vrot.lane.b32.xlu1 %v1412_v51, %s9765_s22  ;;  %v1338_v51 = vsel %vm7498_vm0, %v1141_v20, 0.0  ;;  %v1387_v20 = vsel %vm7453_vm13, %v950_v33, 0.0  ;;  %v1046_v58 = vsel %vm7548_vm1, %v950_v33, 0.0  ;;  %v623_v55 = vand.u32 15, %v473_v45  ;;  %v939_v45 = vld [vmem:[%s7149_s24 + $0x28] sm:$0xff] }
  0x56   : > { %1725 = vrot.lane.b32.xlu0 %v1411_v37, %s9765_s22  ;;  %s9822_s22 = smov 24   ;;  %v7536_v37 = vld [vmem:[%s7149_s24 + $0x90] sm:$0xff]  ;;  %v1363_v53 = vpack.c.bf16 %v1338_v51, %v1140_v35  ;;  %v1413_v6 = vpack.c.bf16 %v951_v42, %v1387_v20  ;;  %v7560_v35 = vld [vmem:[%s7149_s24 + $0x9a] sm:$0xff]  ;;  %v7562_v24 = vpack.c.bf16 %v951_v42, %v1046_v58  ;;  %v472_v20 = vadd.s32 144, %v7132_v1 }
  0x57   : > { %v1389_v57 = vsel %vm7474_vm14, %v7536_v37, 0.0  ;;  %v1443_v33 = vsel %vm7490_vm15, %v7560_v35, 0.0  ;;  %vm7603_vm4 = vcmp.le.s32.totalorder %v623_v55, 14  ;;  %v490_v62 = vand.u32 15, %v7132_v1  ;;  %v1099_v55 = vld [vmem:[%s7149_s24 + $0xa9] sm:$0xff] }
  0x58   : > { %v616_v58 = vand.u32 15, %v472_v20  ;;  %vm2011_vm13 = vcmask 146432   ;;  %vm2044_vm14 = vcmask 171008   ;;  %vm9777_vm15 = vcmask 195584  }
  0x59   : > { %1760 = vrot.lane.b32.xlu1 %v1117_v59, %s9769_s30  ;;  %vm7618_vm5 = vcmp.ge.s32.totalorder %v490_v62, 1 }
  0x5a   : > { %1758 = vrot.lane.b32.xlu0 %v1116_v8, %s9769_s30  ;;  %v1272_v50 = vsel %vm7618_vm5, %v7332_v27, 0.0  ;;  %vm7634_vm6 = vcmp.ge.s32.totalorder %v616_v58, 1  ;;  %v476_v58 = vadd.s32 176, %v7132_v1 }
  0x5d   : > { %1504 = vrot.lane.b32.xlu1 %v1116_v8, %s9821_s23  ;;  %v1260_v8 = vpack.c.bf16 %v1235_v32, %v7405_v10  ;;  %v1095_v10 = vld [vmem:[%s7149_s24 + $0x89] sm:$0xff]  ;;  %v1441_v32 = vsel %vm7498_vm0, %v7521_v28, 0.0  ;;  %vm9775_vm0 = vcmask 220160  }
  0x5e   : > { %1806 = vrot.lane.b32.xlu0 %v1464_v21, %s9822_s22  ;;  %v1118_v22 = vpack.c.bf16 %v1095_v10, %v1094_v15  ;;  %v1078_v21 = vld [vmem:[%s7149_s24 + $0x1] sm:$0xff]  ;;  %v1466_v43 = vpack.c.bf16 %v1441_v32, %v1142_v23  ;;  %v1080_v15 = vld [vmem:[%s7149_s24 + $0x11] sm:$0xff]  ;;  %v1288_v32 = vsel %vm7548_vm1, %v7536_v37, 0.0  ;;  %v1304_v37 = vpack.c.bf16 %v7336_v34, %v1272_v50 }
  0x5f   : > { %v1127_v10 = vld [vmem:[%s7149_s24 + $0xa] sm:$0xff]  ;;  %v474_v50 = vadd.s32 160, %v7132_v1 }
  0x61   : > { %1506 = vrot.lane.b32.xlu1 %v1117_v59, %s9821_s23 }
  0x62   : > { %1808 = vrot.lane.b32.xlu0 %v1465_v9, %s9822_s22  ;;  %v1079_v9 = vld [vmem:[%s7149_s24 + $0x9] sm:$0xff] }
  0x63   : > { %v1110_v42 = vpack.c.bf16 %v1079_v9, %v1078_v21 }
  0x65   : > { %1554 = vrot.lane.b32.xlu1 %v1261_v39, %s9773_s16  ;;  %v471_v39 = vadd.s32 136, %v7132_v1 }
  0x66   : > { %1552 = vrot.lane.b32.xlu0 %v1260_v8, %s9773_s16  ;;  %v7578_v8 = vld [vmem:[%s7149_s24 + $0x92] sm:$0xff] }
  0x67   : > { %v609_v12 = vand.u32 15, %v471_v39  ;;  %v1467_v61 = vpack.c.bf16 %v1443_v33, %v7578_v8  ;;  %v7632_v33 = vld [vmem:[%s7149_s24 + $0x20] sm:$0xff] }
  0x69   : > { %1602 = vrot.lane.b32.xlu1 %v1311_v14, %s9767_s20  ;;  %v1081_v14 = vld [vmem:[%s7149_s24 + $0x19] sm:$0xff]  ;;  %vm7589_vm2 = vcmp.le.s32.totalorder %v609_v12, 14  ;;  %v955_v12 = vld [vmem:[%s7149_s24 + $0xa8] sm:$0xff] }
  0x6a   : > { %1600 = vrot.lane.b32.xlu0 %v1310_v26, %s9767_s20  ;;  %s9825_s20 = smov 18   ;;  %v1111_v51 = vpack.c.bf16 %v1081_v14, %v1080_v15  ;;  %v1239_v46 = vsel %vm7589_vm2, %v7521_v28, 0.0 }
  0x6d   : > { %1635 = vrot.lane.b32.xlu1 %v1118_v22, %s9812_s15 }
  0x6e   : > { %1633 = vrot.lane.b32.xlu0 %v1117_v59, %s9812_s15  ;;  %v1414_v59 = vpack.c.bf16 %v7541_v54, %v1389_v57 }
  0x71   : > { %1683 = vrot.lane.b32.xlu1 %v1364_v52, %s9771_s21  ;;  %v1129_v52 = vld [vmem:[%s7149_s24 + $0x1a] sm:$0xff] }
  0x72   : > { %1681 = vrot.lane.b32.xlu0 %v1363_v53, %s9771_s21  ;;  %v1223_v53 = vsel %vm7418_vm12, %v1127_v10, 0.0  ;;  %v1225_v19 = vsel %vm7374_vm9, %v1129_v52, 0.0  ;;  %v1098_v10 = vld [vmem:[%s7149_s24 + $0xa1] sm:$0xff]  ;;  %v1326_v62 = vsel %vm7418_vm12, %v1129_v52, 0.0  ;;  %vm9776_vm9 = vcmask 72704  }
  0x73   : > { %v1254_v28 = vpack.c.bf16 %v1223_v53, %v1126_v7  ;;  %v1342_v53 = vsel %vm7589_vm2, %v7560_v35, 0.0  ;;  %vm9778_vm12 = vcmask 121856  }
  0x75   : > { %1731 = vrot.lane.b32.xlu1 %v1414_v59, %s9825_s20  ;;  %v1241_v59 = vsel %vm7603_vm4, %v7560_v35, 0.0  ;;  %v1365_v35 = vpack.c.bf16 %v1342_v53, %v7578_v8 }
  0x76   : > { %1729 = vrot.lane.b32.xlu0 %v1413_v6, %s9825_s20  ;;  %v1128_v6 = vld [vmem:[%s7149_s24 + $0x12] sm:$0xff] }
  0x77   : > { %v1255_v9 = vpack.c.bf16 %v1225_v19, %v1128_v6  ;;  %v475_v19 = vadd.s32 168, %v7132_v1  ;;  %v1357_v16 = vpack.c.bf16 %v1326_v62, %v1128_v6 }
  0x79   : > { %1764 = vrot.lane.b32.xlu1 %v7567_v29, %s9769_s30 }
  0x7a   : > { %1762 = vrot.lane.b32.xlu0 %v1118_v22, %s9769_s30  ;;  %s9834_s30 = smov 9  }
  0x7d   : > { %1492 = vrot.lane.b32.xlu1 %v1110_v42, %s9821_s23  ;;  %v7639_v42 = vld [vmem:[%s7149_s24 + $0xa0] sm:$0xff] }
  0x7e   : > { %1810 = vrot.lane.b32.xlu0 %v1466_v43, %s9822_s22  ;;  %v1312_v43 = vpack.c.bf16 %v7541_v54, %v1288_v32  ;;  %v1290_v27 = vsel %vm7634_vm6, %v7639_v42, 0.0  ;;  %v637_v32 = vand.u32 15, %v475_v19 }
  0x7f   : > { %v1313_v15 = vpack.c.bf16 %v955_v12, %v1290_v27  ;;  %v7712_v27 = vld [vmem:[%s7149_s24 + $0xba] sm:$0xff] }
  0x80   : > { %vm7724_vm11 = vcmp.le.s32.totalorder %v637_v32, 14  ;;  %v7761_v32 = vld [vmem:[%s7149_s24 + $0xc0] sm:$0xff] }
  0x81   : > { %1812 = vrot.lane.b32.xlu1 %v1467_v61, %s9822_s22  ;;  %v1274_v61 = vsel %vm7327_vm7, %v7632_v33, 0.0  ;;  %vm1830_vm7 = vcmask 23552  }
  0x82   : > { %1508 = vrot.lane.b32.xlu0 %v1118_v22, %s9821_s23  ;;  %v1262_v22 = vpack.c.bf16 %v1239_v46, %v1142_v23  ;;  %v1263_v23 = vpack.c.bf16 %v1241_v59, %v7578_v8  ;;  %v1305_v54 = vpack.c.bf16 %v939_v45, %v1274_v61  ;;  %v7669_v46 = vpack.c.bf16 %v1099_v55, %v1098_v10  ;;  %v7685_v59 = vld [vmem:[%s7149_s24 + $0xa2] sm:$0xff]  ;;  %v7718_v55 = vld [vmem:[%s7149_s24 + $0xb8] sm:$0xff] }
  0x83   : > { %v1034_v8 = vsel %vm7205_vm3, %v7632_v33, 0.0  ;;  %v1375_v61 = vsel %vm7618_vm5, %v7632_v33, 0.0 }
  0x84   : > { %v1407_v33 = vpack.c.bf16 %v939_v45, %v1375_v61 }
  0x85   : > { %1510 = vrot.lane.b32.xlu1 %v7567_v29, %s9821_s23 }
  0x86   : > { %1494 = vrot.lane.b32.xlu0 %v1111_v51, %s9821_s23 }
  0x89   : > { %1556 = vrot.lane.b32.xlu1 %v1262_v22, %s9773_s16  ;;  %v7680_v22 = vld [vmem:[%s7149_s24 + $0xaa] sm:$0xff] }
  0x8a   : > { %1540 = vrot.lane.b32.xlu0 %v1254_v28, %s9773_s16  ;;  %v1445_v19 = vsel %vm7589_vm2, %v7680_v22, 0.0 }
  0x8d   : > { %1558 = vrot.lane.b32.xlu1 %v1263_v23, %s9773_s16 }
  0x8e   : > { %1542 = vrot.lane.b32.xlu0 %v1255_v9, %s9773_s16 }
  0x91   : > { %1604 = vrot.lane.b32.xlu1 %v1312_v43, %s9834_s30  ;;  %v7705_v43 = vld [vmem:[%s7149_s24 + $0xb0] sm:$0xff] }
  0x92   : > { %1588 = vrot.lane.b32.xlu0 %v1304_v37, %s9834_s30  ;;  %v1391_v37 = vsel %vm7548_vm1, %v7639_v42, 0.0  ;;  %v630_v42 = vand.u32 15, %v474_v50 }
  0x93   : > { %v7655_v14 = vpop.permute.xlu1 %1627  ;;  %v1415_v62 = vpack.c.bf16 %v955_v12, %v1391_v37  ;;  %v1447_v12 = vsel %vm7603_vm4, %v7712_v27, 0.0 }
  0x94   : > { %v7657_v34 = vpop.permute.xlu0 %1496  ;;  %vm7752_vm2 = vcmp.ge.s32.totalorder %v630_v42, 1 }
  0x95   : > { %1606 = vrot.lane.b32.xlu1 %v1313_v15, %s9834_s30  ;;  %v644_v15 = vand.u32 15, %v476_v58 }
  0x96   : > { %1590 = vrot.lane.b32.xlu0 %v1305_v54, %s9834_s30  ;;  %v1064_v54 = vpack.c.bf16 %v939_v45, %v1034_v8  ;;  %v1243_v45 = vsel %vm7724_vm11, %v7680_v22, 0.0  ;;  %v1100_v8 = vld [vmem:[%s7149_s24 + $0xb1] sm:$0xff] }
  0x97   : > { %v7663_v11 = vpop.permute.xlu1 %1544  ;;  %vm7748_vm1 = vcmp.ge.s32.totalorder %v644_v15, 1  ;;  %v7771_v15 = vld [vmem:[%s7149_s24 + $0xca] sm:$0xff] }
  0x98   : > { %v7665_v7 = vpop.permute.xlu0 %1498  ;;  %v1839_v26 = vsel %vm1830_vm7, %v1064_v54, %v7657_v34 }
  0x99   : > { %1637 = vrot.lane.b32.xlu1 %v7567_v29, %s9812_s15  ;;  %v477_v29 = vadd.s32 184, %v7132_v1  ;;  %v1885_v58 = vsel %vm1879_vm8, %v1839_v26, %v7663_v11  ;;  %v1842_v37 = vsel %vm1830_vm7, %v7366_v48, %v7665_v7  ;;  %v1294_v48 = vsel %vm7748_vm1, %v7761_v32, 0.0 }
  0x9a   : > { %1621 = vrot.lane.b32.xlu0 %v1111_v51, %s9812_s15  ;;  %v1344_v51 = vsel %vm7603_vm4, %v7680_v22, 0.0  ;;  %v1292_v7 = vsel %vm7752_vm2, %v7705_v43, 0.0 }
  0x9b   : > { %v7675_v20 = vpop.permute.xlu1 %1546  ;;  %v651_v9 = vand.u32 15, %v477_v29  ;;  %v1366_v6 = vpack.c.bf16 %v1344_v51, %v7685_v59  ;;  %v1393_v29 = vsel %vm7634_vm6, %v7705_v43, 0.0 }
  0x9c   : > { %v7682_v28 = vpop.permute.xlu0 %1625  ;;  %v1887_v11 = vsel %vm1879_vm8, %v1842_v37, %v7675_v20  ;;  %v7825_v37 = vld [vmem:[%s7149_s24 + $0xc8] sm:$0xff] }
  0x9d   : > { %1639 = vrot.lane.b32.xlu1 %v7669_v46, %s9812_s15  ;;  %vm7720_vm3 = vcmp.le.s32.totalorder %v651_v9, 14  ;;  %v1416_v9 = vpack.c.bf16 %v7718_v55, %v1393_v29  ;;  %v1346_v29 = vsel %vm7724_vm11, %v7712_v27, 0.0 }
  0x9e   : > { %1623 = vrot.lane.b32.xlu0 %v7174_v18, %s9812_s15  ;;  %v1348_v43 = vsel %vm7720_vm3, %v7771_v15, 0.0 }
  0x9f   : > { %v1595_v52 = vpop.permute.xlu1 %1594 }
  0xa0   : > { %v1593_v23 = vpop.permute.xlu0 %1592 }
  0xa1   : > { %1685 = vrot.lane.b32.xlu1 %v1365_v35, %s9771_s21  ;;  %v1918_v34 = vsel %vm9776_vm9, %v1885_v58, %v1593_v23  ;;  %v1920_v23 = vsel %vm9776_vm9, %v1887_v11, %v1595_v52  ;;  %v1103_v11 = vld [vmem:[%s7149_s24 + $0xc9] sm:$0xff] }
  0xa2   : > { %1669 = vrot.lane.b32.xlu0 %v1357_v16, %s9771_s21  ;;  %v1951_v54 = vsel %vm1945_vm10, %v1918_v34, %v7682_v28 }
  0xa3   : > { %v1676_v30 = vpop.permute.xlu1 %1675 }
  0xa4   : > { %v1674_v10 = vpop.permute.xlu0 %1673 }
  0xa5   : > { %1687 = vrot.lane.b32.xlu1 %v1366_v6, %s9771_s21  ;;  %v1101_v6 = vld [vmem:[%s7149_s24 + $0xb9] sm:$0xff]  ;;  %v1984_v42 = vsel %vm9778_vm12, %v1951_v54, %v1674_v10  ;;  %v1953_v10 = vsel %vm1945_vm10, %v1920_v23, %v7655_v14  ;;  %v1315_v54 = vpack.c.bf16 %v7825_v37, %v1294_v48 }
  0xa6   : > { %1671 = vrot.lane.b32.xlu0 %v7387_v56, %s9771_s21  ;;  %v1245_v56 = vsel %vm7720_vm3, %v7712_v27, 0.0  ;;  %v7790_v52 = vpack.c.bf16 %v1101_v6, %v1100_v8  ;;  %s9843_s21 = smov 21   ;;  %v1986_v26 = vsel %vm9778_vm12, %v1953_v10, %v1676_v30  ;;  %v1468_v27 = vpack.c.bf16 %v1445_v19, %v7685_v59 }
  0xa7   : > { %v1724_v35 = vpop.permute.xlu1 %1723 }
  0xa8   : > { %v1722_v16 = vpop.permute.xlu0 %1721  ;;  %v2019_v14 = vsel %vm2011_vm13, %v1986_v26, %v1724_v35  ;;  %v1148_v35 = vld [vmem:[%s7149_s24 + $0xb2] sm:$0xff] }
  0xa9   : > { %1733 = vrot.lane.b32.xlu1 %v1415_v62, %s9825_s20  ;;  %v2017_v20 = vsel %vm2011_vm13, %v1984_v42, %v1722_v16  ;;  %v1469_v19 = vpack.c.bf16 %v1447_v12, %v1148_v35 }
  0xaa   : > { %1717 = vrot.lane.b32.xlu0 %v1407_v33, %s9825_s20 }
  0xab   : > { %v1757_v50 = vpop.permute.xlu1 %1756 }
  0xac   : > { %v1755_v61 = vpop.permute.xlu0 %1754  ;;  %v2052_v58 = vsel %vm2044_vm14, %v2019_v14, %v1757_v50 }
  0xad   : > { %1735 = vrot.lane.b32.xlu1 %v1416_v9, %s9825_s20  ;;  %v2050_v62 = vsel %vm2044_vm14, %v2017_v20, %v1755_v61  ;;  %v1102_v61 = vld [vmem:[%s7149_s24 + $0xc1] sm:$0xff] }
  0xae   : > { %1719 = vrot.lane.b32.xlu0 %v7408_v17, %s9825_s20  ;;  %v7842_v20 = vld [vmem:[%s7149_s24 + $0xc2] sm:$0xff]  ;;  %v1122_v22 = vpack.c.bf16 %v1103_v11, %v1102_v61  ;;  %v1449_v11 = vsel %vm7724_vm11, %v7771_v15, 0.0 }
  0xaf   : > { %v1501_v28 = vpop.permute.xlu1 %1500 }
  0xb0   : > { %v1803_v33 = vpop.permute.xlu0 %1802 }
  0xb1   : > { %1766 = vrot.lane.b32.xlu1 %v7669_v46, %s9843_s21  ;;  %v2083_v17 = vsel %vm9777_vm15, %v2050_v62, %v1803_v33  ;;  %v7845_v62 = vld [vmem:[%s7149_s24 + $0xd0] sm:$0xff] }
  0xb2   : > { %6444 = vmatprep.mubr.msk.bf16.mxu1 %vm9775_vm0, %v2083_v17  ;;  %1750 = vrot.lane.b32.xlu0 %v7174_v18, %s9843_s21  ;;  %v1368_v17 = vpack.c.bf16 %v1348_v43, %v7842_v20 }
  0xb3   : > { %v1503_v16 = vpop.permute.xlu1 %1502 }
  0xb4   : > { %v1805_v9 = vpop.permute.xlu0 %1804  ;;  %v1848_v26 = vsel %vm1830_vm7, %v7430_v36, %v1503_v16 }
  0xb5   : > { %v2085_v34 = vsel %vm9777_vm15, %v2052_v58, %v1805_v9  ;;  %1768 = vrot.lane.b32.xlu1 %v7790_v52, %s9843_s21  ;;  %v1367_v58 = vpack.c.bf16 %v1346_v29, %v1148_v35 }
  0xb6   : > { %6445 = vmatmul.mubr.msk.bf16.vlgmr.msra.gmra.mrb[0].mxu1 %vm9775_vm0, %v2085_v34  ;;  %1752 = vrot.lane.b32.xlu0 %v7190_v25, %s9843_s21 }
  0xb7   : > { %v1551_v18 = vpop.permute.xlu1 %1550 }
  0xb8   : > { %v1549_v30 = vpop.permute.xlu0 %1548  ;;  %v1891_v43 = vsel %vm1879_vm8, %v1848_v26, %v1551_v18 }
  0xb9   : > { %1814 = vrot.lane.b32.xlu1 %v1468_v27, %s9822_s22 }
  0xba   : > { %1798 = vrot.lane.b32.xlu0 %v7436_v44, %s9822_s22  ;;  %v1265_v44 = vpack.c.bf16 %v1245_v56, %v1148_v35  ;;  %v1314_v56 = vpack.c.bf16 %v7718_v55, %v1292_v7  ;;  %v7854_v7 = vld [vmem:[%s7149_s24 + $0xd8] sm:$0xff] }
  0xbb   : > { %v1599_v50 = vpop.permute.xlu1 %1598  ;;  %v1105_v35 = vld [vmem:[%s7149_s24 + $0xd9] sm:$0xff] }
  0xbc   : > { %v1597_v8 = vpop.permute.xlu0 %1596  ;;  %v1924_v27 = vsel %vm9776_vm9, %v1891_v43, %v1599_v50  ;;  %v481_v50 = vadd.s32 216, %v7132_v1 }
  0xbd   : > { %1800 = vrot.lane.b32.xlu1 %v7444_v49, %s9822_s22  ;;  %v1264_v49 = vpack.c.bf16 %v1243_v45, %v7685_v59  ;;  %v1845_v59 = vsel %vm1830_vm7, %v7415_v31, %v1501_v28  ;;  %v1397_v31 = vsel %vm7748_vm1, %v7845_v62, 0.0  ;;  %v1395_v28 = vsel %vm7752_vm2, %v7761_v32, 0.0 }
  0xbe   : > { %1512 = vrot.lane.b32.xlu0 %v7669_v46, %s9821_s23  ;;  %v1889_v45 = vsel %vm1879_vm8, %v1845_v59, %v1549_v30  ;;  %v1417_v18 = vpack.c.bf16 %v7825_v37, %v1395_v28  ;;  %v1156_v28 = vld [vmem:[%s7149_s24 + $0xf2] sm:$0xff] }
  0xbf   : > { %v1632_v25 = vpop.permute.xlu1 %1631  ;;  %v1922_v33 = vsel %vm9776_vm9, %v1889_v45, %v1597_v8  ;;  %v1104_v8 = vld [vmem:[%s7149_s24 + $0xd1] sm:$0xff]  ;;  %v478_v45 = vadd.s32 192, %v7132_v1 }
  0xc0   : > { %v1630_v6 = vpop.permute.xlu0 %1629  ;;  %v1957_v36 = vsel %vm1945_vm10, %v1924_v27, %v1632_v25  ;;  %v7933_v27 = vld [vmem:[%s7149_s24 + $0xe0] sm:$0xff] }
  0xc1   : > { %1514 = vrot.lane.b32.xlu1 %v7790_v52, %s9821_s23  ;;  %v1955_v10 = vsel %vm1945_vm10, %v1922_v33, %v1630_v6  ;;  %v658_v26 = vand.u32 15, %v478_v45 }
  0xc2   : > { %1816 = vrot.lane.b32.xlu0 %v1469_v19, %s9822_s22 }
  0xc3   : > { %v1680_v46 = vpop.permute.xlu1 %1679 }
  0xc4   : > { %v1678_v12 = vpop.permute.xlu0 %1677  ;;  %v1990_v29 = vsel %vm9778_vm12, %v1957_v36, %v1680_v46 }
  0xc5   : > { %1562 = vrot.lane.b32.xlu1 %v1265_v44, %s9773_s16  ;;  %v1988_v14 = vsel %vm9778_vm12, %v1955_v10, %v1678_v12  ;;  %v7894_v12 = vpack.c.bf16 %v1105_v35, %v1104_v8  ;;  %v7944_v8 = vld [vmem:[%s7149_s24 + $0xe8] sm:$0xff] }
  0xc6   : > { %1560 = vrot.lane.b32.xlu0 %v1264_v49, %s9773_s16  ;;  %s9844_s16 = smov 15   ;;  %v479_v49 = vadd.s32 200, %v7132_v1  ;;  %v1106_v35 = vld [vmem:[%s7149_s24 + $0xe1] sm:$0xff] }
  0xc7   : > { %v1728_v23 = vpop.permute.xlu1 %1727 }
  0xc8   : > { %v1726_v42 = vpop.permute.xlu0 %1725  ;;  %v2023_v19 = vsel %vm2011_vm13, %v1990_v29, %v1728_v23  ;;  %v665_v59 = vand.u32 15, %v479_v49 }
  0xc9   : > { %1610 = vrot.lane.b32.xlu1 %v1315_v54, %s9834_s30  ;;  %v2021_v9 = vsel %vm2011_vm13, %v1988_v14, %v1726_v42  ;;  %v679_v54 = vand.u32 15, %v481_v50  ;;  %v1153_v42 = vld [vmem:[%s7149_s24 + $0xda] sm:$0xff]  ;;  %v1107_v50 = vld [vmem:[%s7149_s24 + $0xe9] sm:$0xff] }
  0xca   : > { %1608 = vrot.lane.b32.xlu0 %v1314_v56, %s9834_s30  ;;  %v480_v56 = vadd.s32 208, %v7132_v1  ;;  %v1451_v60 = vsel %vm7720_vm3, %v1153_v42, 0.0  ;;  %vm7917_vm11 = vcmp.le.s32.totalorder %v665_v59, 14  ;;  %v7962_v49 = vpack.c.bf16 %v1107_v50, %v1106_v35 }
  0xcb   : > { %v1761_v48 = vpop.permute.xlu1 %1760  ;;  %vm7913_vm4 = vcmp.le.s32.totalorder %v679_v54, 14  ;;  %v1247_v43 = vsel %vm7917_vm11, %v7771_v15, 0.0  ;;  %v1350_v45 = vsel %vm7917_vm11, %v1153_v42, 0.0 }
  0xcc   : > { %v1759_v55 = vpop.permute.xlu0 %1758  ;;  %v2056_v6 = vsel %vm2044_vm14, %v2023_v19, %v1761_v48  ;;  %v1470_v48 = vpack.c.bf16 %v1449_v11, %v7842_v20  ;;  %v1249_v53 = vsel %vm7913_vm4, %v1153_v42, 0.0  ;;  %v1266_v15 = vpack.c.bf16 %v1247_v43, %v7842_v20  ;;  %v7969_v11 = vld [vmem:[%s7149_s24 + $0xe2] sm:$0xff] }
  0xcd   : > { %1643 = vrot.lane.b32.xlu1 %v1122_v22, %s9812_s15  ;;  %v2054_v32 = vsel %vm2044_vm14, %v2021_v9, %v1759_v55  ;;  %v1152_v55 = vld [vmem:[%s7149_s24 + $0xd2] sm:$0xff] }
  0xce   : > { %1641 = vrot.lane.b32.xlu0 %v7790_v52, %s9812_s15  ;;  %v1418_v52 = vpack.c.bf16 %v7854_v7, %v1397_v31  ;;  %v1471_v14 = vpack.c.bf16 %v1451_v60, %v1152_v55 }
  0xcf   : > { %v7872_v34 = vpop.permute.xlu1 %1504 }
  0xd0   : > { %v1807_v30 = vpop.permute.xlu0 %1806 }
  0xd1   : > { %v2087_v16 = vsel %vm9777_vm15, %v2054_v32, %v1807_v30  ;;  %1691 = vrot.lane.b32.xlu1 %v1368_v17, %s9844_s16  ;;  %v672_v17 = vand.u32 15, %v480_v56  ;;  %v1267_v30 = vpack.c.bf16 %v1249_v53, %v1152_v55 }
  0xd2   : > { %6448 = vmatprep.mubr.msk.bf16.mxu1 %vm9775_vm0, %v2087_v16  ;;  %1689 = vrot.lane.b32.xlu0 %v1367_v58, %s9844_s16 }
  0xd3   : > { %v7888_v25 = vpop.permute.xlu1 %1506  ;;  %vm7928_vm3 = vcmp.ge.s32.totalorder %v672_v17, 1 }
  0xd4   : > { %v1809_v44 = vpop.permute.xlu0 %1808  ;;  %v1298_v36 = vsel %vm7928_vm3, %v7933_v27, 0.0 }
  0xd5   : > { %v2089_v46 = vsel %vm9777_vm15, %v2056_v6, %v1809_v44  ;;  %1739 = vrot.lane.b32.xlu1 %v1418_v52, %s9825_s20  ;;  %v7959_v6 = vld [vmem:[%s7149_s24 + $0xea] sm:$0xff] }
  0xd6   : > { %6449 = vmatmul.mubr.msk.bf16.gmra.mrb[4].mxu1 %vm9775_vm0, %v2089_v46  ;;  %1737 = vrot.lane.b32.xlu0 %v1417_v18, %s9825_s20  ;;  %vm7935_vm0 = vcmp.ge.s32.totalorder %v658_v26, 1  ;;  %v1317_v18 = vpack.c.bf16 %v7944_v8, %v1298_v36  ;;  %v1851_v46 = vsel %vm1830_vm7, %v7465_v40, %v7872_v34  ;;  %v1352_v54 = vsel %vm7913_vm4, %v7959_v6, 0.0 }
  0xd7   : > { %v7898_v61 = vpop.permute.xlu1 %1554  ;;  %v1296_v52 = vsel %vm7935_vm0, %v7845_v62, 0.0  ;;  %v1854_v34 = vsel %vm1830_vm7, %v7483_v41, %v7888_v25 }
  0xd8   : > { %v1553_v23 = vpop.permute.xlu0 %1552  ;;  %v1316_v20 = vpack.c.bf16 %v7854_v7, %v1296_v52  ;;  %v1895_v26 = vsel %vm1879_vm8, %v1854_v34, %v7898_v61  ;;  %v1399_v61 = vsel %vm7935_vm0, %v7933_v27, 0.0  ;;  %v482_v34 = vadd.s32 224, %v7132_v1 }
  0xd9   : > { %1772 = vrot.lane.b32.xlu1 %v7894_v12, %s9843_s21  ;;  %v1893_v56 = vsel %vm1879_vm8, %v1851_v46, %v1553_v23  ;;  %v1370_v23 = vpack.c.bf16 %v1352_v54, %v7969_v11  ;;  %v1419_v52 = vpack.c.bf16 %v7944_v8, %v1399_v61  ;;  %v1453_v54 = vsel %vm7917_vm11, %v7959_v6, 0.0 }
  0xda   : > { %1770 = vrot.lane.b32.xlu0 %v1122_v22, %s9843_s21 }
  0xdb   : > { %v1603_v33 = vpop.permute.xlu1 %1602 }
  0xdc   : > { %v1601_v31 = vpop.permute.xlu0 %1600  ;;  %v1928_v25 = vsel %vm9776_vm9, %v1895_v26, %v1603_v33 }
  0xdd   : > { %1516 = vrot.lane.b32.xlu1 %v1122_v22, %s9821_s23  ;;  %v1926_v60 = vsel %vm9776_vm9, %v1893_v56, %v1601_v31  ;;  %v1369_v31 = vpack.c.bf16 %v1350_v45, %v1152_v55  ;;  %vm9854_vm9 = vcmask 220160  }
  0xde   : > { %1818 = vrot.lane.b32.xlu0 %v1470_v48, %s9822_s22  ;;  %v7978_v48 = vld [vmem:[%s7149_s24 + $0xf0] sm:$0xff] }
  0xdf   : > { %v1636_v58 = vpop.permute.xlu1 %1635  ;;  %v1401_v41 = vsel %vm7928_vm3, %v7978_v48, 0.0 }
  0xe0   : > { %v1634_v32 = vpop.permute.xlu0 %1633 }
  0xe1   : > { %1518 = vrot.lane.b32.xlu1 %v7894_v12, %s9821_s23  ;;  %v1959_v17 = vsel %vm1945_vm10, %v1926_v60, %v1634_v32  ;;  %v1157_v60 = vld [vmem:[%s7149_s24 + $0xfa] sm:$0xff] }
  0xe2   : > { %1820 = vrot.lane.b32.xlu0 %v1471_v14, %s9822_s22  ;;  %v7994_v14 = vld [vmem:[%s7149_s24 + $0xf8] sm:$0xff]  ;;  %v1455_v26 = vsel %vm7913_vm4, %v1157_v60, 0.0 }
  0xe3   : > { %v1684_v16 = vpop.permute.xlu1 %1683  ;;  %v1420_v33 = vpack.c.bf16 %v7994_v14, %v1401_v41  ;;  %v1473_v10 = vpack.c.bf16 %v1455_v26, %v1156_v28 }
  0xe4   : > { %v1682_v29 = vpop.permute.xlu0 %1681 }
  0xe5   : > { %1566 = vrot.lane.b32.xlu1 %v1267_v30, %s9853_s0  ;;  %v1992_v42 = vsel %vm9778_vm12, %v1959_v17, %v1682_v29  ;;  %v1109_v29 = vld [vmem:[%s7149_s24 + $0xf9] sm:$0xff]  ;;  %v1472_v17 = vpack.c.bf16 %v1453_v54, %v7969_v11  ;;  %v1324_v54 = vld [vmem:[%s7149_s24 + $0x10a] sm:$0xff] }
  0xe6   : > { %1564 = vrot.lane.b32.xlu0 %v1266_v15, %s9853_s0 }
  0xe7   : > { %v1732_v19 = vpop.permute.xlu1 %1731 }
  0xe8   : > { %v1730_v44 = vpop.permute.xlu0 %1729 }
  0xe9   : > { %1614 = vrot.lane.b32.xlu1 %v1317_v18, %s9834_s30  ;;  %v2025_v53 = vsel %vm2011_vm13, %v1992_v42, %v1730_v44  ;;  %v935_v42 = vld [vmem:[%s7149_s24 + $0x8] sm:$0xff] }
  0xea   : > { %1612 = vrot.lane.b32.xlu0 %v1316_v20, %s9834_s30  ;;  %v485_v20 = vadd.s32 248, %v7132_v1 }
  0xeb   : > { %v1765_v59 = vpop.permute.xlu1 %1764 }
  0xec   : > { %v1763_v40 = vpop.permute.xlu0 %1762  ;;  %v707_v56 = vand.u32 15, %v485_v20  ;;  %v1320_v20 = vld [vmem:[%s7149_s24 + $0x101] sm:$0xff] }
  0xed   : > { %1647 = vrot.lane.b32.xlu1 %v7962_v49, %s9812_s15  ;;  %v2058_v55 = vsel %vm2044_vm14, %v2025_v53, %v1763_v40  ;;  %v686_v53 = vand.u32 15, %v482_v34 }
  0xee   : > { %1645 = vrot.lane.b32.xlu0 %v7894_v12, %s9812_s15  ;;  %v1961_v12 = vsel %vm1945_vm10, %v1928_v25, %v1636_v58  ;;  %v1108_v58 = vld [vmem:[%s7149_s24 + $0xf1] sm:$0xff]  ;;  %vm8046_vm11 = vcmp.le.s32.totalorder %v707_v56, 14 }
  0xef   : > { %v8001_v43 = vpop.permute.xlu1 %1492  ;;  %v1994_v30 = vsel %vm9778_vm12, %v1961_v12, %v1684_v16  ;;  %v1125_v44 = vpack.c.bf16 %v1109_v29, %v1108_v58  ;;  %v1253_v61 = vsel %vm8046_vm11, %v1157_v60, 0.0  ;;  %v1356_v34 = vsel %vm8046_vm11, %v1324_v54, 0.0 }
  0xf0   : > { %v1811_v32 = vpop.permute.xlu0 %1810  ;;  %v2027_v36 = vsel %vm2011_vm13, %v1994_v30, %v1732_v19  ;;  %v483_v19 = vadd.s32 232, %v7132_v1  ;;  %v1270_v30 = vld [vmem:[%s7149_s24 + $0x100] sm:$0xff] }
  0xf1   : > { %v2091_v15 = vsel %vm9777_vm15, %v2058_v55, %v1811_v32  ;;  %1695 = vrot.lane.b32.xlu1 %v1370_v23, %s9844_s16  ;;  %v2060_v18 = vsel %vm2044_vm14, %v2027_v36, %v1765_v59  ;;  %v484_v59 = vadd.s32 240, %v7132_v1  ;;  %v1271_v36 = vld [vmem:[%s7149_s24 + $0x108] sm:$0xff] }
  0xf2   : > { %6452 = vmatprep.mubr.msk.bf16.mxu1 %vm9854_vm9, %v2091_v15  ;;  %1693 = vrot.lane.b32.xlu0 %v1369_v31, %s9844_s16  ;;  %v693_v40 = vand.u32 15, %v483_v19 }
  0xf3   : > { %v1813_v16 = vpop.permute.xlu1 %1812  ;;  %v700_v31 = vand.u32 15, %v484_v59 }
  0xf4   : > { %v2093_v35 = vsel %vm9777_vm15, %v2060_v18, %v1813_v16  ;;  %v8021_v50 = vpop.permute.xlu0 %1508  ;;  %vm8073_vm15 = vcmp.ge.s32.totalorder %v686_v53, 1 }
  0xf5   : > { %1743 = vrot.lane.b32.xlu1 %v1420_v33, %s9825_s20  ;;  %6453 = vmatmul.mubr.msk.bf16.gmra.mrb[8].mxu1 %vm9854_vm9, %v2093_v35  ;;  %vm8052_vm9 = vcmp.le.s32.totalorder %v693_v40, 14  ;;  %vm8066_vm4 = vcmp.ge.s32.totalorder %v700_v31, 1  ;;  %v1269_v33 = vpack.c.bf16 %v1253_v61, %v1156_v28  ;;  %v1300_v29 = vsel %vm8073_vm15, %v7978_v48, 0.0  ;;  %v1321_v35 = vld [vmem:[%s7149_s24 + $0x109] sm:$0xff] }
  0xf6   : > { %1741 = vrot.lane.b32.xlu0 %v1419_v52, %s9825_s20  ;;  %v1251_v55 = vsel %vm8052_vm9, %v7959_v6, 0.0  ;;  %v1302_v52 = vsel %vm8066_vm4, %v1270_v30, 0.0  ;;  %v1322_v59 = vpack.c.bf16 %v1321_v35, %v1320_v20  ;;  %v1323_v40 = vld [vmem:[%s7149_s24 + $0x102] sm:$0xff]  ;;  %v1354_v26 = vsel %vm8052_vm9, %v1157_v60, 0.0  ;;  %v1373_v31 = vld [vmem:[%s7149_s24 + $0x110] sm:$0xff]  ;;  %v1427_v20 = vld [vmem:[%s7149_s24 + $0x11a] sm:$0xff] }
  0xf7   : > { %v8027_v46 = vpop.permute.xlu1 %1510  ;;  %v1268_v6 = vpack.c.bf16 %v1251_v55, %v7969_v11  ;;  %v1319_v16 = vpack.c.bf16 %v1271_v36, %v1302_v52  ;;  %v1318_v11 = vpack.c.bf16 %v7994_v14, %v1300_v29  ;;  %v1371_v61 = vpack.c.bf16 %v1354_v26, %v1156_v28  ;;  %v1374_v55 = vld [vmem:[%s7149_s24 + $0x118] sm:$0xff] }
  0xf8   : > { %v8033_v45 = vpop.permute.xlu0 %1494  ;;  %v1403_v60 = vsel %vm8073_vm15, %v1270_v30, 0.0  ;;  %v1426_v30 = vld [vmem:[%s7149_s24 + $0x112] sm:$0xff]  ;;  %v1459_v26 = vsel %vm8046_vm11, %v1427_v20, 0.0 }
  0xf9   : > { %1776 = vrot.lane.b32.xlu1 %v1125_v44, %s9843_s21 }
  0xfa   : > { %1774 = vrot.lane.b32.xlu0 %v7962_v49, %s9843_s21 }
  0xfb   : > { %v8041_v23 = vpop.permute.xlu1 %1556 }
  0xfc   : > { %v8050_v41 = vpop.permute.xlu0 %1540 }
  0xfd   : > { %1520 = vrot.lane.b32.xlu1 %v7962_v49, %s9821_s23 }
  0xfe   : > { %1822 = vrot.lane.b32.xlu0 %v1472_v17, %s9822_s22 }
  0xff   : > { %v8061_v12 = vpop.permute.xlu1 %1558 }
 0x100   : > { %v8071_v15 = vpop.permute.xlu0 %1542 }
 0x101   : > { %1522 = vrot.lane.b32.xlu1 %v1125_v44, %s9821_s23  ;;  %s7007_s23 = smov 80  }
 0x102   : > { %1824 = vrot.lane.b32.xlu0 %v1473_v10, %s9822_s22  ;;  %v1372_v10 = vpack.c.bf16 %v1356_v34, %v1323_v40 }
 0x103   : > { %v8083_v58 = vpop.permute.xlu1 %1604 }
 0x104   : > { %v8088_v18 = vpop.permute.xlu0 %1588 }
 0x105   : > { %1570 = vrot.lane.b32.xlu1 %v1269_v33, %s9853_s0  ;;  %v1405_v33 = vsel %vm8066_vm4, %v1373_v31, 0.0 }
 0x106   : > { %1568 = vrot.lane.b32.xlu0 %v1268_v6, %s9853_s0  ;;  %v1422_v29 = vpack.c.bf16 %v1374_v55, %v1405_v33  ;;  %s9781_s0 = smov 64  }
 0x107   : > { %v8095_v19 = vpop.permute.xlu1 %1606 }
 0x108   : > { %v8098_v56 = vpop.permute.xlu0 %1590 }
 0x109   : > { %1618 = vrot.lane.b32.xlu1 %v1319_v16, %s9834_s30  ;;  %v1421_v16 = vpack.c.bf16 %v1271_v36, %v1403_v60  ;;  %v1457_v36 = vsel %vm8052_vm9, %v1324_v54, 0.0  ;;  %v934_v60 = vld [vmem:[%s7149_s24] sm:$0xff]  ;;  %vm9866_vm9 = vcmask 195584  }
 0x10a   : > { %1616 = vrot.lane.b32.xlu0 %v1318_v11, %s9834_s30  ;;  %v1423_v11 = vld [vmem:[%s7149_s24 + $0x111] sm:$0xff]  ;;  %v1474_v55 = vpack.c.bf16 %v1457_v36, %v1323_v40  ;;  %v1030_v25 = vsel %vm7618_vm5, %v934_v60, 0.0  ;;  %vm9863_vm5 = vcmask 72704   ;;  %s7005_s30 = smov 112  }
 0x10b   : > { %v1638_v17 = vpop.permute.xlu1 %1637  ;;  %vm9864_vm11 = vmmov %vm9863_vm5  ;;  %v6920_v60 = vld [vmem:[%s7149_s24 + $0x98] sm:$0xff] }
 0x10c   : > { %v1622_v53 = vpop.permute.xlu0 %1621 }
 0x10d   : > { %1651 = vrot.lane.b32.xlu1 %v1322_v59, %s9812_s15 }
 0x10e   : > { %1649 = vrot.lane.b32.xlu0 %v1125_v44, %s9812_s15  ;;  %v1424_v44 = vld [vmem:[%s7149_s24 + $0x119] sm:$0xff]  ;;  %s9779_s15 = smov 96  }
 0x10f   : > { %v8113_v6 = vpop.permute.xlu1 %1639  ;;  %v1425_v34 = vpack.c.bf16 %v1424_v44, %v1423_v11  ;;  %v1062_v11 = vpack.c.bf16 %v935_v42, %v1030_v25 }
 0x110   : > { %v1624_v52 = vpop.permute.xlu0 %1623 }
 0x111   : > { %1699 = vrot.lane.b32.xlu1 %v1372_v10, %s9844_s16  ;;  %v1833_v40 = vsel %vm1830_vm7, %v1062_v11, %v8001_v43 }
 0x112   : > { %1697 = vrot.lane.b32.xlu0 %v1371_v61, %s9844_s16  ;;  %v1475_v61 = vpack.c.bf16 %v1459_v26, %v1426_v30  ;;  %v6919_v30 = vld [vmem:[%s7149_s24 + $0x90] sm:$0xff]  ;;  %v1881_v26 = vsel %vm1879_vm8, %v1833_v40, %v8050_v41 }
 0x113   : > { %v1686_v28 = vpop.permute.xlu1 %1685  ;;  %v1048_v21 = vsel %vm7634_vm6, %v6919_v30, 0.0  ;;  %vm9865_vm6 = vmmov %vm9863_vm5 }
 0x114   : > { %v1670_v35 = vpop.permute.xlu0 %1669  ;;  %v1071_v41 = vpack.c.bf16 %v6920_v60, %v1048_v21  ;;  %v6923_v60 = vld [vmem:[%s7149_s24 + $0xb0] sm:$0xff] }
 0x115   : > { %1747 = vrot.lane.b32.xlu1 %v1422_v29, %s9825_s20 }
 0x116   : > { %1745 = vrot.lane.b32.xlu0 %v1421_v16, %s9825_s20  ;;  %s7010_s20 = smov [#allocation10]  }
 0x117   : > { %v1688_v31 = vpop.permute.xlu1 %1687 }
 0x118   : > { %v1672_v10 = vpop.permute.xlu0 %1671 }
 0x119   : > { %1780 = vrot.lane.b32.xlu1 %v1425_v34, %s9843_s21 }
 0x11a   : > { %1778 = vrot.lane.b32.xlu0 %v1322_v59, %s9843_s21  ;;  %v1857_v59 = vsel %vm1830_vm7, %v7562_v24, %v8021_v50  ;;  %v1914_v24 = vsel %vm9864_vm11, %v1881_v26, %v8088_v18  ;;  %vm9868_vm11 = vcmask 220160   ;;  %s7003_s21 = smov 32  }
 0x11b   : > { %v1734_v33 = vpop.permute.xlu1 %1733  ;;  %v1897_v34 = vsel %vm1879_vm8, %v1857_v59, %v8041_v23  ;;  %v1836_v23 = vsel %vm1830_vm7, %v7346_v38, %v8033_v45  ;;  %v1947_v39 = vsel %vm1945_vm10, %v1914_v24, %v1622_v53 }
 0x11c   : > { %v1718_v29 = vpop.permute.xlu0 %1717  ;;  %v1930_v36 = vsel %vm9863_vm5, %v1897_v34, %v8083_v58  ;;  %v1883_v58 = vsel %vm1879_vm8, %v1836_v23, %v8071_v15  ;;  %v1980_v42 = vsel %vm9778_vm12, %v1947_v39, %v1670_v35  ;;  %vm9867_vm5 = vmmov %vm9866_vm9 }
 0x11d   : > { %1828 = vrot.lane.b32.xlu1 %v1475_v61, %s9822_s22  ;;  %v1963_v50 = vsel %vm1945_vm10, %v1930_v36, %v1638_v17  ;;  %v1916_v17 = vsel %vm9865_vm6, %v1883_v58, %v8098_v56  ;;  %v2013_v25 = vsel %vm2011_vm13, %v1980_v42, %v1718_v29  ;;  %v1860_v56 = vsel %vm1830_vm7, %v1071_v41, %v8027_v46  ;;  %vm9869_vm6 = vmmov %vm9868_vm11 }
 0x11e   : > { %1826 = vrot.lane.b32.xlu0 %v1474_v55, %s9822_s22  ;;  %v1996_v55 = vsel %vm9778_vm12, %v1963_v50, %v1686_v28  ;;  %v1949_v53 = vsel %vm1945_vm10, %v1916_v17, %v1624_v52  ;;  %v1899_v52 = vsel %vm1879_vm8, %v1860_v56, %v8061_v12  ;;  %v1052_v41 = vsel %vm7748_vm1, %v6923_v60, 0.0  ;;  %v6924_v17 = vld [vmem:[%s7149_s24 + $0xb8] sm:$0xff]  ;;  %s7004_s22 = smov 48  }
 0x11f   : > { %v1736_v54 = vpop.permute.xlu1 %1735  ;;  %v2029_v18 = vsel %vm2011_vm13, %v1996_v55, %v1734_v33  ;;  %v1982_v15 = vsel %vm9778_vm12, %v1949_v53, %v1672_v10  ;;  %vm9871_vm12 = vmmov %vm9867_vm5 }
 0x120   : > { %v1720_v16 = vpop.permute.xlu0 %1719 }
 0x121   : > { %v2015_v33 = vsel %vm2011_vm13, %v1982_v15, %v1720_v16 }
 0x123   : > { %v1767_v44 = vpop.permute.xlu1 %1766 }
 0x124   : > { %v1751_v20 = vpop.permute.xlu0 %1750  ;;  %v2062_v38 = vsel %vm2044_vm14, %v2029_v18, %v1767_v44 }
 0x125   : > { %v2046_v28 = vsel %vm2044_vm14, %v2013_v25, %v1751_v20  ;;  %v1073_v25 = vpack.c.bf16 %v6924_v17, %v1052_v41 }
 0x127   : > { %v1769_v61 = vpop.permute.xlu1 %1768 }
 0x128   : > { %v1753_v43 = vpop.permute.xlu0 %1752 }
 0x129   : > { %v2048_v29 = vsel %vm2044_vm14, %v2015_v33, %v1753_v43 }
 0x12b   : > { %v1815_v45 = vpop.permute.xlu1 %1814 }
 0x12c   : > { %v2095_v11 = vsel %vm9866_vm9, %v2062_v38, %v1815_v45  ;;  %v1799_v59 = vpop.permute.xlu0 %1798  ;;  %vm9870_vm9 = vcmask 72704  }
 0x12d   : > { %v2079_v35 = vsel %vm9867_vm5, %v2046_v28, %v1799_v59  ;;  %6456 = vmatprep.mubr.msk.bf16.mxu1 %vm9868_vm11, %v2095_v11  ;;  %v1932_v10 = vsel %vm9870_vm9, %v1899_v52, %v8095_v19  ;;  %vm9872_vm5 = vmmov %vm9869_vm6  ;;  %vm9873_vm11 = vcmask 121856  }
 0x12e   : > { %6440 = vmatprep.mubr.msk.bf16.mxu0 %vm9869_vm6, %v2079_v35  ;;  %v1965_v46 = vsel %vm1945_vm10, %v1932_v10, %v8113_v6  ;;  %vm9874_vm6 = vmmov %vm9871_vm12 }
 0x12f   : > { %v1801_v44 = vpop.permute.xlu1 %1800  ;;  %v1998_v16 = vsel %vm9873_vm11, %v1965_v46, %v1688_v31  ;;  %v6921_v31 = vld [vmem:[%s7149_s24 + $0xa0] sm:$0xff]  ;;  %vm9877_vm1 = vmmov %vm9870_vm9 }
 0x130   : > { %v2081_v20 = vsel %vm9871_vm12, %v2048_v29, %v1801_v44  ;;  %v1513_v40 = vpop.permute.xlu0 %1512  ;;  %v2031_v34 = vsel %vm2011_vm13, %v1998_v16, %v1736_v54  ;;  %vm9875_vm12 = vmmov %vm9872_vm5  ;;  %v1050_v54 = vsel %vm7752_vm2, %v6921_v31, 0.0 }
 0x131   : > { %6441 = vmatmul.mubr.msk.bf16.vlgmr.msra.gmra.mrb[0].mxu0 %vm9872_vm5, %v2081_v20  ;;  %v2064_v30 = vsel %vm2044_vm14, %v2031_v34, %v1769_v61  ;;  %v6922_v61 = vld [vmem:[%s7149_s24 + $0xa8] sm:$0xff]  ;;  %vm9876_vm2 = vmmov %vm9873_vm11 }
 0x132   : > { %v1072_v55 = vpack.c.bf16 %v6922_v61, %v1050_v54  ;;  %vm9878_vm5 = vmmov %vm9874_vm6  ;;  %v1056_v54 = vsel %vm7928_vm3, %v7845_v62, 0.0 }
 0x133   : > { %v1515_v12 = vpop.permute.xlu1 %1514  ;;  %vm9879_vm11 = vmmov %vm9876_vm2 }
 0x134   : > { %v1817_v21 = vpop.permute.xlu0 %1816  ;;  %v1863_v18 = vsel %vm1830_vm7, %v1072_v55, %v1513_v40  ;;  %v1866_v11 = vsel %vm1830_vm7, %v1073_v25, %v1515_v12  ;;  %v1075_v55 = vpack.c.bf16 %v7854_v7, %v1056_v54  ;;  %vm9885_vm3 = vmmov %vm9877_vm1 }
 0x135   : > { %v2097_v19 = vsel %vm9874_vm6, %v2064_v30, %v1817_v21  ;;  %vm9880_vm6 = vmmov %vm9875_vm12 }
 0x136   : > { %6457 = vmatmul.mubr.msk.bf16.gmra.mrb[12].mxu1 %vm9875_vm12, %v2097_v19  ;;  %vm9881_vm12 = vmmov %vm9878_vm5 }
 0x137   : > { %v1563_v26 = vpop.permute.xlu1 %1562 }
 0x138   : > { %v1561_v36 = vpop.permute.xlu0 %1560  ;;  %v1903_v51 = vsel %vm1879_vm8, %v1866_v11, %v1563_v26 }
 0x139   : > { %v1901_v38 = vsel %vm1879_vm8, %v1863_v18, %v1561_v36 }
 0x13b   : > { %v1611_v6 = vpop.permute.xlu1 %1610 }
 0x13c   : > { %v1609_v24 = vpop.permute.xlu0 %1608  ;;  %v1936_v56 = vsel %vm9877_vm1, %v1903_v51, %v1611_v6  ;;  %v6925_v6 = vld [vmem:[%s7149_s24 + $0xc0] sm:$0xff]  ;;  %s7002_s24 = smov 16  }
 0x13d   : > { %v1934_v57 = vsel %vm9870_vm9, %v1901_v38, %v1609_v24  ;;  %vm9882_vm9 = vmmov %vm9880_vm6  ;;  %v1054_v24 = vsel %vm7935_vm0, %v6925_v6, 0.0 }
 0x13e   : > { %v1074_v31 = vpack.c.bf16 %v7825_v37, %v1054_v24  ;;  %vm9884_vm0 = vmmov %vm9879_vm11 }
 0x13f   : > { %v1644_v50 = vpop.permute.xlu1 %1643 }
 0x140   : > { %v1642_v43 = vpop.permute.xlu0 %1641  ;;  %v1969_v29 = vsel %vm1945_vm10, %v1936_v56, %v1644_v50 }
 0x141   : > { %v1967_v28 = vsel %vm1945_vm10, %v1934_v57, %v1642_v43 }
 0x143   : > { %v1692_v23 = vpop.permute.xlu1 %1691 }
 0x144   : > { %v1690_v39 = vpop.permute.xlu0 %1689  ;;  %v2002_v10 = vsel %vm9879_vm11, %v1969_v29, %v1692_v23  ;;  %vm9888_vm11 = vmmov %vm9880_vm6 }
 0x145   : > { %v2000_v59 = vsel %vm9876_vm2, %v1967_v28, %v1690_v39  ;;  %vm9883_vm2 = vmmov %vm9877_vm1 }
 0x146   : > { %vm9886_vm1 = vmmov %vm9878_vm5 }
 0x147   : > { %v1740_v58 = vpop.permute.xlu1 %1739 }
 0x148   : > { %v1738_v42 = vpop.permute.xlu0 %1737  ;;  %v2035_v20 = vsel %vm2011_vm13, %v2002_v10, %v1740_v58  ;;  %v1060_v10 = vsel %vm8066_vm4, %v7978_v48, 0.0  ;;  %vm439_vm4 = vcmask 130048  }
 0x149   : > { %v2033_v15 = vsel %vm2011_vm13, %v2000_v59, %v1738_v42 }
 0x14b   : > { %v1773_v45 = vpop.permute.xlu1 %1772 }
 0x14c   : > { %v1771_v53 = vpop.permute.xlu0 %1770  ;;  %v2068_v46 = vsel %vm2044_vm14, %v2035_v20, %v1773_v45  ;;  %v1058_v20 = vsel %vm8073_vm15, %v7933_v27, 0.0  ;;  %vm9892_vm15 = vmmov %vm9883_vm2 }
 0x14d   : > { %v2066_v33 = vsel %vm2044_vm14, %v2033_v15, %v1771_v53 }
 0x14f   : > { %v1517_v35 = vpop.permute.xlu1 %1516 }
 0x150   : > { %v1819_v52 = vpop.permute.xlu0 %1818  ;;  %v1869_v61 = vsel %vm1830_vm7, %v1074_v31, %v1517_v35 }
 0x151   : > { %v2099_v44 = vsel %vm9878_vm5, %v2066_v33, %v1819_v52  ;;  %vm9887_vm5 = vmmov %vm9884_vm0 }
 0x152   : > { %6460 = vmatprep.mubr.msk.bf16.mxu1 %vm9880_vm6, %v2099_v44  ;;  %vm9889_vm6 = vmmov %vm9886_vm1 }
 0x153   : > { %v1519_v40 = vpop.permute.xlu1 %1518 }
 0x154   : > { %v1821_v16 = vpop.permute.xlu0 %1820  ;;  %v1872_v37 = vsel %vm1830_vm7, %v1075_v55, %v1519_v40 }
 0x155   : > { %v2101_v34 = vsel %vm9881_vm12, %v2068_v46, %v1821_v16  ;;  %vm9890_vm12 = vmmov %vm9882_vm9  ;;  %v1077_v16 = vpack.c.bf16 %v7994_v14, %v1060_v10 }
 0x156   : > { %6461 = vmatmul.mubr.msk.bf16.gmra.mrb[16].mxu1 %vm9882_vm9, %v2101_v34  ;;  %v1076_v34 = vpack.c.bf16 %v7944_v8, %v1058_v20  ;;  %vm9893_vm9 = vmmov %vm9883_vm2 }
 0x157   : > { %v1567_v12 = vpop.permute.xlu1 %1566 }
 0x158   : > { %v1565_v30 = vpop.permute.xlu0 %1564  ;;  %v1907_v62 = vsel %vm1879_vm8, %v1872_v37, %v1567_v12 }
 0x159   : > { %v1905_v60 = vsel %vm1879_vm8, %v1869_v61, %v1565_v30  ;;  %v8255_v30 = vld [vmem:[%s9891_s2] ss:$0 sm:$0xff] }
 0x15b   : > { %v1615_v21 = vpop.permute.xlu1 %1614 }
 0x15c   : > { %v1613_v19 = vpop.permute.xlu0 %1612  ;;  %v1940_v25 = vsel %vm9885_vm3, %v1907_v62, %v1615_v21  ;;  %vm441_vm3 = vcmask 122880  }
 0x15d   : > { %v1938_v22 = vsel %vm9883_vm2, %v1905_v60, %v1613_v19  ;;  %vm9897_vm2 = vmmov %vm9886_vm1 }
 0x15f   : > { %v1648_v26 = vpop.permute.xlu1 %1647 }
 0x160   : > { %v1646_v36 = vpop.permute.xlu0 %1645  ;;  %v1973_v45 = vsel %vm1945_vm10, %v1940_v25, %v1648_v26 }
 0x161   : > { %v1971_v42 = vsel %vm1945_vm10, %v1938_v22, %v1646_v36 }
 0x163   : > { %v1696_v50 = vpop.permute.xlu1 %1695 }
 0x164   : > { %v1694_v43 = vpop.permute.xlu0 %1693  ;;  %v2006_v53 = vsel %vm9887_vm5, %v1973_v45, %v1696_v50 }
 0x165   : > { %v2004_v18 = vsel %vm9884_vm0, %v1971_v42, %v1694_v43 }
 0x167   : > { %v1744_v23 = vpop.permute.xlu1 %1743 }
 0x168   : > { %v1742_v39 = vpop.permute.xlu0 %1741  ;;  %v2039_v28 = vsel %vm2011_vm13, %v2006_v53, %v1744_v23 }
 0x169   : > { %v2037_v9 = vsel %vm2011_vm13, %v2004_v18, %v1742_v39 }
 0x16b   : > { %v1777_v41 = vpop.permute.xlu1 %1776 }
 0x16c   : > { %v1775_v58 = vpop.permute.xlu0 %1774  ;;  %v2072_v59 = vsel %vm2044_vm14, %v2039_v28, %v1777_v41 }
 0x16d   : > { %v2070_v7 = vsel %vm2044_vm14, %v2037_v9, %v1775_v58 }
 0x16f   : > { %v1521_v17 = vpop.permute.xlu1 %1520 }
 0x170   : > { %v1823_v38 = vpop.permute.xlu0 %1822  ;;  %v1875_v19 = vsel %vm1830_vm7, %v1076_v34, %v1521_v17 }
 0x171   : > { %v2103_v57 = vsel %vm9886_vm1, %v2070_v7, %v1823_v38 }
 0x172   : > { %6464 = vmatprep.mubr.msk.bf16.mxu1 %vm9888_vm11, %v2103_v57 }
 0x173   : > { %v1523_v11 = vpop.permute.xlu1 %1522 }
 0x174   : > { %v1825_v51 = vpop.permute.xlu0 %1824  ;;  %v1878_v32 = vsel %vm1830_vm7, %v1077_v16, %v1523_v11  ;;  %vm9894_vm7 = vmmov %vm9884_vm0 }
 0x175   : > { %v2105_v15 = vsel %vm9889_vm6, %v2072_v59, %v1825_v51  ;;  %v6999_v51 = vmov 0.0  }
 0x176   : > { %6465 = vmatmul.mubr.msk.bf16.gmra.mrb[20].mxu1 %vm9890_vm12, %v2105_v15  ;;  %440 = vst.msk [vmem:[#allocation2] sm:$0xff] %vm439_vm4, %v6999_v51  ;;  %443 = vst.msk [vmem:[#allocation2 + $0x49] sm:$0xff] %vm439_vm4, %v6999_v51  ;;  %6472 = vmatprep.subr.bf16.mxu0 %v6999_v51 }
 0x177   : > { %v1571_v35 = vpop.permute.xlu1 %1570  ;;  %442 = vst.msk [vmem:[#allocation2 + $0x8] sm:$0x1] %vm441_vm3, %v6999_v51  ;;  %444 = vst.msk [vmem:[#allocation2 + $0x51] sm:$0x1] %vm441_vm3, %v6999_v51 }
 0x178   : > { %v1569_v56 = vpop.permute.xlu0 %1568  ;;  %v1911_v27 = vsel %vm1879_vm8, %v1878_v32, %v1571_v35  ;;  %451 = vst [vmem:[#allocation5] sm:$0x7] %v6999_v51  ;;  %452 = vst [vmem:[#allocation5 + $0x7] sm:$0x7] %v6999_v51 }
 0x179   : > { %v1909_v14 = vsel %vm1879_vm8, %v1875_v19, %v1569_v56  ;;  %vm9895_vm8 = vmmov %vm9884_vm0 }
 0x17a   : > { %vm9898_vm0 = vmmov %vm9888_vm11 }
 0x17b   : > { %v1619_v33 = vpop.permute.xlu1 %1618 }
 0x17c   : > { %v1617_v52 = vpop.permute.xlu0 %1616  ;;  %v1944_v8 = vsel %vm9892_vm15, %v1911_v27, %v1619_v33 }
 0x17d   : > { %v1942_v50 = vsel %vm9893_vm9, %v1909_v14, %v1617_v52 }
 0x17f   : > { %v1652_v29 = vpop.permute.xlu1 %1651 }
 0x180   : > { %v1650_v44 = vpop.permute.xlu0 %1649  ;;  %v1977_v43 = vsel %vm1945_vm10, %v1944_v8, %v1652_v29 }
 0x181   : > { %v1975_v61 = vsel %vm1945_vm10, %v1942_v50, %v1650_v44  ;;  %vm9896_vm10 = vmmov %vm9886_vm1 }
 0x183   : > { %v1700_v40 = vpop.permute.xlu1 %1699 }
 0x184   : > { %v1698_v46 = vpop.permute.xlu0 %1697  ;;  %v2010_v55 = vsel %vm9894_vm7, %v1977_v43, %v1700_v40 }
 0x185   : > { %v2008_v22 = vsel %vm9895_vm8, %v1975_v61, %v1698_v46 }
 0x187   : > { %v1748_v12 = vpop.permute.xlu1 %1747 }
 0x188   : > { %v1746_v21 = vpop.permute.xlu0 %1745  ;;  %v2043_v58 = vsel %vm2011_vm13, %v2010_v55, %v1748_v12 }
 0x189   : > { %v6446_v48 = vpop.f32.mrb[0].mxu1  ;;  %v2041_v37 = vsel %vm2011_vm13, %v2008_v22, %v1746_v21  ;;  %vm9899_vm13 = vmmov %vm9898_vm0 }
 0x18a   : > { %v2231_v49 = vadd.f32 %v6446_v48, %v8255_v30  ;;  %v2222_v26 = vpop.f32.mrb[1].mxu1 }
 0x18b   : > { %v2223_v36 = vadd.f32 %v8255_v30, %v2222_v26  ;;  %v6447_v6 = vpop.f32.mrb[2].mxu1  ;;  %v1781_v24 = vpop.permute.xlu1 %1780 }
 0x18c   : > { %v2339_v31 = vmax.f32 %v2231_v49, 0.0  ;;  %v2234_v54 = vadd.f32 %v6447_v6, %v8255_v30  ;;  %v2225_v23 = vpop.f32.mrb[3].mxu1  ;;  %v1779_v39 = vpop.permute.xlu0 %1778  ;;  %v2076_v18 = vsel %vm2044_vm14, %v2043_v58, %v1781_v24 }
 0x18d   : > { %v2337_v60 = vmax.f32 %v2223_v36, 0.0  ;;  %v2226_v41 = vadd.f32 %v8255_v30, %v2225_v23  ;;  %v2074_v17 = vsel %vm2044_vm14, %v2041_v37, %v1779_v39  ;;  %v2496_v37 = vand.u32 7, %v7132_v1 }
 0x18e   : > { %2371 = vst.msk [vmem:[#allocation6 + $0x30] sm:$0xff] %vm439_vm4, %v2339_v31  ;;  %v2340_v42 = vmax.f32 %v2234_v54, 0.0 }
 0x18f   : > { %2369 = vst.msk [vmem:[#allocation6 + $0x20] sm:$0xff] %vm439_vm4, %v2337_v60  ;;  %v2338_v62 = vmax.f32 %v2226_v41, 0.0  ;;  %v1829_v9 = vpop.permute.xlu1 %1828  ;;  %vm8317_vm14 = vcmp.le.s32.totalorder %v2496_v37, 6  ;;  %vm8411_vm6 = vcmp.ge.s32.totalorder %v2496_v37, 1 }
 0x190   : > { %2372 = vst.msk [vmem:[#allocation6 + $0x38] sm:$0xff] %vm439_vm4, %v2340_v42  ;;  %v2109_v25 = vsel %vm9896_vm10, %v2076_v18, %v1829_v9  ;;  %v1827_v7 = vpop.permute.xlu0 %1826  ;;  %v2510_v18 = vand.u32 7, %v7287_v63  ;;  %v2503_v9 = vand.u32 7, %v7363_v47 }
 0x191   : > { %2370 = vst.msk [vmem:[#allocation6 + $0x28] sm:$0xff] %vm439_vm4, %v2338_v62  ;;  %v2107_v38 = vsel %vm9897_vm2, %v2074_v17, %v1827_v7  ;;  %v2517_v62 = vand.u32 7, %v7307_v13 }
 0x192   : > { %6468 = vmatprep.mubr.msk.bf16.mxu1 %vm9898_vm0, %v2107_v38  ;;  %vm8325_vm1 = vcmp.le.s32.totalorder %v2510_v18, 6  ;;  %vm8337_vm11 = vcmp.le.s32.totalorder %v2503_v9, 6  ;;  %vm8418_vm12 = vcmp.ge.s32.totalorder %v2503_v9, 1  ;;  %vm8446_vm9 = vcmp.ge.s32.totalorder %v2510_v18, 1 }
 0x193   : > { %6469 = vmatmul.mubr.msk.bf16.gmra.mrb[24].mxu1 %vm9899_vm13, %v2109_v25  ;;  %vm8331_vm5 = vcmp.le.s32.totalorder %v2517_v62, 6  ;;  %vm8428_vm15 = vcmp.ge.s32.totalorder %v2517_v62, 1  ;;  %v6584_v62 = vld [vmem:[%s9748_s3 + $0x40] sm:$0xff]  }
 0x197   : > { %v2413_v45 = vld [vmem:[#allocation6 + $0x30] ss:$2 sm:$0xff]  ;;  %v2415_v57 = vld [vmem:[#allocation6 + $0x31] ss:$2 sm:$0xff] }
 0x198   : > { %v2417_v53 = vmax.f32 %v2413_v45, %v2415_v57  ;;  %v2409_v28 = vld [vmem:[#allocation6 + $0x20] ss:$2 sm:$0xff]  ;;  %v2411_v11 = vld [vmem:[#allocation6 + $0x21] ss:$2 sm:$0xff] }
 0x199   : > { %v2416_v59 = vmax.f32 %v2409_v28, %v2411_v11 }
 0x19b   : > { %v2418_v15 = vmax.f32 %v2416_v59, %v2417_v53 }
 0x19d   : > { %2419 = vst.msk [vmem:[#allocation2 + $0x11] sm:$0xff] %vm439_vm4, %v2418_v15 }
 0x1a9   : > { %v6450_v35 = vpop.f32.mrb[4].mxu1 }
 0x1aa   : > { %v2247_v56 = vadd.f32 %v6450_v35, %v8255_v30  ;;  %v2238_v33 = vpop.f32.mrb[5].mxu1 }
 0x1ab   : > { %v2239_v52 = vadd.f32 %v8255_v30, %v2238_v33  ;;  %v6451_v29 = vpop.f32.mrb[6].mxu1  ;;  %v7000_v33 = vmov 0  }
 0x1ac   : > { %v2343_v44 = vmax.f32 %v2247_v56, 0.0  ;;  %v2250_v10 = vadd.f32 %v6451_v29, %v8255_v30  ;;  %v2241_v20 = vpop.f32.mrb[7].mxu1  ;;  %v6576_v56 = vld [vmem:[%s9748_s3] sm:$0xff]   ;;  %2989 = vmatprep.subr.bf16.mxu1 %v7000_v33 }
 0x1ad   : > { %v2341_v40 = vmax.f32 %v2239_v52, 0.0  ;;  %v2242_v46 = vadd.f32 %v8255_v30, %v2241_v20  ;;  %2990 = vmatpush1.bf16.msra.mxu1 %v6576_v56 }
 0x1ae   : > { %2375 = vst.msk [vmem:[#allocation6 + $0x50] sm:$0xff] %vm439_vm4, %v2343_v44  ;;  %v2344_v16 = vmax.f32 %v2250_v10, 0.0  ;;  %2991 = vmatprep.subr.bf16.mxu1 %v7000_v33  ;;  %v6577_v10 = vld [vmem:[%s9748_s3 + $0x8] sm:$0xff]  }
 0x1af   : > { %2373 = vst.msk [vmem:[#allocation6 + $0x40] sm:$0xff] %vm439_vm4, %v2341_v40  ;;  %v2342_v34 = vmax.f32 %v2242_v46, 0.0 }
 0x1b0   : > { %2376 = vst.msk [vmem:[#allocation6 + $0x58] sm:$0xff] %vm439_vm4, %v2344_v16 }
 0x1b1   : > { %2374 = vst.msk [vmem:[#allocation6 + $0x48] sm:$0xff] %vm439_vm4, %v2342_v34  ;;  %2992 = vmatpush1.bf16.msra.mxu1 %v6577_v10  ;;  %v2640_v10 = vld [vmem:[#allocation2 + $0x1] sm:$0xff] }
 0x1b2   : > { %2993 = vmatprep.subr.bf16.mxu1 %v7000_v33 }
 0x1b7   : > { %v2425_v12 = vld [vmem:[#allocation6 + $0x50] ss:$2 sm:$0xff]  ;;  %v2427_v21 = vld [vmem:[#allocation6 + $0x51] ss:$2 sm:$0xff] }
 0x1b8   : > { %v2429_v32 = vmax.f32 %v2425_v12, %v2427_v21  ;;  %v2421_v48 = vld [vmem:[#allocation6 + $0x40] ss:$2 sm:$0xff]  ;;  %v2423_v19 = vld [vmem:[#allocation6 + $0x41] ss:$2 sm:$0xff] }
 0x1b9   : > { %v2428_v27 = vmax.f32 %v2421_v48, %v2423_v19  ;;  %v6578_v19 = vld [vmem:[%s9748_s3 + $0x10] sm:$0xff]  }
 0x1ba   : > { %2994 = vmatpush1.bf16.msra.mxu1 %v6578_v19 }
 0x1bb   : > { %v2430_v49 = vmax.f32 %v2428_v27, %v2429_v32  ;;  %2995 = vmatprep.subr.bf16.mxu1 %v7000_v33 }
 0x1bd   : > { %2431 = vst.msk [vmem:[#allocation2 + $0x19] sm:$0xff] %vm439_vm4, %v2430_v49 }
 0x1c4   : > { %v8321_v25 = vld [vmem:[#allocation2 + $0x12] sm:$0xff] }
 0x1c5   : > { %v2735_v53 = vsel %vm8317_vm14, %v8321_v25, 0.0  ;;  %v2678_v11 = vsel %vm8325_vm1, %v8321_v25, 0.0  ;;  %v8424_v37 = vld [vmem:[#allocation2 + $0x18] sm:$0xff]  ;;  %v2708_v17 = vsel %vm8337_vm11, %v8321_v25, 0.0 }
 0x1c6   : > { %v2691_v45 = vsel %vm8446_vm9, %v8424_v37, 0.0 }
 0x1c8   : > { %v6454_v26 = vpop.f32.mrb[8].mxu1 }
 0x1c9   : > { %v2263_v14 = vadd.f32 %v6454_v26, %v8255_v30  ;;  %v2254_v8 = vpop.f32.mrb[9].mxu1 }
 0x1ca   : > { %v2255_v36 = vadd.f32 %v8255_v30, %v2254_v8  ;;  %v6455_v6 = vpop.f32.mrb[10].mxu1 }
 0x1cb   : > { %v2347_v24 = vmax.f32 %v2263_v14, 0.0  ;;  %v2266_v50 = vadd.f32 %v6455_v6, %v8255_v30  ;;  %v2257_v43 = vpop.f32.mrb[11].mxu1 }
 0x1cc   : > { %v2345_v31 = vmax.f32 %v2255_v36, 0.0  ;;  %v2258_v54 = vadd.f32 %v8255_v30, %v2257_v43 }
 0x1cd   : > { %2379 = vst.msk [vmem:[#allocation6 + $0x70] sm:$0xff] %vm439_vm4, %v2347_v24  ;;  %v2348_v23 = vmax.f32 %v2266_v50, 0.0 }
 0x1ce   : > { %2377 = vst.msk [vmem:[#allocation6 + $0x60] sm:$0xff] %vm439_vm4, %v2345_v31  ;;  %v2346_v39 = vmax.f32 %v2258_v54, 0.0  ;;  %v6579_v31 = vld [vmem:[%s9748_s3 + $0x18] sm:$0xff]  }
 0x1cf   : > { %2380 = vst.msk [vmem:[#allocation6 + $0x78] sm:$0xff] %vm439_vm4, %v2348_v23  ;;  %2996 = vmatpush1.bf16.msra.mxu1 %v6579_v31 }
 0x1d0   : > { %2378 = vst.msk [vmem:[#allocation6 + $0x68] sm:$0xff] %vm439_vm4, %v2346_v39  ;;  %v6580_v39 = vld [vmem:[%s9748_s3 + $0x20] sm:$0xff]   ;;  %2997 = vmatprep.subr.bf16.mxu1 %v7000_v33 }
 0x1d3   : > { %2998 = vmatpush1.bf16.msra.mxu1 %v6580_v39 }
 0x1d4   : > { %2999 = vmatprep.subr.bf16.mxu1 %v7000_v33 }
 0x1d6   : > { %v2437_v61 = vld [vmem:[#allocation6 + $0x70] ss:$2 sm:$0xff]  ;;  %v2439_v55 = vld [vmem:[#allocation6 + $0x71] ss:$2 sm:$0xff] }
 0x1d7   : > { %v2441_v60 = vmax.f32 %v2437_v61, %v2439_v55  ;;  %v2433_v41 = vld [vmem:[#allocation6 + $0x60] ss:$2 sm:$0xff]  ;;  %v2435_v22 = vld [vmem:[#allocation6 + $0x61] ss:$2 sm:$0xff] }
 0x1d8   : > { %v2440_v58 = vmax.f32 %v2433_v41, %v2435_v22 }
 0x1da   : > { %v2442_v42 = vmax.f32 %v2440_v58, %v2441_v60 }
 0x1dc   : > { %2443 = vst.msk [vmem:[#allocation2 + $0x21] sm:$0xff] %vm439_vm4, %v2442_v42  ;;  %v6581_v42 = vld [vmem:[%s9748_s3 + $0x28] sm:$0xff]  }
 0x1dd   : > { %3000 = vmatpush1.bf16.msra.mxu1 %v6581_v42 }
 0x1de   : > { %3001 = vmatprep.subr.bf16.mxu1 %v7000_v33 }
 0x1e3   : > { %v8341_v57 = vld [vmem:[#allocation2 + $0x1a] sm:$0xff] }
 0x1e4   : > { %v2736_v28 = vsel %vm8337_vm11, %v8341_v57, 0.0  ;;  %v2679_v59 = vsel %vm8331_vm5, %v8341_v57, 0.0  ;;  %v8464_v31 = vld [vmem:[#allocation2 + $0x20] sm:$0xff] }
 0x1e5   : > { %v2743_v15 = vpack.c.bf16 %v2736_v28, %v2735_v53  ;;  %v8355_v35 = vpack.c.bf16 %v2679_v59, %v2678_v11 }
 0x1e7   : > { %5965 = vmatprep.mubr.msk.bf16.mxu1 %vm439_vm4, %v2743_v15 }
 0x204   : > { %v6442_v52 = vpop.f32.mrb[0].mxu0 }
 0x205   : > { %v2215_v29 = vadd.f32 %v6442_v52, %v8255_v30  ;;  %v2206_v44 = vpop.f32.mrb[1].mxu0 }
 0x206   : > { %v2207_v20 = vadd.f32 %v8255_v30, %v2206_v44  ;;  %v6443_v40 = vpop.f32.mrb[2].mxu0 }
 0x207   : > { %v2335_v46 = vmax.f32 %v2215_v29, 0.0  ;;  %v2218_v16 = vadd.f32 %v6443_v40, %v8255_v30  ;;  %v2209_v34 = vpop.f32.mrb[3].mxu0  ;;  %v6582_v29 = vld [vmem:[%s9748_s3 + $0x30] sm:$0xff]   ;;  %v2531_v40 = vand.u32 7, %v7135_v2 }
 0x208   : > { %v2333_v12 = vmax.f32 %v2207_v20, 0.0  ;;  %v2210_v21 = vadd.f32 %v8255_v30, %v2209_v34  ;;  %3002 = vmatpush1.bf16.msra.mxu1 %v6582_v29  ;;  %v6583_v20 = vld [vmem:[%s9748_s3 + $0x38] sm:$0xff]   ;;  %v2524_v34 = vand.u32 7, %v7144_v5 }
 0x209   : > { %2367 = vst.msk [vmem:[#allocation6 + $0x10] sm:$0xff] %vm439_vm4, %v2335_v46  ;;  %v2336_v32 = vmax.f32 %v2218_v16, 0.0  ;;  %v6458_v48 = vpop.f32.mrb[12].mxu1  ;;  %3003 = vmatprep.subr.bf16.mxu1 %v7000_v33  ;;  %v2642_v46 = vld [vmem:[#allocation2 + $0x11] sm:$0xff]  ;;  %vm8470_vm8 = vcmp.ge.s32.totalorder %v2531_v40, 1  ;;  %vm8543_vm2 = vcmp.le.s32.totalorder %v2531_v40, 6 }
 0x20a   : > { %2365 = vst.msk [vmem:[#allocation6] sm:$0xff] %vm439_vm4, %v2333_v12  ;;  %v2334_v27 = vmax.f32 %v2210_v21, 0.0  ;;  %v2279_v49 = vadd.f32 %v6458_v48, %v8255_v30  ;;  %v2270_v26 = vpop.f32.mrb[13].mxu1  ;;  %vm8455_vm7 = vcmp.ge.s32.totalorder %v2524_v34, 1  ;;  %vm8537_vm10 = vcmp.le.s32.totalorder %v2524_v34, 6 }
 0x20b   : > { %2368 = vst.msk [vmem:[#allocation6 + $0x18] sm:$0xff] %vm439_vm4, %v2336_v32  ;;  %v2271_v14 = vadd.f32 %v8255_v30, %v2270_v26  ;;  %v6459_v8 = vpop.f32.mrb[14].mxu1 }
 0x20c   : > { %2366 = vst.msk [vmem:[#allocation6 + $0x8] sm:$0xff] %vm439_vm4, %v2334_v27  ;;  %v2351_v36 = vmax.f32 %v2279_v49, 0.0  ;;  %v2282_v6 = vadd.f32 %v6459_v8, %v8255_v30  ;;  %v2273_v24 = vpop.f32.mrb[15].mxu1  ;;  %3004 = vmatpush1.bf16.msra.mxu1 %v6583_v20 }
 0x20d   : > { %v2349_v50 = vmax.f32 %v2271_v14, 0.0  ;;  %v2274_v43 = vadd.f32 %v8255_v30, %v2273_v24  ;;  %3005 = vmatprep.subr.bf16.mxu1 %v7000_v33 }
 0x20e   : > { %2383 = vst.msk [vmem:[#allocation6 + $0x90] sm:$0xff] %vm439_vm4, %v2351_v36  ;;  %v2352_v54 = vmax.f32 %v2282_v6, 0.0 }
 0x20f   : > { %2381 = vst.msk [vmem:[#allocation6 + $0x80] sm:$0xff] %vm439_vm4, %v2349_v50  ;;  %v2350_v23 = vmax.f32 %v2274_v43, 0.0  ;;  %v2631_v50 = vsel %vm8428_vm15, %v8424_v37, 0.0 }
 0x210   : > { %2384 = vst.msk [vmem:[#allocation6 + $0x98] sm:$0xff] %vm439_vm4, %v2352_v54  ;;  %3006 = vmatpush1.bf16.msra.mxu1 %v6584_v62 }
 0x211   : > { %2382 = vst.msk [vmem:[#allocation6 + $0x88] sm:$0xff] %vm439_vm4, %v2350_v23 }
 0x212   : > { %v2401_v61 = vld [vmem:[#allocation6 + $0x10] ss:$2 sm:$0xff]  ;;  %v2403_v55 = vld [vmem:[#allocation6 + $0x11] ss:$2 sm:$0xff] }
 0x213   : > { %v2405_v60 = vmax.f32 %v2401_v61, %v2403_v55  ;;  %v2397_v41 = vld [vmem:[#allocation6] ss:$2 sm:$0xff]  ;;  %v2399_v22 = vld [vmem:[#allocation6 + $0x1] ss:$2 sm:$0xff]  ;;  %v2643_v61 = vld [vmem:[#allocation2 + $0x19] sm:$0xff]  ;;  %v2632_v55 = vsel %vm8455_vm7, %v8464_v31, 0.0 }
 0x214   : > { %v2404_v58 = vmax.f32 %v2397_v41, %v2399_v22  ;;  %v2649_v41 = vpack.c.bf16 %v2643_v61, %v2642_v46 }
 0x216   : > { %v2406_v53 = vmax.f32 %v2404_v58, %v2405_v60 }
 0x217   : > { %v2449_v28 = vld [vmem:[#allocation6 + $0x90] ss:$2 sm:$0xff]  ;;  %v2451_v11 = vld [vmem:[#allocation6 + $0x91] ss:$2 sm:$0xff] }
 0x218   : > { %2407 = vst.msk [vmem:[#allocation2 + $0x9] sm:$0xff] %vm439_vm4, %v2406_v53  ;;  %v2453_v59 = vmax.f32 %v2449_v28, %v2451_v11  ;;  %v2445_v15 = vld [vmem:[#allocation6 + $0x80] ss:$2 sm:$0xff]  ;;  %v2447_v56 = vld [vmem:[#allocation6 + $0x81] ss:$2 sm:$0xff] }
 0x219   : > { %v2452_v52 = vmax.f32 %v2445_v15, %v2447_v56  ;;  %v2721_v56 = vsel %vm8418_vm12, %v8424_v37, 0.0 }
 0x21b   : > { %v2454_v44 = vmax.f32 %v2452_v52, %v2453_v59 }
 0x21d   : > { %2455 = vst.msk [vmem:[#allocation2 + $0x29] sm:$0xff] %vm439_vm4, %v2454_v44 }
 0x21f   : > { %v2641_v12 = vld [vmem:[#allocation2 + $0x9] sm:$0xff] }
 0x220   : > { %v2652_v21 = vld [vmem:[#allocation2 + $0x2] sm:$0xff]  ;;  %v2653_v32 = vld [vmem:[#allocation2 + $0xa] sm:$0xff]  ;;  %v2702_v48 = vpack.c.bf16 %v2642_v46, %v2641_v12  ;;  %v2648_v19 = vpack.c.bf16 %v2641_v12, %v2640_v10 }
 0x221   : > { %v8422_v49 = vld [vmem:[#allocation2 + $0x8] sm:$0xff]  ;;  %v2606_v26 = vld [vmem:[#allocation2 + $0x10] sm:$0xff]  ;;  %v2676_v8 = vsel %vm8317_vm14, %v2652_v21, 0.0  ;;  %v2677_v9 = vsel %vm8337_vm11, %v2653_v32, 0.0  ;;  %v2707_v53 = vsel %vm8317_vm14, %v2653_v32, 0.0  ;;  %v2692_v21 = vsel %vm8428_vm15, %v8464_v31, 0.0 }
 0x222   : > { %v2689_v36 = vsel %vm8411_vm6, %v8422_v49, 0.0  ;;  %v2690_v6 = vsel %vm8418_vm12, %v2606_v26, 0.0  ;;  %2787 = vrot.lane.b32.xlu1 %v2702_v48, %s9781_s0  ;;  %2751 = vrot.lane.b32.xlu0 %v2648_v19, %s7002_s24  ;;  %v2630_v63 = vsel %vm8446_vm9, %v2606_v26, 0.0  ;;  %v2684_v18 = vpack.c.bf16 %v2677_v9, %v2676_v8  ;;  %v2644_v32 = vld [vmem:[#allocation2 + $0x21] sm:$0xff] }
 0x223   : > { %v2697_v43 = vpack.c.bf16 %v2690_v6, %v2689_v36  ;;  %v8474_v39 = vpack.c.bf16 %v2631_v50, %v2630_v63  ;;  %v2720_v42 = vsel %vm8411_vm6, %v2606_v26, 0.0  ;;  %v2715_v20 = vpack.c.bf16 %v2708_v17, %v2707_v53 }
 0x224   : > { %v8466_v54 = vld [vmem:[#allocation2 + $0x28] sm:$0xff]  ;;  %v2728_v10 = vpack.c.bf16 %v2721_v56, %v2720_v42  ;;  %v2698_v19 = vpack.c.bf16 %v2692_v21, %v2691_v45  ;;  %v2703_v26 = vpack.c.bf16 %v2644_v32, %v2643_v61  ;;  %v2709_v50 = vsel %vm8325_vm1, %v8341_v57, 0.0 }
 0x225   : > { %v2633_v60 = vsel %vm8470_vm8, %v8466_v54, 0.0  ;;  %v2645_v8 = vld [vmem:[#allocation2 + $0x29] sm:$0xff]  ;;  %v2538_v57 = vand.u32 7, %v7141_v4  ;;  %v2693_v53 = vsel %vm8455_vm7, %v8466_v54, 0.0  ;;  %vm2858_vm11 = vcmask 523264  }
 0x226   : > { %2763 = vrot.lane.b32.xlu1 %v2684_v18, %s7003_s21  ;;  %2775 = vrot.lane.b32.xlu0 %v2697_v43, %s7004_s22  ;;  %v8484_v22 = vpack.c.bf16 %v2633_v60, %v2632_v55  ;;  %v2656_v9 = vld [vmem:[#allocation2 + $0x22] sm:$0xff]  ;;  %v2650_v36 = vpack.c.bf16 %v2645_v8, %v2644_v32  ;;  %v2723_v60 = vsel %vm8428_vm15, %v8466_v54, 0.0  ;;  %vm2876_vm15 = vcmask 785408  }
 0x227   : > { %v2710_v6 = vsel %vm8331_vm5, %v2656_v9, 0.0  ;;  %vm8554_vm0 = vcmp.ge.s32.totalorder %v2538_v57, 1  ;;  %v2680_v40 = vsel %vm8537_vm10, %v2656_v9, 0.0  ;;  %vm8633_vm14 = vcmp.le.s32.totalorder %v2538_v57, 6 }
 0x228   : > { %v2716_v61 = vpack.c.bf16 %v2710_v6, %v2709_v50 }
 0x229   : > { %v6462_v58 = vpop.f32.mrb[16].mxu1 }
 0x22a   : > { %v2295_v28 = vadd.f32 %v6462_v58, %v8255_v30  ;;  %v2286_v11 = vpop.f32.mrb[17].mxu1  ;;  %2753 = vrot.lane.b32.xlu1 %v2649_v41, %s7002_s24  ;;  %2820 = vrot.lane.b32.xlu0 %v2649_v41, %s7005_s30  ;;  %v2722_v41 = vsel %vm8446_vm9, %v8464_v31, 0.0  ;;  %vm445_vm9 = vcmask 258048  }
 0x22b   : > { %v2287_v59 = vadd.f32 %v8255_v30, %v2286_v11  ;;  %v6463_v15 = vpop.f32.mrb[18].mxu1  ;;  %v2729_v58 = vpack.c.bf16 %v2723_v60, %v2722_v41  ;;  %446 = vst.msk [vmem:[#allocation3] sm:$0x1f] %vm445_vm9, %v6999_v51  ;;  %447 = vst.msk [vmem:[#allocation3 + $0x15] sm:$0x1f] %vm445_vm9, %v6999_v51 }
 0x22c   : > { %v2355_v52 = vmax.f32 %v2295_v28, 0.0  ;;  %v2298_v29 = vadd.f32 %v6463_v15, %v8255_v30  ;;  %v2289_v44 = vpop.f32.mrb[19].mxu1  ;;  %v2737_v15 = vsel %vm8325_vm1, %v2656_v9, 0.0  ;;  %vm2840_vm1 = vcmask 261120  }
 0x22d   : > { %v2353_v46 = vmax.f32 %v2287_v59, 0.0  ;;  %v2290_v12 = vadd.f32 %v8255_v30, %v2289_v44 }
 0x22e   : > { %2387 = vst.msk [vmem:[#allocation6 + $0xb0] sm:$0xff] %vm439_vm4, %v2355_v52  ;;  %v2356_v48 = vmax.f32 %v2298_v29, 0.0  ;;  %2811 = vrot.lane.b32.xlu1 %v2728_v10, %s9779_s15  ;;  %2799 = vrot.lane.b32.xlu0 %v2715_v20, %s7007_s23 }
 0x22f   : > { %2385 = vst.msk [vmem:[#allocation6 + $0xa0] sm:$0xff] %vm439_vm4, %v2353_v46  ;;  %v2354_v25 = vmax.f32 %v2290_v12, 0.0 }
 0x230   : > { %2388 = vst.msk [vmem:[#allocation6 + $0xb8] sm:$0xff] %vm439_vm4, %v2356_v48 }
 0x231   : > { %2386 = vst.msk [vmem:[#allocation6 + $0xa8] sm:$0xff] %vm439_vm4, %v2354_v25 }
 0x232   : > { %2777 = vrot.lane.b32.xlu1 %v2698_v19, %s7004_s22  ;;  %2789 = vrot.lane.b32.xlu0 %v2703_v26, %s9781_s0 }
 0x236   : > { %2822 = vrot.lane.b32.xlu1 %v2650_v36, %s7005_s30  ;;  %2765 = vrot.lane.b32.xlu0 %v8355_v35, %s7003_s21 }
 0x237   : > { %v2461_v37 = vld [vmem:[#allocation6 + $0xb0] ss:$2 sm:$0xff]  ;;  %v2463_v62 = vld [vmem:[#allocation6 + $0xb1] ss:$2 sm:$0xff] }
 0x238   : > { %v2465_v63 = vmax.f32 %v2461_v37, %v2463_v62  ;;  %v2457_v18 = vld [vmem:[#allocation6 + $0xa0] ss:$2 sm:$0xff]  ;;  %v2459_v43 = vld [vmem:[#allocation6 + $0xa1] ss:$2 sm:$0xff]  ;;  %v2545_v37 = vand.u32 7, %v7138_v3 }
 0x239   : > { %v2464_v55 = vmax.f32 %v2457_v18, %v2459_v43  ;;  %v2732_v18 = vld [vmem:[#allocation2 + $0x49] sm:$0xff] }
 0x23a   : > { %2801 = vrot.lane.b32.xlu1 %v2716_v61, %s7007_s23  ;;  %2755 = vrot.lane.b32.xlu0 %v2650_v36, %s7002_s24  ;;  %vm8589_vm13 = vcmp.ge.s32.totalorder %v2545_v37, 1  ;;  %vm8623_vm3 = vcmp.le.s32.totalorder %v2545_v37, 6 }
 0x23b   : > { %v2466_v35 = vmax.f32 %v2464_v55, %v2465_v63 }
 0x23d   : > { %2467 = vst.msk [vmem:[#allocation2 + $0x31] sm:$0xff] %vm439_vm4, %v2466_v35 }
 0x23e   : > { %2813 = vrot.lane.b32.xlu0 %v2729_v58, %s9779_s15 }
 0x244   : > { %v2646_v13 = vld [vmem:[#allocation2 + $0x31] sm:$0xff] }
 0x245   : > { %v8547_v31 = vld [vmem:[#allocation2 + $0x30] sm:$0xff]  ;;  %v2704_v34 = vpack.c.bf16 %v2646_v13, %v2645_v8 }
 0x246   : > { %v2657_v28 = vld [vmem:[#allocation2 + $0x2a] sm:$0xff]  ;;  %v2694_v2 = vsel %vm8470_vm8, %v8547_v31, 0.0  ;;  %v2634_v52 = vsel %vm8554_vm0, %v8547_v31, 0.0  ;;  %v2724_v23 = vsel %vm8455_vm7, %v8547_v31, 0.0  ;;  %vm3080_vm7 = vcmask 257024  }
 0x247   : > { %v2681_v11 = vsel %vm8543_vm2, %v2657_v28, 0.0  ;;  %v2699_v59 = vpack.c.bf16 %v2694_v2, %v2693_v53  ;;  %v2738_v56 = vsel %vm8331_vm5, %v2657_v28, 0.0  ;;  %2791 = vrot.lane.b32.xlu1 %v2704_v34, %s9781_s0  ;;  %v2711_v61 = vsel %vm8537_vm10, %v2657_v28, 0.0 }
 0x248   : > { %v2686_v54 = vpack.c.bf16 %v2681_v11, %v2680_v40  ;;  %v8570_v17 = vpack.c.bf16 %v2738_v56, %v2737_v15  ;;  %vm2849_vm5 = vcmask 392192  }
 0x249   : > { %2779 = vrot.lane.b32.xlu0 %v2699_v59, %s7004_s22  ;;  %v6466_v29 = vpop.f32.mrb[20].mxu1 }
 0x24a   : > { %v2311_v44 = vadd.f32 %v6466_v29, %v8255_v30  ;;  %v2302_v10 = vpop.f32.mrb[21].mxu1 }
 0x24b   : > { %v2303_v7 = vadd.f32 %v8255_v30, %v2302_v10  ;;  %v6467_v20 = vpop.f32.mrb[22].mxu1  ;;  %2767 = vrot.lane.b32.xlu1 %v2686_v54, %s7003_s21 }
 0x24c   : > { %v2359_v38 = vmax.f32 %v2311_v44, 0.0  ;;  %v2314_v46 = vadd.f32 %v6467_v20, %v8255_v30  ;;  %v2305_v12 = vpop.f32.mrb[23].mxu1 }
 0x24d   : > { %v2357_v21 = vmax.f32 %v2303_v7, 0.0  ;;  %v2306_v32 = vadd.f32 %v8255_v30, %v2305_v12 }
 0x24e   : > { %2391 = vst.msk [vmem:[#allocation6 + $0xd0] sm:$0xff] %vm439_vm4, %v2359_v38  ;;  %v2360_v48 = vmax.f32 %v2314_v46, 0.0 }
 0x24f   : > { %2389 = vst.msk [vmem:[#allocation6 + $0xc0] sm:$0xff] %vm439_vm4, %v2357_v21  ;;  %v2358_v25 = vmax.f32 %v2306_v32, 0.0 }
 0x250   : > { %2392 = vst.msk [vmem:[#allocation6 + $0xd8] sm:$0xff] %vm439_vm4, %v2360_v48 }
 0x251   : > { %2390 = vst.msk [vmem:[#allocation6 + $0xc8] sm:$0xff] %vm439_vm4, %v2358_v25 }
 0x257   : > { %v2473_v45 = vld [vmem:[#allocation6 + $0xd0] ss:$2 sm:$0xff]  ;;  %v2475_v19 = vld [vmem:[#allocation6 + $0xd1] ss:$2 sm:$0xff] }
 0x258   : > { %v2477_v26 = vmax.f32 %v2473_v45, %v2475_v19  ;;  %v2469_v8 = vld [vmem:[#allocation6 + $0xc0] ss:$2 sm:$0xff]  ;;  %v2471_v9 = vld [vmem:[#allocation6 + $0xc1] ss:$2 sm:$0xff] }
 0x259   : > { %v2476_v36 = vmax.f32 %v2469_v8, %v2471_v9 }
 0x25b   : > { %v2478_v6 = vmax.f32 %v2476_v36, %v2477_v26 }
 0x25d   : > { %2479 = vst.msk [vmem:[#allocation2 + $0x39] sm:$0xff] %vm439_vm4, %v2478_v6 }
 0x264   : > { %v2647_v62 = vld [vmem:[#allocation2 + $0x39] sm:$0xff] }
 0x265   : > { %v2611_v50 = vld [vmem:[#allocation2 + $0x38] sm:$0xff]  ;;  %v2651_v43 = vpack.c.bf16 %v2647_v62, %v2646_v13 }
 0x266   : > { %v8587_v63 = vld [vmem:[#allocation2 + $0x32] sm:$0xff]  ;;  %v6470_v60 = vpop.f32.mrb[24].mxu1  ;;  %v2725_v3 = vsel %vm8470_vm8, %v2611_v50, 0.0  ;;  %v2635_v13 = vsel %vm8589_vm13, %v2611_v50, 0.0  ;;  %v2695_v32 = vsel %vm8554_vm0, %v2611_v50, 0.0 }
 0x267   : > { %v2712_v55 = vsel %vm8543_vm2, %v8587_v63, 0.0  ;;  %v2739_v41 = vsel %vm8537_vm10, %v8587_v63, 0.0  ;;  %v2327_v58 = vadd.f32 %v6470_v60, %v8255_v30  ;;  %v2318_v53 = vpop.f32.mrb[25].mxu1  ;;  %2757 = vrot.lane.b32.xlu1 %v2651_v43, %s7002_s24  ;;  %2824 = vrot.lane.b32.xlu0 %v2651_v43, %s7005_s30  ;;  %v8612_v2 = vpack.c.bf16 %v2635_v13, %v2634_v52  ;;  %s9940_s24 = smov 64  }
 0x268   : > { %v2717_v35 = vpack.c.bf16 %v2712_v55, %v2711_v61  ;;  %v2319_v28 = vadd.f32 %v8255_v30, %v2318_v53  ;;  %v6471_v34 = vpop.f32.mrb[26].mxu1  ;;  %v2730_v59 = vpack.c.bf16 %v2725_v3, %v2724_v23  ;;  %v2682_v5 = vsel %vm8633_vm14, %v8587_v63, 0.0  ;;  %v2604_v55 = vld [vmem:[#allocation2] sm:$0xff] }
 0x269   : > { %v2363_v14 = vmax.f32 %v2327_v58, 0.0  ;;  %v2330_v40 = vadd.f32 %v6471_v34, %v8255_v30  ;;  %v2321_v11 = vpop.f32.mrb[27].mxu1  ;;  %v2628_v60 = vsel %vm8411_vm6, %v2604_v55, 0.0  ;;  %vm2867_vm6 = vcmask 654336  }
 0x26a   : > { %v2361_v54 = vmax.f32 %v2319_v28, 0.0  ;;  %v2322_v15 = vadd.f32 %v8255_v30, %v2321_v11 }
 0x26b   : > { %2395 = vst.msk [vmem:[#allocation6 + $0xf0] sm:$0xff] %vm439_vm4, %v2363_v14  ;;  %v2364_v56 = vmax.f32 %v2330_v40, 0.0  ;;  %2815 = vrot.lane.b32.xlu1 %v2730_v59, %s9779_s15  ;;  %2803 = vrot.lane.b32.xlu0 %v2717_v35, %s7007_s23  ;;  %v2629_v35 = vsel %vm8418_vm12, %v8422_v49, 0.0  ;;  %vm2885_vm12 = vcmask 916480  }
 0x26c   : > { %2393 = vst.msk [vmem:[#allocation6 + $0xe0] sm:$0xff] %vm439_vm4, %v2361_v54  ;;  %v2362_v24 = vmax.f32 %v2322_v15, 0.0 }
 0x26d   : > { %2396 = vst.msk [vmem:[#allocation6 + $0xf8] sm:$0xff] %vm439_vm4, %v2364_v56 }
 0x26e   : > { %2394 = vst.msk [vmem:[#allocation6 + $0xe8] sm:$0xff] %vm439_vm4, %v2362_v24 }
 0x274   : > { %v2485_v31 = vld [vmem:[#allocation6 + $0xf0] ss:$2 sm:$0xff]  ;;  %v2487_v52 = vld [vmem:[#allocation6 + $0xf1] ss:$2 sm:$0xff] }
 0x275   : > { %v2489_v29 = vmax.f32 %v2485_v31, %v2487_v52  ;;  %v2481_v44 = vld [vmem:[#allocation6 + $0xe0] ss:$2 sm:$0xff]  ;;  %v2483_v10 = vld [vmem:[#allocation6 + $0xe1] ss:$2 sm:$0xff] }
 0x276   : > { %v2488_v30 = vmax.f32 %v2481_v44, %v2483_v10 }
 0x278   : > { %v2490_v7 = vmax.f32 %v2488_v30, %v2489_v29 }
 0x27a   : > { %2491 = vst.msk [vmem:[#allocation2 + $0x41] sm:$0xff] %vm439_vm4, %v2490_v7 }
 0x281   : > { %v2701_v38 = vld [vmem:[#allocation2 + $0x41] sm:$0xff] }
 0x282   : > { %v2688_v46 = vld [vmem:[#allocation2 + $0x40] sm:$0xff]  ;;  %v2705_v21 = vpack.c.bf16 %v2701_v38, %v2647_v62  ;;  %v2719_v19 = vld [vmem:[#allocation2 + $0x48] sm:$0xff]  ;;  %v2733_v42 = vpack.c.bf16 %v2732_v18, %v2701_v38 }
 0x283   : > { %v2659_v12 = vld [vmem:[#allocation2 + $0x3a] sm:$0xff]  ;;  %v2696_v48 = vsel %vm8589_vm13, %v2688_v46, 0.0  ;;  %v8637_v45 = vld [vmem:[#allocation2 + $0x42] sm:$0xff]  ;;  %v2726_v9 = vsel %vm8554_vm0, %v2688_v46, 0.0  ;;  %v2727_v57 = vsel %vm8589_vm13, %v2719_v19, 0.0  ;;  %vm448_vm13 = vcmask 520192  }
 0x284   : > { %v2700_v26 = vpack.c.bf16 %v2696_v48, %v2695_v32  ;;  %v2683_v8 = vsel %vm8623_vm3, %v2659_v12, 0.0  ;;  %2793 = vrot.lane.b32.xlu0 %v2705_v21, %s9781_s0  ;;  %v2713_v36 = vsel %vm8633_vm14, %v2659_v12, 0.0  ;;  %v2714_v4 = vsel %vm8623_vm3, %v8637_v45, 0.0  ;;  %449 = vst.msk [vmem:[#allocation4] sm:$0x1f] %vm448_vm13, %v6999_v51  ;;  %s6253_s0 = sshll.u32 %s7102_s29, 4 }
 0x285   : > { %v2740_v6 = vsel %vm8543_vm2, %v2659_v12, 0.0  ;;  %v2731_v37 = vpack.c.bf16 %v2727_v57, %v2726_v9  ;;  %v2741_v50 = vsel %vm8633_vm14, %v8637_v45, 0.0  ;;  %v2687_v43 = vpack.c.bf16 %v2683_v8, %v2682_v5  ;;  %v2734_v9 = vld [vmem:[#allocation2 + $0x4a] sm:$0xff]  ;;  %450 = vst.msk [vmem:[#allocation4 + $0x15] sm:$0x1f] %vm448_vm13, %v6999_v51  ;;  %s9703_s2 = scalar_lea.hbm %s9758_s13, %s6253_s0 }
 0x286   : > { %2781 = vrot.lane.b32.xlu1 %v2700_v26, %s7004_s22  ;;  %v2745_v62 = vpack.c.bf16 %v2740_v6, %v2739_v41  ;;  %v2718_v61 = vpack.c.bf16 %v2714_v4, %v2713_v36  ;;  %v2636_v41 = vpack.c.bf16 %v2629_v35, %v2628_v60  ;;  %v2742_v6 = vsel %vm8623_vm3, %v2734_v9, 0.0  ;;  %s6930_s22 = sshll.u32 %s7010_s20, 4  ;;  %s6931_s22 = int_to_ptr.vmem [resolvable:$false] %s6930_s22 }
 0x288   : > { %2769 = vrot.lane.b32.xlu0 %v2687_v43, %s7003_s21 }
 0x28a   : > { %2805 = vrot.lane.b32.xlu1 %v2718_v61, %s7007_s23  ;;  %s431_s23 = sand.u32 1, %s6980_s26  }
 0x28b   : > { %s5864_s16 = scalar_lea.sflag [#allocation11], %s431_s23 }
 0x28c   : > { %2817 = vrot.lane.b32.xlu0 %v2731_v37, %s9779_s15 }
 0x28e   : > { %2826 = vrot.lane.b32.xlu1 %v2733_v42, %s7005_s30  ;;  %s6932_s30 = scalar_lea.vmem %s6931_s22, 32 }
 0x294   : > { %v2788_v63 = vpop.permute.xlu1 %2787  ;;  %v2752_v3 = vpop.permute.xlu0 %2751 }
 0x295   : > { %v2830_v13 = vsel %vm439_vm4, %v2636_v41, %v2752_v3  ;;  %v6586_v41 = vld [vmem:[%s9750_s5 + $0x88] sm:$0xff]  }
 0x298   : > { %v2764_v58 = vpop.permute.xlu1 %2763  ;;  %v2776_v53 = vpop.permute.xlu0 %2775 }
 0x299   : > { %v2842_v28 = vsel %vm2840_vm1, %v2830_v13, %v2764_v58  ;;  %v8724_v58 = vld [vmem:[%s9749_s4] ss:$0 sm:$0xff] }
 0x29a   : > { %v2851_v14 = vsel %vm2849_vm5, %v2842_v28, %v2776_v53 }
 0x29b   : > { %v2860_v27 = vsel %vm2858_vm11, %v2851_v14, %v2788_v63 }
 0x29c   : > { %v2754_v34 = vpop.permute.xlu1 %2753  ;;  %v2821_v23 = vpop.permute.xlu0 %2820 }
 0x29d   : > { %v2833_v56 = vsel %vm439_vm4, %v8474_v39, %v2754_v34 }
 0x2a0   : > { %v2812_v16 = vpop.permute.xlu1 %2811  ;;  %v2800_v40 = vpop.permute.xlu0 %2799 }
 0x2a1   : > { %v2869_v49 = vsel %vm2867_vm6, %v2860_v27, %v2800_v40 }
 0x2a2   : > { %v2878_v11 = vsel %vm2876_vm15, %v2869_v49, %v2812_v16 }
 0x2a3   : > { %v2887_v59 = vsel %vm2885_vm12, %v2878_v11, %v2821_v23 }
 0x2a4   : > { %v2778_v54 = vpop.permute.xlu1 %2777  ;;  %v2790_v15 = vpop.permute.xlu0 %2789  ;;  %3022 = vmatmul.mubr.bf16.vlgmr.msra.gmra.mrb[28].mxu1 %v2887_v59 }
 0x2a5   : > { %5966 = vmatprep.mubr.msk.bf16.mxu1 %vm439_vm4, %v8570_v17 }
 0x2a8   : > { %v2823_v24 = vpop.permute.xlu1 %2822  ;;  %v2766_v31 = vpop.permute.xlu0 %2765 }
 0x2a9   : > { %v2844_v52 = vsel %vm2840_vm1, %v2833_v56, %v2766_v31 }
 0x2aa   : > { %v2853_v29 = vsel %vm2849_vm5, %v2844_v52, %v2778_v54 }
 0x2ab   : > { %v2862_v30 = vsel %vm2858_vm11, %v2853_v29, %v2790_v15 }
 0x2ac   : > { %v2756_v44 = vpop.permute.xlu0 %2755  ;;  %v2802_v10 = vpop.permute.xlu1 %2801 }
 0x2ad   : > { %v2871_v7 = vsel %vm2867_vm6, %v2862_v30, %v2802_v10  ;;  %v2836_v32 = vsel %vm439_vm4, %v8484_v22, %v2756_v44 }
 0x2b0   : > { %v2814_v38 = vpop.permute.xlu0 %2813 }
 0x2b1   : > { %v2880_v46 = vsel %vm2876_vm15, %v2871_v7, %v2814_v38 }
 0x2b2   : > { %v2890_v17 = vsel %vm2885_vm12, %v2880_v46, %v2823_v24 }
 0x2b3   : > { %3030 = vmatmul.mubr.bf16.gmra.mrb[32].mxu1 %v2890_v17 }
 0x2b4   : > { %5967 = vmatprep.mubr.msk.bf16.mxu1 %vm439_vm4, %v2745_v62  ;;  %v2746_v62 = vpack.c.bf16 %v2742_v6, %v2741_v50 }
 0x2b9   : > { %v2792_v39 = vpop.permute.xlu1 %2791 }
 0x2bb   : > { %v2780_v21 = vpop.permute.xlu0 %2779 }
 0x2bd   : > { %v2768_v12 = vpop.permute.xlu1 %2767 }
 0x2be   : > { %v2846_v48 = vsel %vm2840_vm1, %v2836_v32, %v2768_v12 }
 0x2bf   : > { %v2855_v8 = vsel %vm2849_vm5, %v2846_v48, %v2780_v21 }
 0x2c0   : > { %v2864_v4 = vsel %vm2858_vm11, %v2855_v8, %v2792_v39 }
 0x2d9   : > { %v2758_v19 = vpop.permute.xlu1 %2757  ;;  %v2825_v26 = vpop.permute.xlu0 %2824 }
 0x2da   : > { %v2839_v20 = vsel %vm439_vm4, %v8612_v2, %v2758_v19  ;;  %v6585_v2 = vld [vmem:[%s9750_s5 + $0x80] sm:$0xff]  }
 0x2db   : > { %6473 = vmatpush3.bf16.msra.mxu0 %v6585_v2  ;;  %v6595_v2 = vld [vmem:[%s9750_s5 + $0x60] sm:$0xff]  }
 0x2dc   : > { %6474 = vmatprep.subr.bf16.mxu0 %v6999_v51 }
 0x2dd   : > { %v2816_v36 = vpop.permute.xlu1 %2815  ;;  %v2804_v57 = vpop.permute.xlu0 %2803 }
 0x2de   : > { %v2873_v5 = vsel %vm2867_vm6, %v2864_v4, %v2804_v57 }
 0x2df   : > { %v2882_v37 = vsel %vm2876_vm15, %v2873_v5, %v2816_v36  ;;  %6475 = vmatpush3.bf16.msra.mxu0 %v6586_v41  ;;  %v6596_v41 = vld [vmem:[%s9750_s5 + $0x20] sm:$0xff]  }
 0x2e0   : > { %v2893_v22 = vsel %vm2885_vm12, %v2882_v37, %v2825_v26 }
 0x2e1   : > { %3038 = vmatmul.mubr.bf16.gmra.mrb[36].mxu1 %v2893_v22 }
 0x2e2   : > { %5968 = vmatprep.mubr.msk.bf16.mxu1 %vm439_vm4, %v2746_v62  ;;  %vm7008_vm4 = vmmov 0  }
 0x2e3   : > { %6476 = vmatprep.mubr.msk.bf16.mxu0 %vm7008_vm4, %v6999_v51 }
 0x2f6   : > { %v2794_v43 = vpop.permute.xlu0 %2793 }
 0x2f8   : > { %v2782_v61 = vpop.permute.xlu1 %2781 }
 0x2fa   : > { %v2770_v18 = vpop.permute.xlu0 %2769 }
 0x2fb   : > { %v2848_v42 = vsel %vm2840_vm1, %v2839_v20, %v2770_v18  ;;  %v6588_v20 = vld [vmem:[%s9750_s5] sm:$0xff]   ;;  %v6589_v18 = vld [vmem:[%s9750_s5 + $0x48] sm:$0xff]  }
 0x2fc   : > { %v2806_v55 = vpop.permute.xlu1 %2805  ;;  %v2857_v63 = vsel %vm2849_vm5, %v2848_v42, %v2782_v61  ;;  %v6587_v61 = vld [vmem:[%s9750_s5 + $0x40] sm:$0xff]  }
 0x2fd   : > { %v2866_v60 = vsel %vm2858_vm11, %v2857_v63, %v2794_v43  ;;  %6274 = vmatprep.subr.bf16.mxu1 %v6587_v61  ;;  %v6591_v63 = vld [vmem:[%s9750_s5 + $0x50] sm:$0xff]  }
 0x2fe   : > { %v2875_v25 = vsel %vm2867_vm6, %v2866_v60, %v2806_v55  ;;  %v2818_v45 = vpop.permute.xlu0 %2817  ;;  %6275 = vmatpush3.bf16.msra.mxu1 %v6588_v20  ;;  %v6590_v55 = vld [vmem:[%s9750_s5 + $0x8] sm:$0xff]   ;;  %v6592_v60 = vld [vmem:[%s9750_s5 + $0x10] sm:$0xff]   ;;  %vm5861_vm6 = vcmask 73728  }
 0x2ff   : > { %v2884_v50 = vsel %vm2876_vm15, %v2875_v25, %v2818_v45  ;;  %6276 = vmatprep.subr.bf16.mxu1 %v6589_v18  ;;  %v6593_v25 = vld [vmem:[%s9750_s5 + $0x58] sm:$0xff]  }
 0x300   : > { %v2827_v3 = vpop.permute.xlu1 %2826 }
 0x301   : > { %v2896_v35 = vsel %vm2885_vm12, %v2884_v50, %v2827_v3 }
 0x302   : > { %3046 = vmatmul.mubr.bf16.gmra.mrb[40].mxu1 %v2896_v35  ;;  %v6594_v35 = vld [vmem:[%s9750_s5 + $0x18] sm:$0xff]  }
 0x303   : > { %6277 = vmatpush3.bf16.msra.mxu1 %v6590_v55 }
 0x304   : > { %6278 = vmatprep.subr.bf16.mxu1 %v6591_v63 }
 0x307   : > { %6279 = vmatpush3.bf16.msra.mxu1 %v6592_v60 }
 0x308   : > { %6280 = vmatprep.subr.bf16.mxu1 %v6593_v25 }
 0x30b   : > { %6281 = vmatpush3.bf16.msra.mxu1 %v6594_v35 }
 0x30c   : > { %6282 = vmatprep.subr.bf16.mxu1 %v6595_v2 }
 0x30f   : > { %6283 = vmatpush3.bf16.msra.mxu1 %v6596_v41 }
 0x377   : > { %v3023_v53 = vpop.f32.mrb[28].mxu1 }
 0x378   : > { %v3024_v13 = vadd.f32 %v8724_v58, %v3023_v53  ;;  %v3025_v28 = vpop.f32.mrb[29].mxu1 }
 0x379   : > { %v3026_v34 = vpop.f32.mrb[30].mxu1 }
 0x37a   : > { %v3054_v23 = vmax.f32 %v3024_v13, 0.0  ;;  %v3027_v14 = vadd.f32 %v8724_v58, %v3026_v34  ;;  %v3028_v16 = vpop.f32.mrb[31].mxu1  ;;  %v6597_v13 = vld [vmem:[%s9750_s5 + $0x68] sm:$0xff]  }
 0x37b   : > { %6284 = vmatprep.subr.bf16.mxu1 %v6597_v13 }
 0x37c   : > { %3062 = vst.msk [vmem:[#allocation7] sm:$0xff] %vm2840_vm1, %v3054_v23  ;;  %v3055_v40 = vmax.f32 %v3027_v14, 0.0 }
 0x37e   : > { %3063 = vst.msk [vmem:[#allocation7 + $0x8] sm:$0xff] %vm2840_vm1, %v3055_v40 }
 0x383   : > { %v3070_v27 = vld [vmem:[#allocation7] ss:$2 sm:$0xf]  ;;  %v3072_v49 = vld [vmem:[#allocation7 + $0x1] ss:$2 sm:$0xf] }
 0x384   : > { %v3077_v54 = vmax.f32 %v3070_v27, %v3072_v49  ;;  %v6598_v27 = vld [vmem:[%s9750_s5 + $0x28] sm:$0xff]  }
 0x385   : > { %v3074_v11 = vld [vmem:[#allocation7 + $0x8] ss:$2 sm:$0xf]  ;;  %v3076_v59 = vld [vmem:[#allocation7 + $0x9] ss:$2 sm:$0xf]  ;;  %6285 = vmatpush3.bf16.msra.mxu1 %v6598_v27 }
 0x386   : > { %v3078_v15 = vmax.f32 %v3074_v11, %v3076_v59  ;;  %v3031_v56 = vpop.f32.mrb[32].mxu1 }
 0x387   : > { %v3032_v24 = vadd.f32 %v8724_v58, %v3031_v56  ;;  %v3033_v31 = vpop.f32.mrb[33].mxu1 }
 0x388   : > { %v3079_v52 = vmax.f32 %v3077_v54, %v3078_v15  ;;  %v3034_v29 = vpop.f32.mrb[34].mxu1  ;;  %v6599_v31 = vld [vmem:[%s9750_s5 + $0x70] sm:$0xff]  }
 0x389   : > { %v3056_v44 = vmax.f32 %v3032_v24, 0.0  ;;  %v3035_v10 = vadd.f32 %v8724_v58, %v3034_v29  ;;  %v3036_v30 = vpop.f32.mrb[35].mxu1  ;;  %6286 = vmatprep.subr.bf16.mxu1 %v6599_v31  ;;  %v3122_v29 = vand.u32 3, %v7132_v1  ;;  %v6604_v31 = vld [vmem:[%s9752_s7] sm:$0xff]  }
 0x38a   : > { %3081 = vst.msk [vmem:[#allocation3 + $0x5] sm:$0xf] %vm3080_vm7, %v3079_v52  ;;  %v6600_v52 = vld [vmem:[%s9750_s5 + $0x30] sm:$0xff]   ;;  %v6602_v30 = vld [vmem:[%s9750_s5 + $0x38] sm:$0xff]  }
 0x38b   : > { %3064 = vst.msk [vmem:[#allocation7 + $0x10] sm:$0xff] %vm2840_vm1, %v3056_v44  ;;  %v3057_v7 = vmax.f32 %v3035_v10, 0.0  ;;  %6287 = vmatpush3.bf16.msra.mxu1 %v6600_v52  ;;  %v3129_v44 = vand.u32 3, %v7363_v47  ;;  %v6601_v10 = vld [vmem:[%s9750_s5 + $0x78] sm:$0xff]   ;;  %vm8800_vm8 = vcmp.le.s32.totalorder %v3122_v29, 2  ;;  %vm8828_vm0 = vcmp.ge.s32.totalorder %v3122_v29, 1 }
 0x38c   : > { %6288 = vmatprep.subr.bf16.mxu1 %v6601_v10  ;;  %v6605_v52 = vld [vmem:[%s9752_s7 + $0x48] sm:$0xff]   ;;  %v6608_v10 = vld [vmem:[%s9752_s7 + $0x10] sm:$0xff]  }
 0x38d   : > { %3065 = vst.msk [vmem:[#allocation7 + $0x18] sm:$0xff] %vm2840_vm1, %v3057_v7  ;;  %vm8804_vm10 = vcmp.le.s32.totalorder %v3129_v44, 2  ;;  %vm8820_vm2 = vcmp.ge.s32.totalorder %v3129_v44, 1  ;;  %v6606_v29 = vld [vmem:[%s9752_s7 + $0x8] sm:$0xff]   ;;  %v6607_v44 = vld [vmem:[%s9752_s7 + $0x50] sm:$0xff]  }
 0x38e   : > { %v6642_v7 = vld [vmem:[%s9754_s9 + $0x10] ss:$8 sps:$4 sm:$0xff]  }
 0x38f   : > { %6289 = vmatpush3.bf16.msra.mxu1 %v6602_v30  ;;  %v6609_v30 = vld [vmem:[%s9752_s7 + $0x58] sm:$0xff]  }
 0x391   : > { %v3155_v45 = vld [vmem:[#allocation3 + $0x1] sm:$0xff] }
 0x392   : > { %v3083_v38 = vld [vmem:[#allocation7 + $0x10] ss:$2 sm:$0xf]  ;;  %v3085_v46 = vld [vmem:[#allocation7 + $0x11] ss:$2 sm:$0xf] }
 0x393   : > { %v3090_v12 = vmax.f32 %v3083_v38, %v3085_v46  ;;  %v3146_v35 = vld [vmem:[#allocation3] sm:$0xff] }
 0x394   : > { %v3087_v17 = vld [vmem:[#allocation7 + $0x18] ss:$2 sm:$0xf]  ;;  %v3089_v39 = vld [vmem:[#allocation7 + $0x19] ss:$2 sm:$0xf] }
 0x395   : > { %v3091_v21 = vmax.f32 %v3087_v17, %v3089_v39  ;;  %v6647_v17 = vld [vmem:[%s9754_s9 + $0x24] ss:$8 sps:$4 sm:$0xff]  }
 0x397   : > { %v3092_v32 = vmax.f32 %v3090_v12, %v3091_v21 }
 0x399   : > { %3093 = vst.msk [vmem:[#allocation3 + $0x9] sm:$0xf] %vm3080_vm7, %v3092_v32 }
 0x3a0   : > { %v3158_v46 = vld [vmem:[#allocation3 + $0x2] sm:$0xff] }
 0x3a1   : > { %v3164_v32 = vsel %vm8800_vm8, %v3158_v46, 0.0  ;;  %v6611_v46 = vld [vmem:[%s9752_s7 + $0x60] sm:$0xff]  }
 0x3b4   : > { %v3039_v48 = vpop.f32.mrb[36].mxu1 }
 0x3b5   : > { %v3040_v19 = vadd.f32 %v8724_v58, %v3039_v48  ;;  %v3041_v26 = vpop.f32.mrb[37].mxu1 }
 0x3b6   : > { %v3042_v8 = vpop.f32.mrb[38].mxu1 }
 0x3b7   : > { %v3058_v9 = vmax.f32 %v3040_v19, 0.0  ;;  %v3043_v36 = vadd.f32 %v8724_v58, %v3042_v8  ;;  %v3044_v4 = vpop.f32.mrb[39].mxu1 }
 0x3b9   : > { %3066 = vst.msk [vmem:[#allocation7 + $0x20] sm:$0xff] %vm2840_vm1, %v3058_v9  ;;  %v3059_v57 = vmax.f32 %v3043_v36, 0.0 }
 0x3bb   : > { %3067 = vst.msk [vmem:[#allocation7 + $0x28] sm:$0xff] %vm2840_vm1, %v3059_v57 }
 0x3c0   : > { %v3095_v6 = vld [vmem:[#allocation7 + $0x20] ss:$2 sm:$0xf]  ;;  %v3097_v5 = vld [vmem:[#allocation7 + $0x21] ss:$2 sm:$0xf] }
 0x3c1   : > { %v3102_v62 = vmax.f32 %v3095_v6, %v3097_v5 }
 0x3c2   : > { %v3099_v37 = vld [vmem:[#allocation7 + $0x28] ss:$2 sm:$0xf]  ;;  %v3101_v22 = vld [vmem:[#allocation7 + $0x29] ss:$2 sm:$0xf] }
 0x3c3   : > { %v3103_v43 = vmax.f32 %v3099_v37, %v3101_v22  ;;  %v3167_v22 = vld [vmem:[#allocation3 + $0x4] sm:$0xff] }
 0x3c4   : > { %v3169_v18 = vsel %vm8828_vm0, %v3167_v22, 0.0 }
 0x3c5   : > { %v3104_v42 = vmax.f32 %v3102_v62, %v3103_v43  ;;  %v6622_v43 = vld [vmem:[%s9752_s7 + $0x88] sm:$0xff]  }
 0x3c7   : > { %3105 = vst.msk [vmem:[#allocation3 + $0xd] sm:$0xf] %vm3080_vm7, %v3104_v42 }
 0x3ce   : > { %v8762_v50 = vld [vmem:[#allocation3 + $0x9] sm:$0xff] }
 0x3cf   : > { %v3157_v3 = vpack.c.bf16 %v8762_v50, %v3155_v45  ;;  %v3175_v38 = vld [vmem:[#allocation3 + $0x6] sm:$0xff] }
 0x3d0   : > { %v3177_v21 = vsel %vm8800_vm8, %v3175_v38, 0.0  ;;  %v3147_v37 = vld [vmem:[#allocation3 + $0x8] sm:$0xff]  ;;  %v6610_v38 = vld [vmem:[%s9752_s7 + $0x18] sm:$0xff]  }
 0x3d1   : > { %3191 = vrot.lane.b32.xlu1 %v3157_v3, %s7003_s21  ;;  %v3181_v20 = vsel %vm8828_vm0, %v3147_v37, 0.0  ;;  %v3153_v41 = vsel %vm8820_vm2, %v3147_v37, 0.0 }
 0x3d5   : > { %v3047_v53 = vpop.f32.mrb[40].mxu1 }
 0x3d6   : > { %v3048_v28 = vadd.f32 %v8724_v58, %v3047_v53  ;;  %v3049_v34 = vpop.f32.mrb[41].mxu1  ;;  %v3172_v53 = vld [vmem:[#allocation3 + $0x5] sm:$0xff] }
 0x3d7   : > { %v3050_v23 = vpop.f32.mrb[42].mxu1 }
 0x3d8   : > { %v3060_v14 = vmax.f32 %v3048_v28, 0.0  ;;  %v3051_v16 = vadd.f32 %v8724_v58, %v3050_v23  ;;  %v3052_v40 = vpop.f32.mrb[43].mxu1  ;;  %v3152_v28 = vsel %vm8828_vm0, %v3146_v35, 0.0 }
 0x3d9   : > { %v3154_v23 = vpack.c.bf16 %v3153_v41, %v3152_v28 }
 0x3da   : > { %3068 = vst.msk [vmem:[#allocation7 + $0x30] sm:$0xff] %vm2840_vm1, %v3060_v14  ;;  %v3061_v49 = vmax.f32 %v3051_v16, 0.0 }
 0x3dc   : > { %3069 = vst.msk [vmem:[#allocation7 + $0x38] sm:$0xff] %vm2840_vm1, %v3061_v49 }
 0x3e1   : > { %v3107_v11 = vld [vmem:[#allocation7 + $0x30] ss:$2 sm:$0xf]  ;;  %v3109_v59 = vld [vmem:[#allocation7 + $0x31] ss:$2 sm:$0xf] }
 0x3e2   : > { %v3114_v56 = vmax.f32 %v3107_v11, %v3109_v59 }
 0x3e3   : > { %v3111_v54 = vld [vmem:[#allocation7 + $0x38] ss:$2 sm:$0xf]  ;;  %v3113_v15 = vld [vmem:[#allocation7 + $0x39] ss:$2 sm:$0xf] }
 0x3e4   : > { %v3115_v24 = vmax.f32 %v3111_v54, %v3113_v15 }
 0x3e6   : > { %v3116_v58 = vmax.f32 %v3114_v56, %v3115_v24 }
 0x3e8   : > { %3117 = vst.msk [vmem:[#allocation3 + $0x11] sm:$0xf] %vm3080_vm7, %v3116_v58  ;;  %v6603_v58 = vld [vmem:[%s9752_s7 + $0x40] sm:$0xff]  }
 0x3e9   : > { %6299 = vmatprep.subr.bf16.mxu1 %v6603_v58 }
 0x3ef   : > { %v3159_v47 = vld [vmem:[#allocation3 + $0xa] sm:$0xff]  ;;  %v3186_v39 = vld [vmem:[#allocation3 + $0x12] sm:$0xff] }
 0x3f0   : > { %v3176_v12 = vld [vmem:[#allocation3 + $0xe] sm:$0xff]  ;;  %v3187_v48 = vsel %vm8800_vm8, %v3159_v47, 0.0  ;;  %v3188_v19 = vsel %vm8804_vm10, %v3186_v39, 0.0  ;;  %v3165_v8 = vsel %vm8804_vm10, %v3159_v47, 0.0 }
 0x3f1   : > { %v3178_v26 = vsel %vm8804_vm10, %v3176_v12, 0.0  ;;  %v3168_v9 = vld [vmem:[#allocation3 + $0xc] sm:$0xff]  ;;  %v3189_v4 = vpack.c.bf16 %v3188_v19, %v3187_v48  ;;  %v3166_v6 = vpack.c.bf16 %v3165_v8, %v3164_v32  ;;  %v6616_v32 = vld [vmem:[%s9752_s7 + $0x30] sm:$0xff]   ;;  %v6617_v48 = vld [vmem:[%s9752_s7 + $0x78] sm:$0xff]  }
 0x3f2   : > { %v3180_v36 = vld [vmem:[#allocation3 + $0x10] sm:$0xff]  ;;  %v3179_v57 = vpack.c.bf16 %v3178_v26, %v3177_v21  ;;  %v3170_v61 = vsel %vm8820_vm2, %v3168_v9, 0.0  ;;  %v6612_v47 = vld [vmem:[%s9752_s7 + $0x20] sm:$0xff]   ;;  %v6615_v21 = vld [vmem:[%s9752_s7 + $0x70] sm:$0xff]  }
 0x3f3   : > { %v3182_v62 = vsel %vm8820_vm2, %v3180_v36, 0.0  ;;  %6477 = vmatmul.mubr.msk.bf16.vlgmr.msra.gmra.mrb[4].mxu0 %vm2840_vm1, %v3189_v4  ;;  %3194 = vrot.lane.b32.xlu1 %v3166_v6, %s9940_s24  ;;  %v3171_v55 = vpack.c.bf16 %v3170_v61, %v3169_v18  ;;  %v3184_v63 = vld [vmem:[#allocation3 + $0x11] sm:$0xff]  ;;  %v6618_v19 = vld [vmem:[%s9752_s7 + $0x38] sm:$0xff]   ;;  %v5969_v8 = vld [vmem:[%s9751_s6] ss:$0 sm:$0xff] }
 0x3f4   : > { %3200 = vrot.lane.b32.xlu0 %v3179_v57, %s7003_s21  ;;  %v3183_v42 = vpack.c.bf16 %v3182_v62, %v3181_v20  ;;  %s9941_s21 = smov 96   ;;  %v3185_v60 = vpack.c.bf16 %v3184_v63, %v8762_v50  ;;  %v3173_v2 = vld [vmem:[#allocation3 + $0xd] sm:$0xff] }
 0x3f5   : > { %v3174_v34 = vpack.c.bf16 %v3173_v2, %v3172_v53  ;;  %v6613_v39 = vld [vmem:[%s9752_s7 + $0x68] sm:$0xff]  }
 0x3f6   : > { %v6614_v12 = vld [vmem:[%s9752_s7 + $0x28] sm:$0xff]  }
 0x3f7   : > { %3197 = vrot.lane.b32.xlu1 %v3171_v55, %s9941_s21 }
 0x3f8   : > { %3203 = vrot.lane.b32.xlu0 %v3183_v42, %s9940_s24  ;;  %v6619_v42 = vld [vmem:[%s9752_s7 + $0xc0] sm:$0xff]  }
 0x3fc   : > { %3206 = vrot.lane.b32.xlu0 %v3185_v60, %s9941_s21 }
 0x443   : > { %v3192_v25 = vpop.permute.xlu1 %3191 }
 0x444   : > { %v3210_v16 = vsel %vm2840_vm1, %v3154_v23, %v3192_v25 }
 0x465   : > { %v3195_v3 = vpop.permute.xlu1 %3194 }
 0x466   : > { %v3201_v45 = vpop.permute.xlu0 %3200  ;;  %v3212_v49 = vsel %vm2858_vm11, %v3210_v16, %v3195_v3 }
 0x467   : > { %v3218_v14 = vsel %vm2840_vm1, %v3174_v34, %v3201_v45 }
 0x469   : > { %v3198_v50 = vpop.permute.xlu1 %3197 }
 0x46a   : > { %v3204_v13 = vpop.permute.xlu0 %3203  ;;  %v3214_v59 = vsel %vm2876_vm15, %v3212_v49, %v3198_v50 }
 0x46b   : > { %v3220_v40 = vsel %vm2858_vm11, %v3218_v14, %v3204_v13 }
 0x46e   : > { %v3207_v27 = vpop.permute.xlu0 %3206 }
 0x46f   : > { %v3222_v11 = vsel %vm2876_vm15, %v3220_v40, %v3207_v27 }
 0x470   : > { %3410 = vmatprep.mubr.bf16.mxu1 %v3222_v11 }
 0x471   : > { %3411 = vmatmul.mubr.bf16.vlgmr.msra.gmra.mrb[44].mxu1 %v3214_v59 }
 0x472   : > { %6300 = vmatpush3.bf16.msra.mxu1 %v6604_v31 }
 0x473   : > { %6301 = vmatprep.subr.bf16.mxu1 %v6605_v52  ;;  %v6620_v52 = vld [vmem:[%s9752_s7 + $0x80] sm:$0xff]  }
 0x476   : > { %6302 = vmatpush3.bf16.msra.mxu1 %v6606_v29 }
 0x477   : > { %6303 = vmatprep.subr.bf16.mxu1 %v6607_v44 }
 0x47a   : > { %6304 = vmatpush3.bf16.msra.mxu1 %v6608_v10 }
 0x47b   : > { %6305 = vmatprep.subr.bf16.mxu1 %v6609_v30  ;;  %v6621_v30 = vld [vmem:[%s9752_s7 + $0xc8] sm:$0xff]  }
 0x47e   : > { %6306 = vmatpush3.bf16.msra.mxu1 %v6610_v38 }
 0x47f   : > { %6307 = vmatprep.subr.bf16.mxu1 %v6611_v46 }
 0x482   : > { %6308 = vmatpush3.bf16.msra.mxu1 %v6612_v47 }
 0x483   : > { %6309 = vmatprep.subr.bf16.mxu1 %v6613_v39  ;;  %v6623_v39 = vld [vmem:[%s9752_s7 + $0xd0] sm:$0xff]  }
 0x486   : > { %6310 = vmatpush3.bf16.msra.mxu1 %v6614_v12  ;;  %v6624_v12 = vld [vmem:[%s9752_s7 + $0x90] sm:$0xff]  }
 0x487   : > { %6311 = vmatprep.subr.bf16.mxu1 %v6615_v21  ;;  %v6625_v21 = vld [vmem:[%s9752_s7 + $0xd8] sm:$0xff]  }
 0x48a   : > { %6312 = vmatpush3.bf16.msra.mxu1 %v6616_v32  ;;  %v6626_v32 = vld [vmem:[%s9752_s7 + $0x98] sm:$0xff]  }
 0x48b   : > { %6313 = vmatprep.subr.bf16.mxu1 %v6617_v48  ;;  %v6627_v48 = vld [vmem:[%s9752_s7 + $0xe0] sm:$0xff]  }
 0x48e   : > { %6314 = vmatpush3.bf16.msra.mxu1 %v6618_v19  ;;  %v6628_v19 = vld [vmem:[%s9752_s7 + $0xa0] sm:$0xff]  }
 0x48f   : > { %6321 = vmatprep.subr.bf16.mxu1 %v6619_v42  ;;  %v6637_v42 = vld [vmem:[%s9752_s7 + $0x110] sm:$0xff]  }
 0x4c6   : > { %v3453_v54 = vpop.f32.mrb[4].mxu0 }
 0x4c7   : > { %v6478_v15 = vpop.f32.mrb[5].mxu0 }
 0x4c8   : > { %v3456_v56 = vpop.f32.mrb[6].mxu0 }
 0x4c9   : > { %v6479_v24 = vpop.f32.mrb[7].mxu0 }
 0x544   : > { %v6290_v26 = vpop.f32.mrb[44].mxu1 }
 0x545   : > { %v6291_v9 = vpop.f32.mrb[45].mxu1 }
 0x546   : > { %v6292_v36 = vadd.f32 %v6291_v9, %v6290_v26  ;;  %v6293_v4 = vpop.f32.mrb[46].mxu1  ;;  %v6629_v26 = vld [vmem:[%s9752_s7 + $0xe8] sm:$0xff]   ;;  %v6631_v9 = vld [vmem:[%s9752_s7 + $0xf0] sm:$0xff]  }
 0x547   : > { %v6294_v57 = vpop.f32.mrb[47].mxu1 }
 0x548   : > { %v3413_v6 = vadd.f32 %v6292_v36, %v5969_v8  ;;  %v6295_v37 = vadd.f32 %v6294_v57, %v6293_v4  ;;  %v6632_v36 = vld [vmem:[%s9752_s7 + $0xb0] sm:$0xff]   ;;  %v6633_v4 = vld [vmem:[%s9752_s7 + $0xf8] sm:$0xff]  }
 0x549   : > { %v6634_v57 = vld [vmem:[%s9752_s7 + $0xb8] sm:$0xff]  }
 0x54a   : > { %v3454_v22 = vadd.f32 %v3453_v54, %v3413_v6  ;;  %v3416_v62 = vadd.f32 %v6295_v37, %v5969_v8  ;;  %v6630_v8 = vld [vmem:[%s9752_s7 + $0xa8] sm:$0xff]  }
 0x54c   : > { %v3460_v61 = vmax.f32 %v3454_v22, 0.0  ;;  %v3457_v20 = vadd.f32 %v3456_v56, %v3416_v62 }
 0x54e   : > { %3462 = vst.msk [vmem:[#allocation4 + $0x5] sm:$0xff] %vm2858_vm11, %v3460_v61  ;;  %v3461_v18 = vmax.f32 %v3457_v20, 0.0  ;;  %v6635_v61 = vld [vmem:[%s9752_s7 + $0x100] sm:$0xff]  }
 0x550   : > { %3463 = vst.msk [vmem:[#allocation4 + $0xd] sm:$0xff] %vm2858_vm11, %v3461_v18  ;;  %v6636_v18 = vld [vmem:[%s9752_s7 + $0x108] sm:$0xff]  }
 0x555   : > { %v3477_v55 = vld [vmem:[#allocation4 + $0x4] sm:$0xff] }
 0x556   : > { %v3469_v63 = vld [vmem:[#allocation4 + $0x1] sm:$0xff]  ;;  %v3479_v35 = vsel %vm8828_vm0, %v3477_v55, 0.0 }
 0x557   : > { %v3470_v60 = vld [vmem:[#allocation4 + $0x9] sm:$0xff]  ;;  %v3494_v34 = vld [vmem:[#allocation4 + $0x11] sm:$0xff]  ;;  %v3464_v27 = vld [vmem:[#allocation4] sm:$0xff] }
 0x558   : > { %v3478_v25 = vld [vmem:[#allocation4 + $0xc] sm:$0xff]  ;;  %v3471_v3 = vpack.c.bf16 %v3470_v60, %v3469_v63  ;;  %v3495_v14 = vpack.c.bf16 %v3494_v34, %v3470_v60  ;;  %v3472_v40 = vld [vmem:[#allocation4 + $0x2] sm:$0xff]  ;;  %v3466_v56 = vsel %vm8828_vm0, %v3464_v27, 0.0 }
 0x559   : > { %v3485_v45 = vld [vmem:[#allocation4 + $0x6] sm:$0xff]  ;;  %v3480_v2 = vsel %vm8820_vm2, %v3478_v25, 0.0  ;;  %v3486_v41 = vld [vmem:[#allocation4 + $0xe] sm:$0xff]  ;;  %v3474_v54 = vsel %vm8800_vm8, %v3472_v40, 0.0  ;;  %v6660_v40 = vld [vmem:[%s9754_s9 + $0x70] ss:$8 sps:$4 sm:$0xff]  }
 0x55a   : > { %v3481_v53 = vpack.c.bf16 %v3480_v2, %v3479_v35  ;;  %v3487_v13 = vsel %vm8800_vm8, %v3485_v45, 0.0  ;;  %v3488_v28 = vsel %vm8804_vm10, %v3486_v41, 0.0  ;;  %3501 = vrot.lane.b32.xlu1 %v3471_v3, %s9940_s24  ;;  %v8923_v50 = vld [vmem:[#allocation4 + $0xa] sm:$0xff]  ;;  %v3496_v55 = vld [vmem:[#allocation4 + $0x12] sm:$0xff]  ;;  %v6638_v63 = vld [vmem:[%s9752_s7 + $0x118] sm:$0xff]  }
 0x55b   : > { %v3489_v23 = vpack.c.bf16 %v3488_v28, %v3487_v13  ;;  %v3465_v16 = vld [vmem:[#allocation4 + $0x8] sm:$0xff]  ;;  %v3475_v49 = vsel %vm8804_vm10, %v8923_v50, 0.0  ;;  %v3490_v59 = vld [vmem:[#allocation4 + $0x10] sm:$0xff]  ;;  %v3497_v60 = vsel %vm8800_vm8, %v8923_v50, 0.0  ;;  %v3498_v25 = vsel %vm8804_vm10, %v3496_v55, 0.0 }
 0x55c   : > { %3504 = vrot.lane.b32.xlu0 %v3481_v53, %s9940_s24  ;;  %v3467_v11 = vsel %vm8820_vm2, %v3465_v16, 0.0  ;;  %v3476_v24 = vpack.c.bf16 %v3475_v49, %v3474_v54  ;;  %v3491_v29 = vsel %vm8828_vm0, %v3465_v16, 0.0  ;;  %v3492_v44 = vsel %vm8820_vm2, %v3490_v59, 0.0  ;;  %v3483_v6 = vld [vmem:[#allocation4 + $0xd] sm:$0xff]  ;;  %v3482_v37 = vld [vmem:[#allocation4 + $0x5] sm:$0xff] }
 0x55d   : > { %v3468_v58 = vpack.c.bf16 %v3467_v11, %v3466_v56  ;;  %v3493_v46 = vpack.c.bf16 %v3492_v44, %v3491_v29  ;;  %v3484_v62 = vpack.c.bf16 %v3483_v6, %v3482_v37  ;;  %v3499_v45 = vpack.c.bf16 %v3498_v25, %v3497_v60  ;;  %v6639_v3 = vld [vmem:[%s9754_s9] ss:$8 sps:$4 sm:$0xff]   ;;  %v6641_v35 = vld [vmem:[%s9754_s9 + $0x4] ss:$8 sps:$4 sm:$0xff]   ;;  %v6650_v41 = vld [vmem:[%s9754_s9 + $0x34] ss:$8 sps:$4 sm:$0xff]  }
 0x55e   : > { %3507 = vrot.lane.b32.xlu1 %v3489_v23, %s9940_s24  ;;  %4892 = vmatprep.subr.bf16.mxu0 %v6641_v35  ;;  %v6645_v2 = vld [vmem:[%s9754_s9 + $0x20] ss:$8 sps:$4 sm:$0xff]   ;;  %v6648_v53 = vld [vmem:[%s9754_s9 + $0x30] ss:$8 sps:$4 sm:$0xff]   ;;  %v6653_v13 = vld [vmem:[%s9754_s9 + $0x44] ss:$8 sps:$4 sm:$0xff]  }
 0x55f   : > { %4893 = vmatpush1.bf16.msra.mxu0 %v6639_v3  ;;  %v6651_v28 = vld [vmem:[%s9754_s9 + $0x40] ss:$8 sps:$4 sm:$0xff]   ;;  %v6656_v34 = vld [vmem:[%s9754_s9 + $0x54] ss:$8 sps:$4 sm:$0xff]   ;;  %v6654_v23 = vld [vmem:[%s9754_s9 + $0x50] ss:$8 sps:$4 sm:$0xff]  }
 0x560   : > { %3510 = vrot.lane.b32.xlu0 %v3495_v14, %s9940_s24  ;;  %v6657_v14 = vld [vmem:[%s9754_s9 + $0x60] ss:$8 sps:$4 sm:$0xff]   ;;  %v6659_v50 = vld [vmem:[%s9754_s9 + $0x64] ss:$8 sps:$4 sm:$0xff]   ;;  %v6662_v16 = vld [vmem:[%s9754_s9 + $0x74] ss:$8 sps:$4 sm:$0xff]  }
 0x561   : > { %v6665_v27 = vld [vmem:[%s9754_s9 + $0x84] ss:$8 sps:$4 sm:$0xff]   ;;  %v6663_v49 = vld [vmem:[%s9754_s9 + $0x80] ss:$8 sps:$4 sm:$0xff]   ;;  %v6668_v11 = vld [vmem:[%s9754_s9 + $0x94] ss:$8 sps:$4 sm:$0xff]  }
 0x562   : > { %v6666_v59 = vld [vmem:[%s9754_s9 + $0x90] ss:$8 sps:$4 sm:$0xff]   ;;  %v6671_v54 = vld [vmem:[%s9754_s9 + $0xa4] ss:$8 sps:$4 sm:$0xff]   ;;  %v6674_v56 = vld [vmem:[%s9754_s9 + $0xb4] ss:$8 sps:$4 sm:$0xff]  }
 0x563   : > { %v6678_v29 = vld [vmem:[%s9754_s9 + $0xd0] ss:$8 sps:$4 sm:$0xff]   ;;  %v6681_v44 = vld [vmem:[%s9754_s9 + $0xe0] ss:$8 sps:$4 sm:$0xff]   ;;  %s432_s24 = scalar_lea.vmem [#allocation10], %s431_s23 }
 0x564   : > { %s5876_s15 = sshll.u32 %s432_s24, 4  ;;  %s9705_s15 = int_to_ptr.vmem [resolvable:$true] %s5876_s15 }
 0x565   : > { %s6926_s29 = scalar_lea.vmem %s9705_s15, 16  ;;  %p6933_p0 = scmp.lt.s32.totalorder %s9705_s15, %s6931_s22 }
 0x566   : > { %p6927_p11 = scmp.ne.s32.totalorder %s9705_s15, %s6926_s29  ;;  %p6934_p1 = scmp.lt.s32.totalorder %s6932_s30, %s6926_s29 }
 0x568   : > { %p6928_p12 = pnand %p6927_p11, %p7119_p5  ;;  %p6935_p2 = por %p6934_p1, %p6933_p0 }
 0x56a   : > { %p6929_p13 = pneg %p6928_p12 }
 0x56c   : > { %p6936_p3 = pnand %p6935_p2, %p6929_p13 }
 0x5cc   : > { %v3502_v15 = vpop.permute.xlu1 %3501 }
 0x5cd   : > { %v3514_v38 = vsel %vm2858_vm11, %v3468_v58, %v3502_v15  ;;  %v6669_v15 = vld [vmem:[%s9754_s9 + $0xa0] ss:$8 sps:$4 sm:$0xff]   ;;  %v6677_v58 = vld [vmem:[%s9754_s9 + $0xc4] ss:$8 sps:$4 sm:$0xff]  }
 0x5ce   : > { %v3505_v31 = vpop.permute.xlu0 %3504 }
 0x5cf   : > { %v3518_v10 = vsel %vm2858_vm11, %v3476_v24, %v3505_v31  ;;  %v6672_v24 = vld [vmem:[%s9754_s9 + $0xb0] ss:$8 sps:$4 sm:$0xff]   ;;  %v6675_v31 = vld [vmem:[%s9754_s9 + $0xc0] ss:$8 sps:$4 sm:$0xff]  }
 0x5d0   : > { %3858 = vmatprep.mubr.bf16.mxu1 %v3518_v10  ;;  %v3508_v22 = vpop.permute.xlu1 %3507  ;;  %v6683_v10 = vld [vmem:[%s9754_s9 + $0xe4] ss:$8 sps:$4 sm:$0xff]  }
 0x5d1   : > { %3859 = vmatmul.mubr.bf16.vlgmr.msra.gmra.mrb[48].mxu1 %v3514_v38  ;;  %v3522_v20 = vsel %vm2858_vm11, %v3484_v62, %v3508_v22  ;;  %v6684_v38 = vld [vmem:[%s9754_s9 + $0xf0] ss:$8 sps:$4 sm:$0xff]  }
 0x5d2   : > { %6322 = vmatpush3.bf16.msra.mxu1 %v6620_v52  ;;  %v3511_v47 = vpop.permute.xlu0 %3510  ;;  %v6680_v52 = vld [vmem:[%s9754_s9 + $0xd4] ss:$8 sps:$4 sm:$0xff]  }
 0x5d3   : > { %6323 = vmatprep.subr.bf16.mxu1 %v6621_v30  ;;  %v3526_v5 = vsel %vm2858_vm11, %v3493_v46, %v3511_v47  ;;  %v6686_v30 = vld [vmem:[%s9754_s9 + $0xf4] ss:$8 sps:$4 sm:$0xff]   ;;  %v6689_v46 = vld [vmem:[%s9754_s9 + $0x104] ss:$8 sps:$4 sm:$0xff]  }
 0x5d4   : > { %3899 = vmatprep.mubr.bf16.mxu1 %v3526_v5 }
 0x5d6   : > { %6324 = vmatpush3.bf16.msra.mxu1 %v6622_v43 }
 0x5d7   : > { %6325 = vmatprep.subr.bf16.mxu1 %v6623_v39 }
 0x5da   : > { %6326 = vmatpush3.bf16.msra.mxu1 %v6624_v12 }
 0x5db   : > { %6327 = vmatprep.subr.bf16.mxu1 %v6625_v21 }
 0x5de   : > { %6328 = vmatpush3.bf16.msra.mxu1 %v6626_v32  ;;  %v5989_v32 = vld [vmem:[%s9753_s8] ss:$0 sm:$0xff] }
 0x5df   : > { %6329 = vmatprep.subr.bf16.mxu1 %v6627_v48 }
 0x5e2   : > { %6330 = vmatpush3.bf16.msra.mxu1 %v6628_v19 }
 0x5e3   : > { %6331 = vmatprep.subr.bf16.mxu1 %v6629_v26 }
 0x5e6   : > { %6332 = vmatpush3.bf16.msra.mxu1 %v6630_v8 }
 0x5e7   : > { %6333 = vmatprep.subr.bf16.mxu1 %v6631_v9 }
 0x5ea   : > { %6334 = vmatpush3.bf16.msra.mxu1 %v6632_v36 }
 0x5eb   : > { %6335 = vmatprep.subr.bf16.mxu1 %v6633_v4 }
 0x5ee   : > { %6336 = vmatpush3.bf16.msra.mxu1 %v6634_v57 }
 0x5ef   : > { %6480 = vmatprep.subr.bf16.mxu1 %v6999_v51 }
 0x5f1   : > { %3900 = vmatmul.mubr.bf16.vlgmr.msra.gmra.mrb[52].mxu1 %v3522_v20 }
 0x5f2   : > { %6481 = vmatpush3.bf16.msra.mxu1 %v6635_v61  ;;  %6488 = vmatprep.mubr.msk.bf16.mxu1 %vm7008_vm4, %v6999_v51 }
 0x5f3   : > { %6482 = vmatprep.subr.bf16.mxu1 %v6999_v51 }
 0x5f6   : > { %6483 = vmatpush3.bf16.msra.mxu1 %v6636_v18 }
 0x5f7   : > { %6484 = vmatprep.subr.bf16.mxu1 %v6999_v51 }
 0x5fa   : > { %6485 = vmatpush3.bf16.msra.mxu1 %v6637_v42 }
 0x5fb   : > { %6486 = vmatprep.subr.bf16.mxu1 %v6999_v51  ;;  %v6644_v51 = vld [vmem:[%s9754_s9 + $0x14] ss:$8 sps:$4 sm:$0xff]  }
 0x5fc   : > { %4894 = vmatprep.subr.bf16.mxu0 %v6644_v51 }
 0x5fd   : > { %4895 = vmatpush1.bf16.msra.mxu0 %v6642_v7 }
 0x5fe   : > { %6487 = vmatpush3.bf16.msra.mxu1 %v6638_v63  ;;  %4896 = vmatprep.subr.bf16.mxu0 %v6647_v17 }
 0x601   : > { %6489 = vmatmul.mubr.msk.bf16.vlgmr.msra.gmra.mrb[56].mxu1 %vm2858_vm11, %v3499_v45  ;;  %4897 = vmatpush1.bf16.msra.mxu0 %v6645_v2  ;;  %vm5119_vm11 = vcmp.lt.s32.totalorder %v453_v0, 256 }
 0x602   : > { %4898 = vmatprep.subr.bf16.mxu0 %v6650_v41 }
 0x605   : > { %4899 = vmatpush1.bf16.msra.mxu0 %v6648_v53 }
 0x606   : > { %4900 = vmatprep.subr.bf16.mxu0 %v6653_v13 }
 0x609   : > { %4901 = vmatpush1.bf16.msra.mxu0 %v6651_v28 }
 0x60a   : > { %4902 = vmatprep.subr.bf16.mxu0 %v6656_v34 }
 0x60d   : > { %4903 = vmatpush1.bf16.msra.mxu0 %v6654_v23  ;;  %v3980_v23 = vand.u32 1, %v7132_v1 }
 0x60e   : > { %4904 = vmatprep.subr.bf16.mxu0 %v6659_v50 }
 0x60f   : > { %vm3988_vm3 = vcmp.ge.s32.totalorder %v3980_v23, 1  ;;  %vm3989_vm1 = vcmp.le.s32.totalorder %v3980_v23, 0  ;;  %v6855_v23 = vld [vmem:[%s9756_s11 + $0x40] sm:$0xff]  }
 0x610   : > { %vm9119_vm14 = vmpackc.low %vm3988_vm3, %vm3988_vm3  ;;  %6348 = vmatprep.subr.bf16.mxu1 %v6855_v23  ;;  %v6848_v23 = vld [vmem:[%s9754_s9 + $0x454] ss:$8 sps:$4 sm:$0xff]  }
 0x611   : > { %4905 = vmatpush1.bf16.msra.mxu0 %v6657_v14  ;;  %vm9225_vm5 = vmpackc.low %vm3989_vm1, %vm3989_vm1 }
 0x612   : > { %4906 = vmatprep.subr.bf16.mxu0 %v6662_v16 }
 0x615   : > { %4907 = vmatpush1.bf16.msra.mxu0 %v6660_v40  ;;  %v6687_v40 = vld [vmem:[%s9754_s9 + $0x100] ss:$8 sps:$4 sm:$0xff]  }
 0x616   : > { %4908 = vmatprep.subr.bf16.mxu0 %v6665_v27  ;;  %v6842_v27 = vld [vmem:[%s9754_s9 + $0x434] ss:$8 sps:$4 sm:$0xff]  }
 0x619   : > { %4909 = vmatpush1.bf16.msra.mxu0 %v6663_v49 }
 0x61a   : > { %4910 = vmatprep.subr.bf16.mxu0 %v6668_v11 }
 0x61d   : > { %4911 = vmatpush1.bf16.msra.mxu0 %v6666_v59  ;;  %v6692_v59 = vld [vmem:[%s9754_s9 + $0x114] ss:$8 sps:$4 sm:$0xff]  }
 0x61e   : > { %4912 = vmatprep.subr.bf16.mxu0 %v6671_v54 }
 0x621   : > { %4913 = vmatpush1.bf16.msra.mxu0 %v6669_v15  ;;  %v6690_v15 = vld [vmem:[%s9754_s9 + $0x110] ss:$8 sps:$4 sm:$0xff]  }
 0x622   : > { %4914 = vmatprep.subr.bf16.mxu0 %v6674_v56  ;;  %v6695_v56 = vld [vmem:[%s9754_s9 + $0x124] ss:$8 sps:$4 sm:$0xff]  }
 0x625   : > { %4915 = vmatpush1.bf16.msra.mxu0 %v6672_v24  ;;  %v6693_v24 = vld [vmem:[%s9754_s9 + $0x120] ss:$8 sps:$4 sm:$0xff]  }
 0x626   : > { %4916 = vmatprep.subr.bf16.mxu0 %v6677_v58  ;;  %v6698_v58 = vld [vmem:[%s9754_s9 + $0x134] ss:$8 sps:$4 sm:$0xff]  }
 0x629   : > { %4917 = vmatpush1.bf16.msra.mxu0 %v6675_v31  ;;  %v6696_v31 = vld [vmem:[%s9754_s9 + $0x130] ss:$8 sps:$4 sm:$0xff]  }
 0x62a   : > { %4918 = vmatprep.subr.bf16.mxu0 %v6680_v52  ;;  %v6701_v52 = vld [vmem:[%s9754_s9 + $0x144] ss:$8 sps:$4 sm:$0xff]  }
 0x62d   : > { %4919 = vmatpush1.bf16.msra.mxu0 %v6678_v29  ;;  %v6699_v29 = vld [vmem:[%s9754_s9 + $0x140] ss:$8 sps:$4 sm:$0xff]  }
 0x62e   : > { %4920 = vmatprep.subr.bf16.mxu0 %v6683_v10  ;;  %v6702_v10 = vld [vmem:[%s9754_s9 + $0x150] ss:$8 sps:$4 sm:$0xff]  }
 0x631   : > { %4921 = vmatpush1.bf16.msra.mxu0 %v6681_v44  ;;  %v6704_v44 = vld [vmem:[%s9754_s9 + $0x154] ss:$8 sps:$4 sm:$0xff]  }
 0x632   : > { %4922 = vmatprep.subr.bf16.mxu0 %v6686_v30  ;;  %v6707_v30 = vld [vmem:[%s9754_s9 + $0x164] ss:$8 sps:$4 sm:$0xff]  }
 0x635   : > { %4923 = vmatpush1.bf16.msra.mxu0 %v6684_v38  ;;  %v6705_v38 = vld [vmem:[%s9754_s9 + $0x160] ss:$8 sps:$4 sm:$0xff]  }
 0x636   : > { %4933 = vmatprep.subr.bf16.mxu0 %v6689_v46  ;;  %v6710_v46 = vld [vmem:[%s9754_s9 + $0x174] ss:$8 sps:$4 sm:$0xff]  }
 0x6a4   : > { %v6315_v47 = vpop.f32.mrb[48].mxu1 }
 0x6a5   : > { %v6316_v43 = vpop.f32.mrb[49].mxu1 }
 0x6a6   : > { %v6317_v5 = vadd.f32 %v6316_v43, %v6315_v47  ;;  %v6318_v39 = vpop.f32.mrb[50].mxu1  ;;  %v6708_v47 = vld [vmem:[%s9754_s9 + $0x170] ss:$8 sps:$4 sm:$0xff]   ;;  %v6713_v43 = vld [vmem:[%s9754_s9 + $0x184] ss:$8 sps:$4 sm:$0xff]  }
 0x6a7   : > { %v6319_v12 = vpop.f32.mrb[51].mxu1 }
 0x6a8   : > { %v6320_v21 = vadd.f32 %v6319_v12, %v6318_v39  ;;  %v3861_v26 = vadd.f32 %v6317_v5, %v5989_v32  ;;  %v6711_v5 = vld [vmem:[%s9754_s9 + $0x180] ss:$8 sps:$4 sm:$0xff]   ;;  %v6716_v39 = vld [vmem:[%s9754_s9 + $0x194] ss:$8 sps:$4 sm:$0xff]   ;;  %v6714_v12 = vld [vmem:[%s9754_s9 + $0x190] ss:$8 sps:$4 sm:$0xff]  }
 0x6aa   : > { %v3864_v4 = vadd.f32 %v6320_v21, %v5989_v32  ;;  %v6719_v21 = vld [vmem:[%s9754_s9 + $0x1a4] ss:$8 sps:$4 sm:$0xff]   ;;  %v6717_v32 = vld [vmem:[%s9754_s9 + $0x1a0] ss:$8 sps:$4 sm:$0xff]  }
 0x6c4   : > { %v6337_v48 = vpop.f32.mrb[52].mxu1 }
 0x6c5   : > { %v6338_v19 = vpop.f32.mrb[53].mxu1 }
 0x6c6   : > { %v6339_v8 = vadd.f32 %v6338_v19, %v6337_v48  ;;  %v6340_v9 = vpop.f32.mrb[54].mxu1  ;;  %v6722_v48 = vld [vmem:[%s9754_s9 + $0x1b4] ss:$8 sps:$4 sm:$0xff]   ;;  %v6720_v19 = vld [vmem:[%s9754_s9 + $0x1b0] ss:$8 sps:$4 sm:$0xff]  }
 0x6c7   : > { %v6341_v36 = vpop.f32.mrb[55].mxu1 }
 0x6c8   : > { %v6342_v57 = vadd.f32 %v6341_v36, %v6340_v9  ;;  %v3902_v6 = vadd.f32 %v6339_v8, %v3861_v26  ;;  %v6725_v26 = vld [vmem:[%s9754_s9 + $0x1c4] ss:$8 sps:$4 sm:$0xff]   ;;  %v6723_v8 = vld [vmem:[%s9754_s9 + $0x1c0] ss:$8 sps:$4 sm:$0xff]   ;;  %v6728_v9 = vld [vmem:[%s9754_s9 + $0x1d4] ss:$8 sps:$4 sm:$0xff]  }
 0x6c9   : > { %v6726_v36 = vld [vmem:[%s9754_s9 + $0x1d0] ss:$8 sps:$4 sm:$0xff]  }
 0x6ca   : > { %v3905_v37 = vadd.f32 %v6342_v57, %v3864_v4  ;;  %v6731_v4 = vld [vmem:[%s9754_s9 + $0x1e4] ss:$8 sps:$4 sm:$0xff]   ;;  %v6729_v57 = vld [vmem:[%s9754_s9 + $0x1e0] ss:$8 sps:$4 sm:$0xff]  }
 0x6d4   : > { %v3942_v22 = vpop.f32.mrb[56].mxu1 }
 0x6d5   : > { %v3943_v62 = vadd.f32 %v3942_v22, %v3902_v6  ;;  %v6490_v61 = vpop.f32.mrb[57].mxu1  ;;  %v6734_v6 = vld [vmem:[%s9754_s9 + $0x1f4] ss:$8 sps:$4 sm:$0xff]   ;;  %v6737_v22 = vld [vmem:[%s9754_s9 + $0x204] ss:$8 sps:$4 sm:$0xff]  }
 0x6d6   : > { %v3945_v20 = vpop.f32.mrb[58].mxu1  ;;  %v6861_v61 = vld [vmem:[%s9756_s11 + $0x58] sm:$0xff]  }
 0x6d7   : > { %v3949_v18 = vmax.f32 %v3943_v62, 0.0  ;;  %v3946_v42 = vadd.f32 %v3945_v20, %v3905_v37  ;;  %v6491_v55 = vpop.f32.mrb[59].mxu1  ;;  %v6732_v37 = vld [vmem:[%s9754_s9 + $0x1f0] ss:$8 sps:$4 sm:$0xff]   ;;  %v6735_v20 = vld [vmem:[%s9754_s9 + $0x200] ss:$8 sps:$4 sm:$0xff]  }
 0x6d8   : > { %v6738_v55 = vld [vmem:[%s9754_s9 + $0x210] ss:$8 sps:$4 sm:$0xff]  }
 0x6d9   : > { %3951 = vst [vmem:[#allocation8] sm:$0xff] %v3949_v18  ;;  %v3950_v63 = vmax.f32 %v3946_v42, 0.0  ;;  %v6740_v18 = vld [vmem:[%s9754_s9 + $0x214] ss:$8 sps:$4 sm:$0xff]  }
 0x6db   : > { %3952 = vst [vmem:[#allocation8 + $0x8] sm:$0xff] %v3950_v63  ;;  %v6743_v63 = vld [vmem:[%s9754_s9 + $0x224] ss:$8 sps:$4 sm:$0xff]  }
 0x6e0   : > { %v3953_v60 = vld [vmem:[#allocation8] ss:$2 sm:$0x3]  ;;  %v3955_v25 = vld [vmem:[#allocation8 + $0x1] ss:$2 sm:$0x3] }
 0x6e1   : > { %v3957_v45 = vld [vmem:[#allocation8 + $0x4] ss:$2 sm:$0x3]  ;;  %v3959_v3 = vld [vmem:[#allocation8 + $0x5] ss:$2 sm:$0x3]  ;;  %v3960_v35 = vmax.f32 %v3953_v60, %v3955_v25 }
 0x6e2   : > { %v3961_v51 = vmax.f32 %v3957_v45, %v3959_v3  ;;  %v3965_v7 = vld [vmem:[#allocation8 + $0x8] ss:$2 sm:$0x3]  ;;  %v3967_v17 = vld [vmem:[#allocation8 + $0x9] ss:$2 sm:$0x3] }
 0x6e3   : > { %v3969_v2 = vld [vmem:[#allocation8 + $0xc] ss:$2 sm:$0x3]  ;;  %v3971_v41 = vld [vmem:[#allocation8 + $0xd] ss:$2 sm:$0x3]  ;;  %v3972_v53 = vmax.f32 %v3965_v7, %v3967_v17 }
 0x6e4   : > { %v3962_v13 = vmax.f32 %v3960_v35, %v3961_v51  ;;  %v3973_v28 = vmax.f32 %v3969_v2, %v3971_v41  ;;  %v6741_v60 = vld [vmem:[%s9754_s9 + $0x220] ss:$8 sps:$4 sm:$0xff]   ;;  %v6746_v25 = vld [vmem:[%s9754_s9 + $0x234] ss:$8 sps:$4 sm:$0xff]   ;;  %v6744_v45 = vld [vmem:[%s9754_s9 + $0x230] ss:$8 sps:$4 sm:$0xff]  }
 0x6e5   : > { %v6749_v3 = vld [vmem:[%s9754_s9 + $0x244] ss:$8 sps:$4 sm:$0xff]   ;;  %v6747_v35 = vld [vmem:[%s9754_s9 + $0x240] ss:$8 sps:$4 sm:$0xff]   ;;  %v6752_v51 = vld [vmem:[%s9754_s9 + $0x254] ss:$8 sps:$4 sm:$0xff]  }
 0x6e6   : > { %3963 = vst [vmem:[#allocation5 + $0x3] sm:$0x3] %v3962_v13  ;;  %v3974_v34 = vmax.f32 %v3972_v53, %v3973_v28  ;;  %v6750_v7 = vld [vmem:[%s9754_s9 + $0x250] ss:$8 sps:$4 sm:$0xff]   ;;  %v6755_v17 = vld [vmem:[%s9754_s9 + $0x264] ss:$8 sps:$4 sm:$0xff]  }
 0x6e7   : > { %v6753_v2 = vld [vmem:[%s9754_s9 + $0x260] ss:$8 sps:$4 sm:$0xff]   ;;  %v6758_v41 = vld [vmem:[%s9754_s9 + $0x274] ss:$8 sps:$4 sm:$0xff]   ;;  %v6756_v53 = vld [vmem:[%s9754_s9 + $0x270] ss:$8 sps:$4 sm:$0xff]  }
 0x6e8   : > { %3975 = vst [vmem:[#allocation5 + $0x5] sm:$0x3] %v3974_v34  ;;  %v6761_v13 = vld [vmem:[%s9754_s9 + $0x284] ss:$8 sps:$4 sm:$0xff]   ;;  %v6759_v28 = vld [vmem:[%s9754_s9 + $0x280] ss:$8 sps:$4 sm:$0xff]  }
 0x6e9   : > { %v6764_v34 = vld [vmem:[%s9754_s9 + $0x294] ss:$8 sps:$4 sm:$0xff]  }
 0x6ed   : > { %v3995_v14 = vld [vmem:[#allocation5 + $0x1] sm:$0xf] }
 0x6ee   : > { %v3990_v50 = vld [vmem:[#allocation5] sm:$0xf]  ;;  %v3996_v16 = vpack.c.bf16 %v3995_v14, %v3995_v14  ;;  %v6856_v14 = vld [vmem:[%s9756_s11] sm:$0xff]  }
 0x6ef   : > { %v6172_v49 = vpack.c.bf16 %v3990_v50, %v3990_v50  ;;  %v3997_v11 = vld [vmem:[#allocation5 + $0x2] sm:$0xf]  ;;  %6349 = vmatpush3.bf16.msra.mxu1 %v6856_v14 }
 0x6f0   : > { %4924 = vmatprep.mubr.bf16.mxu0 %v3996_v16  ;;  %v9126_v54 = vpack.c.bf16 %v3997_v11, %v3997_v11  ;;  %v4006_v62 = vld [vmem:[#allocation5 + $0x4] sm:$0xf]  ;;  %v6762_v50 = vld [vmem:[%s9754_s9 + $0x290] ss:$8 sps:$4 sm:$0xff]   ;;  %v6767_v16 = vld [vmem:[%s9754_s9 + $0x2a4] ss:$8 sps:$4 sm:$0xff]  }
 0x6f1   : > { %6173 = vmatmul.mubr.msk.bf16.vlgmr.msra.gmra.mrb[8].mxu0 %vm9119_vm14, %v6172_v49  ;;  %v9235_v42 = vpack.c.bf16 %v4006_v62, %v4006_v62  ;;  %v6770_v49 = vld [vmem:[%s9754_s9 + $0x2b4] ss:$8 sps:$4 sm:$0xff]   ;;  %v6768_v11 = vld [vmem:[%s9754_s9 + $0x2b0] ss:$8 sps:$4 sm:$0xff]   ;;  %v6815_v62 = vld [vmem:[%s9754_s9 + $0x3a4] ss:$8 sps:$4 sm:$0xff]  }
 0x6f2   : > { %4934 = vmatpush1.bf16.msra.mxu0 %v6687_v40  ;;  %6176 = vmatprep.mubr.msk.bf16.mxu0 %vm9119_vm14, %v9126_v54  ;;  %v6765_v40 = vld [vmem:[%s9754_s9 + $0x2a0] ss:$8 sps:$4 sm:$0xff]   ;;  %v6846_v14 = vld [vmem:[%s9754_s9 + $0x450] ss:$8 sps:$4 sm:$0xff]  }
 0x6f3   : > { %4935 = vmatprep.subr.bf16.mxu0 %v6692_v59  ;;  %v6773_v59 = vld [vmem:[%s9754_s9 + $0x2c4] ss:$8 sps:$4 sm:$0xff]  }
 0x6f6   : > { %4936 = vmatpush1.bf16.msra.mxu0 %v6690_v15  ;;  %v6776_v15 = vld [vmem:[%s9754_s9 + $0x2d4] ss:$8 sps:$4 sm:$0xff]  }
 0x6f7   : > { %4937 = vmatprep.subr.bf16.mxu0 %v6695_v56  ;;  %v6774_v56 = vld [vmem:[%s9754_s9 + $0x2d0] ss:$8 sps:$4 sm:$0xff]  }
 0x6fa   : > { %4938 = vmatpush1.bf16.msra.mxu0 %v6693_v24  ;;  %v6779_v24 = vld [vmem:[%s9754_s9 + $0x2e4] ss:$8 sps:$4 sm:$0xff]  }
 0x6fb   : > { %4939 = vmatprep.subr.bf16.mxu0 %v6698_v58  ;;  %v6777_v58 = vld [vmem:[%s9754_s9 + $0x2e0] ss:$8 sps:$4 sm:$0xff]  }
 0x6fe   : > { %4940 = vmatpush1.bf16.msra.mxu0 %v6696_v31  ;;  %v6782_v31 = vld [vmem:[%s9754_s9 + $0x2f4] ss:$8 sps:$4 sm:$0xff]  }
 0x6ff   : > { %4941 = vmatprep.subr.bf16.mxu0 %v6701_v52  ;;  %v6780_v52 = vld [vmem:[%s9754_s9 + $0x2f0] ss:$8 sps:$4 sm:$0xff]  }
 0x702   : > { %4942 = vmatpush1.bf16.msra.mxu0 %v6699_v29  ;;  %v6785_v29 = vld [vmem:[%s9754_s9 + $0x304] ss:$8 sps:$4 sm:$0xff]  }
 0x703   : > { %4943 = vmatprep.subr.bf16.mxu0 %v6704_v44  ;;  %v4004_v44 = vld [vmem:[#allocation5 + $0x3] sm:$0xf] }
 0x706   : > { %4944 = vmatpush1.bf16.msra.mxu0 %v6702_v10  ;;  %v4011_v10 = vld [vmem:[#allocation5 + $0x5] sm:$0xf] }
 0x707   : > { %4945 = vmatprep.subr.bf16.mxu0 %v6707_v30  ;;  %v6783_v30 = vld [vmem:[%s9754_s9 + $0x300] ss:$8 sps:$4 sm:$0xff]  }
 0x70a   : > { %4946 = vmatpush1.bf16.msra.mxu0 %v6705_v38  ;;  %v4005_v38 = vpack.c.bf16 %v4004_v44, %v4004_v44  ;;  %v6866_v44 = vld [vmem:[%s9756_s11 + $0x28] sm:$0xff]  }
 0x70b   : > { %4947 = vmatprep.subr.bf16.mxu0 %v6710_v46  ;;  %v6788_v46 = vld [vmem:[%s9754_s9 + $0x314] ss:$8 sps:$4 sm:$0xff]  }
 0x70e   : > { %4948 = vmatpush1.bf16.msra.mxu0 %v6708_v47  ;;  %v4012_v47 = vpack.c.bf16 %v4011_v10, %v4011_v10  ;;  %v6867_v10 = vld [vmem:[%s9756_s11 + $0x70] sm:$0xff]  }
 0x70f   : > { %4949 = vmatprep.subr.bf16.mxu0 %v6713_v43  ;;  %v6786_v43 = vld [vmem:[%s9754_s9 + $0x310] ss:$8 sps:$4 sm:$0xff]  }
 0x712   : > { %4950 = vmatpush1.bf16.msra.mxu0 %v6711_v5  ;;  %v6791_v5 = vld [vmem:[%s9754_s9 + $0x324] ss:$8 sps:$4 sm:$0xff]  }
 0x713   : > { %4951 = vmatprep.subr.bf16.mxu0 %v6716_v39  ;;  %v6789_v39 = vld [vmem:[%s9754_s9 + $0x320] ss:$8 sps:$4 sm:$0xff]  }
 0x716   : > { %4952 = vmatpush1.bf16.msra.mxu0 %v6714_v12  ;;  %v6794_v12 = vld [vmem:[%s9754_s9 + $0x334] ss:$8 sps:$4 sm:$0xff]  }
 0x717   : > { %4953 = vmatprep.subr.bf16.mxu0 %v6719_v21  ;;  %v6792_v21 = vld [vmem:[%s9754_s9 + $0x330] ss:$8 sps:$4 sm:$0xff]  }
 0x71a   : > { %4954 = vmatpush1.bf16.msra.mxu0 %v6717_v32  ;;  %v6797_v32 = vld [vmem:[%s9754_s9 + $0x344] ss:$8 sps:$4 sm:$0xff]  }
 0x71b   : > { %4955 = vmatprep.subr.bf16.mxu0 %v6722_v48  ;;  %v6795_v48 = vld [vmem:[%s9754_s9 + $0x340] ss:$8 sps:$4 sm:$0xff]  }
 0x71e   : > { %4956 = vmatpush1.bf16.msra.mxu0 %v6720_v19  ;;  %v6800_v19 = vld [vmem:[%s9754_s9 + $0x354] ss:$8 sps:$4 sm:$0xff]  }
 0x71f   : > { %4957 = vmatprep.subr.bf16.mxu0 %v6725_v26  ;;  %v6798_v26 = vld [vmem:[%s9754_s9 + $0x350] ss:$8 sps:$4 sm:$0xff]  }
 0x722   : > { %4958 = vmatpush1.bf16.msra.mxu0 %v6723_v8  ;;  %v6803_v8 = vld [vmem:[%s9754_s9 + $0x364] ss:$8 sps:$4 sm:$0xff]  }
 0x723   : > { %4959 = vmatprep.subr.bf16.mxu0 %v6728_v9  ;;  %v6801_v9 = vld [vmem:[%s9754_s9 + $0x360] ss:$8 sps:$4 sm:$0xff]  }
 0x726   : > { %4960 = vmatpush1.bf16.msra.mxu0 %v6726_v36  ;;  %v6806_v36 = vld [vmem:[%s9754_s9 + $0x374] ss:$8 sps:$4 sm:$0xff]  }
 0x727   : > { %4961 = vmatprep.subr.bf16.mxu0 %v6731_v4  ;;  %v6804_v4 = vld [vmem:[%s9754_s9 + $0x370] ss:$8 sps:$4 sm:$0xff]  }
 0x72a   : > { %4962 = vmatpush1.bf16.msra.mxu0 %v6729_v57  ;;  %v6809_v57 = vld [vmem:[%s9754_s9 + $0x384] ss:$8 sps:$4 sm:$0xff]  }
 0x72b   : > { %4963 = vmatprep.subr.bf16.mxu0 %v6734_v6  ;;  %v6807_v6 = vld [vmem:[%s9754_s9 + $0x380] ss:$8 sps:$4 sm:$0xff]  }
 0x72e   : > { %4964 = vmatpush1.bf16.msra.mxu0 %v6732_v37  ;;  %v6812_v37 = vld [vmem:[%s9754_s9 + $0x394] ss:$8 sps:$4 sm:$0xff]  }
 0x72f   : > { %4974 = vmatprep.subr.bf16.mxu0 %v6737_v22  ;;  %v6810_v22 = vld [vmem:[%s9754_s9 + $0x390] ss:$8 sps:$4 sm:$0xff]  }
 0x731   : > { %6179 = vmatmul.mubr.msk.bf16.vlgmr.msra.gmra.mrb[8].mxu0 %vm9225_vm5, %v9126_v54  ;;  %v6771_v54 = vld [vmem:[%s9754_s9 + $0x2c0] ss:$8 sps:$4 sm:$0xff]  }
 0x732   : > { %4975 = vmatpush1.bf16.msra.mxu0 %v6735_v20  ;;  %6182 = vmatprep.mubr.msk.bf16.mxu0 %vm9225_vm5, %v9235_v42  ;;  %v6813_v20 = vld [vmem:[%s9754_s9 + $0x3a0] ss:$8 sps:$4 sm:$0xff]  }
 0x733   : > { %4976 = vmatprep.subr.bf16.mxu0 %v6740_v18  ;;  %v6818_v18 = vld [vmem:[%s9754_s9 + $0x3b4] ss:$8 sps:$4 sm:$0xff]  }
 0x736   : > { %4977 = vmatpush1.bf16.msra.mxu0 %v6738_v55  ;;  %v6816_v55 = vld [vmem:[%s9754_s9 + $0x3b0] ss:$8 sps:$4 sm:$0xff]  }
 0x737   : > { %4978 = vmatprep.subr.bf16.mxu0 %v6743_v63  ;;  %v6821_v63 = vld [vmem:[%s9754_s9 + $0x3c4] ss:$8 sps:$4 sm:$0xff]  }
 0x73a   : > { %4979 = vmatpush1.bf16.msra.mxu0 %v6741_v60  ;;  %v6819_v60 = vld [vmem:[%s9754_s9 + $0x3c0] ss:$8 sps:$4 sm:$0xff]  }
 0x73b   : > { %4980 = vmatprep.subr.bf16.mxu0 %v6746_v25  ;;  %v6824_v25 = vld [vmem:[%s9754_s9 + $0x3d4] ss:$8 sps:$4 sm:$0xff]  }
 0x73e   : > { %4981 = vmatpush1.bf16.msra.mxu0 %v6744_v45  ;;  %v6822_v45 = vld [vmem:[%s9754_s9 + $0x3d0] ss:$8 sps:$4 sm:$0xff]  }
 0x73f   : > { %4982 = vmatprep.subr.bf16.mxu0 %v6749_v3  ;;  %v6827_v3 = vld [vmem:[%s9754_s9 + $0x3e4] ss:$8 sps:$4 sm:$0xff]  }
 0x742   : > { %4983 = vmatpush1.bf16.msra.mxu0 %v6747_v35  ;;  %v6825_v35 = vld [vmem:[%s9754_s9 + $0x3e0] ss:$8 sps:$4 sm:$0xff]  }
 0x743   : > { %4984 = vmatprep.subr.bf16.mxu0 %v6752_v51  ;;  %v6830_v51 = vld [vmem:[%s9754_s9 + $0x3f4] ss:$8 sps:$4 sm:$0xff]  }
 0x746   : > { %4985 = vmatpush1.bf16.msra.mxu0 %v6750_v7  ;;  %v6828_v7 = vld [vmem:[%s9754_s9 + $0x3f0] ss:$8 sps:$4 sm:$0xff]  }
 0x747   : > { %4986 = vmatprep.subr.bf16.mxu0 %v6755_v17  ;;  %v6833_v17 = vld [vmem:[%s9754_s9 + $0x404] ss:$8 sps:$4 sm:$0xff]  }
 0x74a   : > { %4987 = vmatpush1.bf16.msra.mxu0 %v6753_v2  ;;  %v6831_v2 = vld [vmem:[%s9754_s9 + $0x400] ss:$8 sps:$4 sm:$0xff]  }
 0x74b   : > { %4988 = vmatprep.subr.bf16.mxu0 %v6758_v41  ;;  %v6836_v41 = vld [vmem:[%s9754_s9 + $0x414] ss:$8 sps:$4 sm:$0xff]  }
 0x74e   : > { %4989 = vmatpush1.bf16.msra.mxu0 %v6756_v53  ;;  %v6834_v53 = vld [vmem:[%s9754_s9 + $0x410] ss:$8 sps:$4 sm:$0xff]  }
 0x74f   : > { %4990 = vmatprep.subr.bf16.mxu0 %v6761_v13  ;;  %v6839_v13 = vld [vmem:[%s9754_s9 + $0x424] ss:$8 sps:$4 sm:$0xff]  }
 0x752   : > { %4991 = vmatpush1.bf16.msra.mxu0 %v6759_v28  ;;  %v6837_v28 = vld [vmem:[%s9754_s9 + $0x420] ss:$8 sps:$4 sm:$0xff]  }
 0x753   : > { %4992 = vmatprep.subr.bf16.mxu0 %v6764_v34  ;;  %v6843_v34 = vld [vmem:[%s9754_s9 + $0x440] ss:$8 sps:$4 sm:$0xff]  }
 0x756   : > { %4993 = vmatpush1.bf16.msra.mxu0 %v6762_v50  ;;  %v6851_v50 = vld [vmem:[%s9754_s9 + $0x464] ss:$8 sps:$4 sm:$0xff]  }
 0x757   : > { %4994 = vmatprep.subr.bf16.mxu0 %v6767_v16  ;;  %v6849_v16 = vld [vmem:[%s9754_s9 + $0x460] ss:$8 sps:$4 sm:$0xff]  }
 0x75a   : > { %4995 = vmatpush1.bf16.msra.mxu0 %v6765_v40  ;;  %v6854_v40 = vld [vmem:[%s9754_s9 + $0x474] ss:$8 sps:$4 sm:$0xff]  }
 0x75b   : > { %4996 = vmatprep.subr.bf16.mxu0 %v6770_v49  ;;  %v6852_v49 = vld [vmem:[%s9754_s9 + $0x470] ss:$8 sps:$4 sm:$0xff]  }
 0x75e   : > { %4997 = vmatpush1.bf16.msra.mxu0 %v6768_v11  ;;  %v4013_v11 = vld [vmem:[#allocation5 + $0x6] sm:$0xf] }
 0x75f   : > { %4998 = vmatprep.subr.bf16.mxu0 %v6773_v59  ;;  %v6187_v59 = vpack.c.bf16 %v4013_v11, %v4013_v11  ;;  %v5150_v11 = vsub.s32 2, %v7132_v1 }
 0x762   : > { %4999 = vmatpush1.bf16.msra.mxu0 %v6771_v54  ;;  %v6857_v54 = vld [vmem:[%s9756_s11 + $0x48] sm:$0xff]  }
 0x763   : > { %5000 = vmatprep.subr.bf16.mxu0 %v6776_v15  ;;  %v6858_v15 = vld [vmem:[%s9756_s11 + $0x8] sm:$0xff]   ;;  %6350 = vmatprep.subr.bf16.mxu1 %v6857_v54  ;;  %v6886_v54 = vld [vmem:[%s9756_s11 + $0xb8] sm:$0xff]  }
 0x764   : > { %6351 = vmatpush3.bf16.msra.mxu1 %v6858_v15 }
 0x766   : > { %5001 = vmatpush1.bf16.msra.mxu0 %v6774_v56  ;;  %v6859_v56 = vld [vmem:[%s9756_s11 + $0x50] sm:$0xff]  }
 0x767   : > { %5002 = vmatprep.subr.bf16.mxu0 %v6779_v24  ;;  %v6860_v24 = vld [vmem:[%s9756_s11 + $0x10] sm:$0xff]   ;;  %6352 = vmatprep.subr.bf16.mxu1 %v6859_v56  ;;  %v6887_v56 = vld [vmem:[%s9756_s11 + $0x140] sm:$0xff]  }
 0x768   : > { %6353 = vmatpush3.bf16.msra.mxu1 %v6860_v24 }
 0x769   : > { %6354 = vmatprep.subr.bf16.mxu1 %v6861_v61  ;;  %v6888_v61 = vld [vmem:[%s9756_s11 + $0x100] sm:$0xff]  }
 0x76a   : > { %5003 = vmatpush1.bf16.msra.mxu0 %v6777_v58  ;;  %v6862_v58 = vld [vmem:[%s9756_s11 + $0x18] sm:$0xff]  }
 0x76b   : > { %5004 = vmatprep.subr.bf16.mxu0 %v6782_v31  ;;  %v6863_v31 = vld [vmem:[%s9756_s11 + $0x60] sm:$0xff]  }
 0x76c   : > { %6355 = vmatpush3.bf16.msra.mxu1 %v6862_v58 }
 0x76d   : > { %6356 = vmatprep.subr.bf16.mxu1 %v6863_v31  ;;  %v6889_v31 = vld [vmem:[%s9756_s11 + $0x148] sm:$0xff]  }
 0x76e   : > { %5005 = vmatpush1.bf16.msra.mxu0 %v6780_v52  ;;  %v6864_v52 = vld [vmem:[%s9756_s11 + $0x20] sm:$0xff]  }
 0x76f   : > { %5015 = vmatprep.subr.bf16.mxu0 %v6785_v29  ;;  %v6865_v29 = vld [vmem:[%s9756_s11 + $0x68] sm:$0xff]  }
 0x770   : > { %6357 = vmatpush3.bf16.msra.mxu1 %v6864_v52 }
 0x771   : > { %5007 = vmatmul.mubr.bf16.vlgmr.msra.gmra.mrb[8].mxu0 %v4005_v38  ;;  %6358 = vmatprep.subr.bf16.mxu1 %v6865_v29  ;;  %v6869_v38 = vld [vmem:[%s9756_s11 + $0x78] sm:$0xff]   ;;  %v6890_v29 = vld [vmem:[%s9756_s11 + $0x108] sm:$0xff]  }
 0x772   : > { %5016 = vmatpush1.bf16.msra.mxu0 %v6783_v30  ;;  %5047 = vmatprep.mubr.bf16.mxu0 %v4012_v47  ;;  %v6868_v30 = vld [vmem:[%s9756_s11 + $0x30] sm:$0xff]   ;;  %v6871_v47 = vld [vmem:[%s9756_s11 + $0xc0] sm:$0xff]  }
 0x773   : > { %5017 = vmatprep.subr.bf16.mxu0 %v6788_v46  ;;  %v6870_v46 = vld [vmem:[%s9756_s11 + $0x38] sm:$0xff]  }
 0x774   : > { %6359 = vmatpush3.bf16.msra.mxu1 %v6866_v44  ;;  %v6891_v44 = vld [vmem:[%s9756_s11 + $0x150] sm:$0xff]  }
 0x775   : > { %6360 = vmatprep.subr.bf16.mxu1 %v6867_v10  ;;  %v6892_v10 = vld [vmem:[%s9756_s11 + $0x110] sm:$0xff]  }
 0x776   : > { %5018 = vmatpush1.bf16.msra.mxu0 %v6786_v43  ;;  %v4164_v43 = vsub.s32 0, %v7132_v1 }
 0x777   : > { %5019 = vmatprep.subr.bf16.mxu0 %v6791_v5  ;;  %v4160_v5 = vld [vmem:[%s9755_s10] sm:$0x3] }
 0x778   : > { %6361 = vmatpush3.bf16.msra.mxu1 %v6868_v30  ;;  %v6893_v30 = vld [vmem:[%s9756_s11 + $0x158] sm:$0xff]  }
 0x779   : > { %6362 = vmatprep.subr.bf16.mxu1 %v6869_v38  ;;  %v6894_v38 = vld [vmem:[%s9756_s11 + $0x118] sm:$0xff]  }
 0x77a   : > { %5020 = vmatpush1.bf16.msra.mxu0 %v6789_v39  ;;  %v4168_v39 = vsub.s32 1, %v7132_v1 }
 0x77b   : > { %5021 = vmatprep.subr.bf16.mxu0 %v6794_v12  ;;  %v7009_v12 = vmov 1966171168  }
 0x77c   : > { %6363 = vmatpush3.bf16.msra.mxu1 %v6870_v46  ;;  %v6895_v46 = vld [vmem:[%s9756_s11 + $0x160] sm:$0xff]  }
 0x77d   : > { %6370 = vmatprep.subr.bf16.mxu1 %v6871_v47  ;;  %v6896_v47 = vld [vmem:[%s9756_s11 + $0x120] sm:$0xff]  }
 0x77e   : > { %5022 = vmatpush1.bf16.msra.mxu0 %v6792_v21  ;;  %v5103_v21 = vunpack.c.l.s4 %v7009_v12  ;;  %v6900_v12 = vld [vmem:[%s9756_s11 + $0x130] sm:$0xff]  }
 0x77f   : > { %5023 = vmatprep.subr.bf16.mxu0 %v6797_v32  ;;  %v4165_v32 = vrot.slane %v4160_v5, %v4164_v43 }
 0x782   : > { %5024 = vmatpush1.bf16.msra.mxu0 %v6795_v48  ;;  %v4169_v48 = vrot.slane %v4160_v5, %v4168_v39  ;;  %v6898_v5 = vld [vmem:[%s9756_s11 + $0x128] sm:$0xff]  }
 0x783   : > { %5025 = vmatprep.subr.bf16.mxu0 %v6800_v19 }
 0x786   : > { %5026 = vmatpush1.bf16.msra.mxu0 %v6798_v26  ;;  %v5104_v26 = vunpack.c.0.s8 %v5103_v21  ;;  %v6901_v21 = vld [vmem:[%s9756_s11 + $0x178] sm:$0xff]  }
 0x787   : > { %5027 = vmatprep.subr.bf16.mxu0 %v6803_v8 }
 0x78a   : > { %5028 = vmatpush1.bf16.msra.mxu0 %v6801_v9 }
 0x78b   : > { %5029 = vmatprep.subr.bf16.mxu0 %v6806_v36 }
 0x78e   : > { %5030 = vmatpush1.bf16.msra.mxu0 %v6804_v4 }
 0x78f   : > { %5031 = vmatprep.subr.bf16.mxu0 %v6809_v57 }
 0x792   : > { %5032 = vmatpush1.bf16.msra.mxu0 %v6807_v6 }
 0x793   : > { %5033 = vmatprep.subr.bf16.mxu0 %v6812_v37 }
 0x796   : > { %5034 = vmatpush1.bf16.msra.mxu0 %v6810_v22  ;;  %v5107_v22 = vsub.s32 %v5104_v26, %v7132_v1 }
 0x797   : > { %5035 = vmatprep.subr.bf16.mxu0 %v6815_v62 }
 0x79a   : > { %5036 = vmatpush1.bf16.msra.mxu0 %v6813_v20 }
 0x79b   : > { %5037 = vmatprep.subr.bf16.mxu0 %v6818_v18 }
 0x79e   : > { %5038 = vmatpush1.bf16.msra.mxu0 %v6816_v55 }
 0x79f   : > { %5039 = vmatprep.subr.bf16.mxu0 %v6821_v63 }
 0x7a2   : > { %5040 = vmatpush1.bf16.msra.mxu0 %v6819_v60 }
 0x7a3   : > { %5041 = vmatprep.subr.bf16.mxu0 %v6824_v25 }
 0x7a6   : > { %5042 = vmatpush1.bf16.msra.mxu0 %v6822_v45  ;;  %v5154_v45 = vsub.s32 3, %v7132_v1 }
 0x7a7   : > { %5043 = vmatprep.subr.bf16.mxu0 %v6827_v3 }
 0x7aa   : > { %5044 = vmatpush1.bf16.msra.mxu0 %v6825_v35 }
 0x7ab   : > { %5045 = vmatprep.subr.bf16.mxu0 %v6830_v51 }
 0x7ae   : > { %5046 = vmatpush1.bf16.msra.mxu0 %v6828_v7 }
 0x7af   : > { %5056 = vmatprep.subr.bf16.mxu0 %v6833_v17 }
 0x7b1   : > { %6185 = vmatmul.mubr.msk.bf16.vlgmr.msra.gmra.mrb[8].mxu0 %vm9119_vm14, %v9235_v42  ;;  %v6845_v42 = vld [vmem:[%s9754_s9 + $0x444] ss:$8 sps:$4 sm:$0xff]  }
 0x7b2   : > { %5057 = vmatpush1.bf16.msra.mxu0 %v6831_v2  ;;  %5088 = vmatprep.mubr.bf16.mxu0 %v7000_v33  ;;  %v6840_v33 = vld [vmem:[%s9754_s9 + $0x430] ss:$8 sps:$4 sm:$0xff]   ;;  %v6872_v2 = vld [vmem:[%s9756_s11 + $0x80] sm:$0xff]  }
 0x7b3   : > { %5058 = vmatprep.subr.bf16.mxu0 %v6836_v41  ;;  %v6873_v41 = vld [vmem:[%s9756_s11 + $0xc8] sm:$0xff]  }
 0x7b6   : > { %5059 = vmatpush1.bf16.msra.mxu0 %v6834_v53 }
 0x7b7   : > { %5060 = vmatprep.subr.bf16.mxu0 %v6839_v13  ;;  %v6874_v13 = vld [vmem:[%s9756_s11 + $0x88] sm:$0xff]  }
 0x7ba   : > { %5061 = vmatpush1.bf16.msra.mxu0 %v6837_v28  ;;  %v6875_v28 = vld [vmem:[%s9756_s11 + $0xd0] sm:$0xff]  }
 0x7bb   : > { %5062 = vmatprep.subr.bf16.mxu0 %v6842_v27  ;;  %v6876_v27 = vld [vmem:[%s9756_s11 + $0x90] sm:$0xff]  }
 0x7be   : > { %5063 = vmatpush1.bf16.msra.mxu0 %v6840_v33  ;;  %v6877_v33 = vld [vmem:[%s9756_s11 + $0xd8] sm:$0xff]  }
 0x7bf   : > { %5064 = vmatprep.subr.bf16.mxu0 %v6845_v42  ;;  %v6878_v42 = vld [vmem:[%s9756_s11 + $0x98] sm:$0xff]  }
 0x7c2   : > { %5065 = vmatpush1.bf16.msra.mxu0 %v6843_v34  ;;  %v6879_v34 = vld [vmem:[%s9756_s11 + $0xe0] sm:$0xff]  }
 0x7c3   : > { %5066 = vmatprep.subr.bf16.mxu0 %v6848_v23  ;;  %v6880_v23 = vld [vmem:[%s9756_s11 + $0xa0] sm:$0xff]  }
 0x7c6   : > { %5067 = vmatpush1.bf16.msra.mxu0 %v6846_v14  ;;  %v6881_v14 = vld [vmem:[%s9756_s11 + $0xe8] sm:$0xff]  }
 0x7c7   : > { %5068 = vmatprep.subr.bf16.mxu0 %v6851_v50  ;;  %v6882_v50 = vld [vmem:[%s9756_s11 + $0xa8] sm:$0xff]  }
 0x7ca   : > { %5069 = vmatpush1.bf16.msra.mxu0 %v6849_v16  ;;  %v6883_v16 = vld [vmem:[%s9756_s11 + $0xf0] sm:$0xff]  }
 0x7cb   : > { %5070 = vmatprep.subr.bf16.mxu0 %v6854_v40  ;;  %v6884_v40 = vld [vmem:[%s9756_s11 + $0xb0] sm:$0xff]  }
 0x7ce   : > { %5071 = vmatpush1.bf16.msra.mxu0 %v6852_v49  ;;  %v6885_v49 = vld [vmem:[%s9756_s11 + $0xf8] sm:$0xff]  }
 0x7d1   : > { %6188 = vmatmul.mubr.msk.bf16.vlgmr.msra.gmra.mrb[8].mxu0 %vm9225_vm5, %v6187_v59  ;;  %v5162_v59 = vsub.s32 5, %v7132_v1 }
 0x8a4   : > { %v5090_v19 = vpop.f32.mrb[8].mxu0 }
 0x8a5   : > { %v6496_v8 = vadd.f32 %v5090_v19, %v4165_v32  ;;  %v5092_v9 = vpop.f32.mrb[9].mxu0  ;;  %v5158_v32 = vsub.s32 4, %v7132_v1  ;;  %v6902_v19 = vld [vmem:[%s9756_s11 + $0x138] sm:$0xff]  }
 0x8a6   : > { %v6497_v36 = vadd.f32 %v5092_v9, %v4169_v48  ;;  %v5094_v4 = vpop.f32.mrb[10].mxu0  ;;  %v5170_v48 = vsub.s32 7, %v7132_v1 }
 0x8a7   : > { %v5097_v57 = vmax.f32 %v6496_v8, 0.0  ;;  %v5095_v6 = vpop.f32.mrb[11].mxu0  ;;  %v6903_v8 = vld [vmem:[%s9756_s11 + $0x1c0] sm:$0xff]  }
 0x8a8   : > { %v5098_v37 = vmax.f32 %v6497_v36, 0.0  ;;  %v6904_v36 = vld [vmem:[%s9756_s11 + $0x180] sm:$0xff]  }
 0x8aa   : > { %v5101_v62 = vcombine.low %v5097_v57, %v5098_v37  ;;  %v6905_v57 = vld [vmem:[%s9756_s11 + $0x1c8] sm:$0xff]  }
 0x8ab   : > { %v6906_v37 = vld [vmem:[%s9756_s11 + $0x188] sm:$0xff]  }
 0x8ac   : > { %v5108_v20 = vrot.slane %v5101_v62, %v5107_v22  ;;  %v6908_v62 = vld [vmem:[%s9756_s11 + $0x190] sm:$0xff]  }
 0x8ae   : > { %v5115_v18 = vrot.slane %v5108_v20, %v5107_v22  ;;  %v5122_v55 = vcombine.high %v5108_v20, %v5108_v20  ;;  %v6909_v20 = vld [vmem:[%s9756_s11 + $0x1d8] sm:$0xff]  }
 0x8b0   : > { %5121 = vst.msk [vmem:[#allocation9] sm:$0x3] %vm5119_vm11, %v5115_v18  ;;  %v5129_v63 = vrot.slane %v5122_v55, %v5107_v22  ;;  %v5132_v60 = vcombine.high %v5115_v18, %v5115_v18  ;;  %v6907_v22 = vld [vmem:[%s9756_s11 + $0x1d0] sm:$0xff]   ;;  %v6910_v18 = vld [vmem:[%s9756_s11 + $0x198] sm:$0xff]   ;;  %v6911_v55 = vld [vmem:[%s9756_s11 + $0x1e0] sm:$0xff]  }
 0x8b2   : > { %5131 = vst.msk [vmem:[#allocation9 + $0x2] sm:$0x3] %vm5119_vm11, %v5129_v63  ;;  %5134 = vst.msk [vmem:[#allocation9 + $0x4] sm:$0x3] %vm5119_vm11, %v5132_v60  ;;  %v5135_v25 = vcombine.high %v5129_v63, %v5129_v63  ;;  %v6912_v63 = vld [vmem:[%s9756_s11 + $0x1a0] sm:$0xff]   ;;  %v6913_v60 = vld [vmem:[%s9756_s11 + $0x1e8] sm:$0xff]  }
 0x8b4   : > { %5137 = vst.msk [vmem:[#allocation9 + $0x6] sm:$0x3] %vm5119_vm11, %v5135_v25  ;;  %v6914_v25 = vld [vmem:[%s9756_s11 + $0x1a8] sm:$0xff]  }
 0x8bb   : > { %v9539_v3 = vld [vmem:[#allocation9] sm:$0xff] }
 0x8bc   : > { %v5147_v35 = vrot.slane %v9539_v3, %v4168_v39  ;;  %v5143_v51 = vrot.slane %v9539_v3, %v4164_v43  ;;  %v5155_v7 = vrot.slane %v9539_v3, %v5154_v45  ;;  %v5151_v15 = vrot.slane %v9539_v3, %v5150_v11  ;;  %v6897_v43 = vld [vmem:[%s9756_s11 + $0x168] sm:$0xff]   ;;  %v6899_v39 = vld [vmem:[%s9756_s11 + $0x170] sm:$0xff]  }
 0x8bd   : > { %v5163_v24 = vrot.slane %v9539_v3, %v5162_v59  ;;  %v5159_v26 = vrot.slane %v9539_v3, %v5158_v32  ;;  %v5171_v9 = vrot.slane %v9539_v3, %v5170_v48  ;;  %v6915_v45 = vld [vmem:[%s9756_s11 + $0x1f0] sm:$0xff]  }
 0x8be   : > { %v5181_v0 = vpack.c.bf16 %v5147_v35, %v5147_v35  ;;  %v5180_v17 = vpack.c.bf16 %v5143_v51, %v5143_v51  ;;  %v5183_v53 = vpack.c.bf16 %v5155_v7, %v5155_v7  ;;  %v5182_v58 = vpack.c.bf16 %v5151_v15, %v5151_v15  ;;  %v6916_v35 = vld [vmem:[%s9756_s11 + $0x1b0] sm:$0xff]   ;;  %v6917_v51 = vld [vmem:[%s9756_s11 + $0x1f8] sm:$0xff]  }
 0x8bf   : > { %v5185_v52 = vpack.c.bf16 %v5163_v24, %v5163_v24  ;;  %v5184_v4 = vpack.c.bf16 %v5159_v26, %v5159_v26  ;;  %v5187_v6 = vpack.c.bf16 %v5171_v9, %v5171_v9  ;;  %v5166_v7 = vsub.s32 6, %v7132_v1  ;;  %v5316_v1 = vld [vmem:[%s9757_s12] sm:$0x1] }
 0x8c0   : > { %5733 = vmatprep.mubr.bf16.mxu1 %v5181_v0  ;;  %v6918_v0 = vld [vmem:[%s9756_s11 + $0x1b8] sm:$0xff]  }
 0x8c1   : > { %5734 = vmatmul.mubr.bf16.vlgmr.msra.gmra.mrb[60].mxu1 %v5180_v17  ;;  %v5167_v17 = vrot.slane %v9539_v3, %v5166_v7 }
 0x8c2   : > { %6371 = vmatpush3.bf16.msra.mxu1 %v6872_v2  ;;  %5773 = vmatprep.mubr.bf16.mxu1 %v5183_v53 }
 0x8c3   : > { %6372 = vmatprep.subr.bf16.mxu1 %v6873_v41  ;;  %v5186_v2 = vpack.c.bf16 %v5167_v17, %v5167_v17 }
 0x8c6   : > { %6373 = vmatpush3.bf16.msra.mxu1 %v6874_v13 }
 0x8c7   : > { %6374 = vmatprep.subr.bf16.mxu1 %v6875_v28 }
 0x8ca   : > { %6375 = vmatpush3.bf16.msra.mxu1 %v6876_v27 }
 0x8cb   : > { %6376 = vmatprep.subr.bf16.mxu1 %v6877_v33 }
 0x8ce   : > { %6377 = vmatpush3.bf16.msra.mxu1 %v6878_v42 }
 0x8cf   : > { %6378 = vmatprep.subr.bf16.mxu1 %v6879_v34 }
 0x8d2   : > { %6379 = vmatpush3.bf16.msra.mxu1 %v6880_v23 }
 0x8d3   : > { %6380 = vmatprep.subr.bf16.mxu1 %v6881_v14 }
 0x8d6   : > { %6381 = vmatpush3.bf16.msra.mxu1 %v6882_v50 }
 0x8d7   : > { %6382 = vmatprep.subr.bf16.mxu1 %v6883_v16 }
 0x8da   : > { %6383 = vmatpush3.bf16.msra.mxu1 %v6884_v40 }
 0x8db   : > { %6384 = vmatprep.subr.bf16.mxu1 %v6885_v49 }
 0x8de   : > { %6385 = vmatpush3.bf16.msra.mxu1 %v6886_v54 }
 0x8df   : > { %6392 = vmatprep.subr.bf16.mxu1 %v6887_v56 }
 0x8e1   : > { %5774 = vmatmul.mubr.bf16.vlgmr.msra.gmra.mrb[64].mxu1 %v5182_v58 }
 0x8e2   : > { %6393 = vmatpush3.bf16.msra.mxu1 %v6888_v61  ;;  %5813 = vmatprep.mubr.bf16.mxu1 %v5185_v52 }
 0x8e3   : > { %6394 = vmatprep.subr.bf16.mxu1 %v6889_v31 }
 0x8e6   : > { %6395 = vmatpush3.bf16.msra.mxu1 %v6890_v29 }
 0x8e7   : > { %6396 = vmatprep.subr.bf16.mxu1 %v6891_v44 }
 0x8ea   : > { %6397 = vmatpush3.bf16.msra.mxu1 %v6892_v10 }
 0x8eb   : > { %6398 = vmatprep.subr.bf16.mxu1 %v6893_v30 }
 0x8ee   : > { %6399 = vmatpush3.bf16.msra.mxu1 %v6894_v38 }
 0x8ef   : > { %6400 = vmatprep.subr.bf16.mxu1 %v6895_v46 }
 0x8f2   : > { %6401 = vmatpush3.bf16.msra.mxu1 %v6896_v47 }
 0x8f3   : > { %6402 = vmatprep.subr.bf16.mxu1 %v6897_v43 }
 0x8f6   : > { %6403 = vmatpush3.bf16.msra.mxu1 %v6898_v5 }
 0x8f7   : > { %6404 = vmatprep.subr.bf16.mxu1 %v6899_v39 }
 0x8fa   : > { %6405 = vmatpush3.bf16.msra.mxu1 %v6900_v12 }
 0x8fb   : > { %6406 = vmatprep.subr.bf16.mxu1 %v6901_v21 }
 0x8fe   : > { %6407 = vmatpush3.bf16.msra.mxu1 %v6902_v19 }
 0x8ff   : > { %6414 = vmatprep.subr.bf16.mxu1 %v6903_v8 }
 0x901   : > { %5814 = vmatmul.mubr.bf16.vlgmr.msra.gmra.mrb[68].mxu1 %v5184_v4 }
 0x902   : > { %6415 = vmatpush3.bf16.msra.mxu1 %v6904_v36  ;;  %5853 = vmatprep.mubr.bf16.mxu1 %v5187_v6 }
 0x903   : > { %6416 = vmatprep.subr.bf16.mxu1 %v6905_v57 }
 0x906   : > { %6417 = vmatpush3.bf16.msra.mxu1 %v6906_v37 }
 0x907   : > { %6418 = vmatprep.subr.bf16.mxu1 %v6907_v22 }
 0x90a   : > { %6419 = vmatpush3.bf16.msra.mxu1 %v6908_v62 }
 0x90b   : > { %6420 = vmatprep.subr.bf16.mxu1 %v6909_v20 }
 0x90e   : > { %6421 = vmatpush3.bf16.msra.mxu1 %v6910_v18 }
 0x90f   : > { %6422 = vmatprep.subr.bf16.mxu1 %v6911_v55 }
 0x912   : > { %6423 = vmatpush3.bf16.msra.mxu1 %v6912_v63 }
 0x913   : > { %6424 = vmatprep.subr.bf16.mxu1 %v6913_v60 }
 0x916   : > { %6425 = vmatpush3.bf16.msra.mxu1 %v6914_v25 }
 0x917   : > { %6426 = vmatprep.subr.bf16.mxu1 %v6915_v45 }
 0x91a   : > { %6427 = vmatpush3.bf16.msra.mxu1 %v6916_v35 }
 0x91b   : > { %6428 = vmatprep.subr.bf16.mxu1 %v6917_v51 }
 0x91e   : > { %6429 = vmatpush3.bf16.msra.mxu1 %v6918_v0 }
 0x921   : > { %5854 = vmatmul.mubr.bf16.vlgmr.msra.gmra.mrb[72].mxu1 %v5186_v2 }
 0x994   : > { %v6364_v41 = vpop.f32.mrb[60].mxu1 }
 0x995   : > { %v6365_v53 = vpop.f32.mrb[61].mxu1 }
 0x996   : > { %v6366_v13 = vadd.f32 %v6365_v53, %v6364_v41  ;;  %v6367_v28 = vpop.f32.mrb[62].mxu1 }
 0x997   : > { %v6368_v27 = vpop.f32.mrb[63].mxu1 }
 0x998   : > { %v5736_v34 = vadd.f32 %v6366_v13, %v5316_v1 }
 0x9b4   : > { %v6386_v33 = vpop.f32.mrb[64].mxu1 }
 0x9b5   : > { %v6387_v42 = vpop.f32.mrb[65].mxu1 }
 0x9b6   : > { %v6388_v23 = vadd.f32 %v6387_v42, %v6386_v33  ;;  %v6389_v14 = vpop.f32.mrb[66].mxu1 }
 0x9b7   : > { %v6390_v3 = vpop.f32.mrb[67].mxu1 }
 0x9b8   : > { %v5776_v50 = vadd.f32 %v6388_v23, %v5736_v34 }
 0x9d4   : > { %v6408_v16 = vpop.f32.mrb[68].mxu1 }
 0x9d5   : > { %v6409_v40 = vpop.f32.mrb[69].mxu1 }
 0x9d6   : > { %v6410_v49 = vadd.f32 %v6409_v40, %v6408_v16  ;;  %v6411_v11 = vpop.f32.mrb[70].mxu1 }
 0x9d7   : > { %v6412_v59 = vpop.f32.mrb[71].mxu1 }
 0x9d8   : > { %v5816_v54 = vadd.f32 %v6410_v49, %v5776_v50 }
 0x9f4   : > { %v6430_v15 = vpop.f32.mrb[72].mxu1 }
 0x9f5   : > { %v6431_v56 = vpop.f32.mrb[73].mxu1 }
 0x9f6   : > { %v6432_v24 = vadd.f32 %v6431_v56, %v6430_v15  ;;  %v6433_v61 = vpop.f32.mrb[74].mxu1 }
 0x9f7   : > { %v6434_v58 = vpop.f32.mrb[75].mxu1 }
 0x9f8   : > { %v5856_v31 = vadd.f32 %v6432_v24, %v5816_v54 }
 0x9fa   : > { %5862 = vst.msk [vmem:[%s432_s24] sm:$0x1] %vm5861_vm6, %v5856_v31 }
 0x9fb   : > { %6939 = shalt.err (!%p6936_p3)
}
 0x9fc   : > { %s6940_s23 = scalar_lea.hbm %s9703_s2, 16  ;;  %s6944_s21 = scalar_lea.hbm %s9758_s13, 32 }
 0x9fd   : > { %p6941_p4 = scmp.ne.s32.totalorder %s9703_s2, %s6940_s23  ;;  %p6945_p9 = scmp.lt.u32.totalorder %s9703_s2, %s9758_s13 }
 0x9fe   : > { %p6946_p10 = scmp.lt.u32.totalorder %s6944_s21, %s6940_s23  ;;  %p6948_p12 = scmp.lt.u32.totalorder %s6940_s23, %s9703_s2 }
 0x9ff   : > { %p6942_p7 = pnand %p6941_p4, %p7119_p5 }
 0xa00   : > { %p6947_p11 = por %p6946_p10, %p6945_p9 }
 0xa01   : > { %p6943_p8 = pneg %p6942_p7 }
 0xa02   : > { %p6949_p13 = por %p6948_p12, %p6947_p11 }
 0xa04   : > { %p6950_p0 = pnand %p6949_p13, %p6943_p8 }
 0xa06   : > { %6953 = shalt.err (!%p6950_p0)
}
 0xa07   : > { %6515 = dma.vmem_to_hbm [thread:$0]  (%p7119_p5), %s9705_s15, 16, %s9703_s2, %s5864_s16  }
 0xa08 PF: > { %p6521_p1 = scmp.ge.s32.totalorder %s6988_s28, 2  ;;  %s5888_s29 = sand.u32 1, %s6976_s25  }
 0xa09   : > { %s5889_s22 = scalar_lea.sflag [#allocation11], %s5888_s29 }
 0xa0a   : > { %p6518_p2 = pnand %p6521_p1, %p7123_p6 }
 0xa0c   : > { %6971 = dma.done.wait (!%p6518_p2), %s5889_s22, 16  }
 0xa0d   : > { %6973 = vsyncadd (!%p6518_p2), %s5889_s22, 4294967280  ;;  %p23_p3 = scmp.ge.s32.totalorder %s7106_s14, 4   ;;  %s9946_s25 = smov %s6980_s26 }
 0xa0e   : > { %s9947_s26 = smov %s6984_s27  ;;  %s9948_s27 = smov %s7117_s17 }
 0xa0f   : > { %s9949_s28 = smov %s7106_s14  ;;  %25 = sbr.rel (!%p23_p3) target bundleno = 7 (0x7), region = 160 }
 0xa16   :  { %5893 = vsyncpa [#allocation11], 1 }
 0xa17   :  { %5895 = vsyncpa [#allocation11 + $0x1], 1 }

</bundles_post_ra>
